<compile_context>
chip_gen: v7x
topology: tpu7x:2x2x1
jax: 0.10.0
libtpu: 0.0.40
codegen_flags: <defaults>
</compile_context>

<pallas_src>
import functools
import numpy as np

import jax
import jax.numpy as jnp
from jax import lax
from jax.experimental import pallas as pl
from jax.experimental.pallas import tpu as pltpu

LANE = 128


def _round_up(x, m):
    return ((x + m - 1) // m) * m


def _sublane(dtype):
    return {4: 8, 2: 16, 1: 32}.get(jnp.dtype(dtype).itemsize, 8)


# ---------------------------------------------------------------------------
# Pallas kernels
# ---------------------------------------------------------------------------

def _conv_pool_kernel(p_ref, w_ref, b_ref, o_ref):
    """Fused im2col-GEMM conv + bias + 2x2 maxpool + ReLU for one M tile.

    p_ref: [4, tm, K]  im2col patches, one slab per 2x2 pool corner
    w_ref: [K, OC]     conv weights (K = kh*kw*Cin, padded to a lane multiple)
    b_ref: [1, OC]     bias (f32)
    o_ref: [tm, OC]    pooled activations, rows ordered (b, ph, pw)
    """
    w = w_ref[...]
    c0 = jnp.dot(p_ref[0], w, preferred_element_type=jnp.float32)
    c1 = jnp.dot(p_ref[1], w, preferred_element_type=jnp.float32)
    c2 = jnp.dot(p_ref[2], w, preferred_element_type=jnp.float32)
    c3 = jnp.dot(p_ref[3], w, preferred_element_type=jnp.float32)
    m = jnp.maximum(jnp.maximum(c0, c1), jnp.maximum(c2, c3))
    # relu(maxpool(conv + b)) == max over corners of (conv) + b, then relu.
    y = jnp.maximum(m + b_ref[...], 0.0)
    o_ref[...] = y.astype(o_ref.dtype)


def _fc_chain_kernel(x_ref, w1_ref, b1_ref, w2_ref, b2_ref, w3_ref, b3_ref, o_ref):
    """fc1+ReLU -> fc2+ReLU -> fc3, all weights VMEM-resident, one launch."""
    w1 = w1_ref[...]
    w2 = w2_ref[...]
    w3 = w3_ref[...]
    h = jnp.dot(x_ref[...], w1, preferred_element_type=jnp.float32)
    h = jnp.maximum(h + b1_ref[...], 0.0).astype(w2.dtype)
    h = jnp.dot(h, w2, preferred_element_type=jnp.float32)
    h = jnp.maximum(h + b2_ref[...], 0.0).astype(w3.dtype)
    h = jnp.dot(h, w3, preferred_element_type=jnp.float32)
    o_ref[...] = (h + b3_ref[...]).astype(o_ref.dtype)


# ---------------------------------------------------------------------------
# Tiling helper (dtype-aware, honest VMEM budget)
# ---------------------------------------------------------------------------

def _pick_block_m(m, row_in_bytes, row_out_bytes, resident_bytes, dtype,
                  vmem_budget_bytes=8 << 20):
    """Largest M tile (multiple of the sublane pack, dividing m) whose
    double-buffered in/out tiles plus resident weight blocks fit the budget.
    Budget is safely below the scoped-VMEM default on v5e/v6e (16/32 MiB) and
    v7x (32 MiB of 64 MiB physical)."""
    sub = _sublane(dtype)
    avail = max(vmem_budget_bytes - resident_bytes, 0)
    per_row = 2 * (row_in_bytes + row_out_bytes)      # double-buffered pipeline
    cap = (avail // max(per_row, 1)) // sub * sub
    if cap <= 0 or m <= cap:
        return m
    t = cap
    while t >= sub:
        if m % t == 0:
            return t
        t -= sub
    return m


# ---------------------------------------------------------------------------
# Pallas wrappers
# ---------------------------------------------------------------------------

def conv_pool_pallas(patches, w, b, out_dtype):
    """pooled = relu(maxpool2x2(patches_corner @ w + b)) for all 4 corners."""
    _, mp, k = patches.shape
    k2, oc = w.shape
    assert k == k2 and b.shape == (1, oc)
    itemsize = jnp.dtype(patches.dtype).itemsize
    out_itemsize = jnp.dtype(out_dtype).itemsize
    tm = _pick_block_m(mp,
                       row_in_bytes=4 * k * itemsize,
                       row_out_bytes=oc * out_itemsize,
                       resident_bytes=k * oc * itemsize + oc * 4,
                       dtype=patches.dtype)
    grid = (mp // tm,)
    cost = pl.CostEstimate(
        flops=2 * 4 * mp * k * oc,
        transcendentals=0,
        bytes_accessed=(4 * mp * k + k * oc + oc) * itemsize + mp * oc * out_itemsize)
    return pl.pallas_call(
        _conv_pool_kernel,
        out_shape=jax.ShapeDtypeStruct((mp, oc), out_dtype),
        grid=grid,
        in_specs=[
            pl.BlockSpec((4, tm, k), lambda i: (0, i, 0)),   # patches: tiled over M
            pl.BlockSpec((k, oc), lambda i: (0, 0)),         # weight: VMEM-resident
            pl.BlockSpec((1, oc), lambda i: (0, 0)),         # bias:   VMEM-resident
        ],
        out_specs=pl.BlockSpec((tm, oc), lambda i: (i, 0)),
        compiler_params=pltpu.CompilerParams(
            dimension_semantics=("parallel",)),               # megacore when tiled
        cost_estimate=cost,
    )(patches, w, b)


def fc_chain_pallas(x2d, w1, b1, w2, b2, w3, b3, out_dtype=jnp.float32):
    """logits = (relu(relu(x@w1+b1)@w2+b2))@w3+b3 in a single pallas_call."""
    m, k1 = x2d.shape
    n1, n2, n3 = w1.shape[1], w2.shape[1], w3.shape[1]
    itemsize = jnp.dtype(x2d.dtype).itemsize
    out_itemsize = jnp.dtype(out_dtype).itemsize
    resident = (w1.size + w2.size + w3.size) * itemsize + (n1 + n2 + n3) * 4
    tm = _pick_block_m(m, row_in_bytes=k1 * itemsize, row_out_bytes=n3 * out_itemsize,
                       resident_bytes=resident, dtype=x2d.dtype)
    grid = (m // tm,)
    cost = pl.CostEstimate(
        flops=2 * m * (k1 * n1 + n1 * n2 + n2 * n3),
        transcendentals=0,
        bytes_accessed=(m * k1 + w1.size + w2.size + w3.size) * itemsize
        + (n1 + n2 + n3) * 4 + m * n3 * out_itemsize)
    return pl.pallas_call(
        _fc_chain_kernel,
        out_shape=jax.ShapeDtypeStruct((m, n3), out_dtype),
        grid=grid,
        in_specs=[
            pl.BlockSpec((tm, k1), lambda i: (i, 0)),
            pl.BlockSpec((k1, n1), lambda i: (0, 0)),
            pl.BlockSpec((1, n1), lambda i: (0, 0)),
            pl.BlockSpec((n1, n2), lambda i: (0, 0)),
            pl.BlockSpec((1, n2), lambda i: (0, 0)),
            pl.BlockSpec((n2, n3), lambda i: (0, 0)),
            pl.BlockSpec((1, n3), lambda i: (0, 0)),
        ],
        out_specs=pl.BlockSpec((tm, n3), lambda i: (i, 0)),
        compiler_params=pltpu.CompilerParams(
            dimension_semantics=("parallel",)),
        cost_estimate=cost,
    )(x2d, w1, b1, w2, b2, w3, b3)


def _im2col_pool_corners(x_nhwc, kh, kw, k_pad, compute_dtype):
    """Build one im2col patch matrix per 2x2/stride-2 pool corner.

    TODO(synk): layout-only glue kept in XLA (fuses into one op, <1 MB here);
    see module docstring for why per-tap in-kernel dots were not used.
    Returns patches [4, B*PH*PW, k_pad] with rows ordered (b, ph, pw) and
    K ordered (i, j, c) then zero-padded to k_pad lanes.
    """
    bsz, h, w, c = x_nhwc.shape
    oh, ow = h - kh + 1, w - kw + 1
    assert oh % 2 == 0 and ow % 2 == 0, "2x2/2 maxpool expects even conv output"
    ph, pw = oh // 2, ow // 2
    corners = []
    for dh in range(2):
        for dw in range(2):
            taps = []
            for i in range(kh):
                for j in range(kw):
                    taps.append(x_nhwc[:, dh + i:dh + i + 2 * ph:2,
                                       dw + j:dw + j + 2 * pw:2, :])
            pc = jnp.concatenate(taps, axis=-1)              # [B, PH, PW, kh*kw*C]
            corners.append(pc.reshape(bsz * ph * pw, kh * kw * c))
    patches = jnp.stack(corners, axis=0)                     # [4, Mp, kh*kw*C]
    if k_pad > patches.shape[-1]:
        patches = jnp.pad(patches, ((0, 0), (0, 0), (0, k_pad - patches.shape[-1])))
    return patches.astype(compute_dtype), (bsz, ph, pw)


# ---------------------------------------------------------------------------
# Parameter re-layout (hoisted, done once per parameter set)
# ---------------------------------------------------------------------------

def prepare_params(torch_params, *, compute_dtype=jnp.float32):
    p = {k: jnp.asarray(v, jnp.float32) for k, v in torch_params.items()}
    cd = jnp.dtype(compute_dtype)

    def pad_axis(a, axis, size):
        pads = [(0, 0)] * a.ndim
        pads[axis] = (0, size - a.shape[axis])
        return jnp.pad(a, pads)

    def conv_w(w, c_act, oc_pad, k_pad):         # [OC,C,KH,KW] -> [(i,j,c)->k_pad, oc_pad]
        oc, c, kh, kw = w.shape
        w2 = jnp.transpose(w, (2, 3, 1, 0))      # [KH, KW, C, OC]
        w2 = pad_axis(w2, 2, c_act)              # match activation channel padding
        w2 = w2.reshape(kh * kw * c_act, oc)
        return pad_axis(pad_axis(w2, 0, k_pad), 1, oc_pad).astype(cd)

    def fc_w(w, k_pad, n_pad):                   # [out, in] -> [k_pad, n_pad]
        return pad_axis(pad_axis(w.T, 0, k_pad), 1, n_pad).astype(cd)

    def bias(b, n_pad):
        return pad_axis(b.reshape(1, -1), 1, n_pad).astype(jnp.float32)

    c_in = p["conv1_w"].shape[1]
    s = int(round(np.sqrt(p["fc1_w"].shape[1] // 16)))       # 5 (CIFAR) / 4 (MNIST)
    class_num = int(p["fc3_w"].shape[0])

    # Small sublane-sized channel padding between layers (NOT 128 lanes):
    c1_out = 8                                    # conv1: 6 -> 8 carried into conv2 K
    c2_out = 16                                   # conv2: exactly 16
    k1_pad = _round_up(25 * c_in, LANE)           # 75  -> 128 (lane-dense loads)
    k2_pad = _round_up(25 * c1_out, LANE)         # 200 -> 256
    n_cls = _round_up(max(class_num, 1), LANE)

    # fc1: PyTorch flattens NCHW (c, h, w); our activation flattens NHWC (h, w, c=16).
    f1 = p["fc1_w"].reshape(-1, 16, s, s).transpose(0, 2, 3, 1).reshape(-1, s * s * 16)

    return {
        "conv1_w": conv_w(p["conv1_w"], c_in, c1_out, k1_pad),
        "conv1_b": bias(p["conv1_b"], c1_out),
        "conv2_w": conv_w(p["conv2_w"], c1_out, c2_out, k2_pad),
        "conv2_b": bias(p["conv2_b"], c2_out),
        "fc1_w": fc_w(f1, s * s * 16, LANE),
        "fc1_b": bias(p["fc1_b"], LANE),
        "fc2_w": fc_w(p["fc2_w"], LANE, LANE),
        "fc2_b": bias(p["fc2_b"], LANE),
        "fc3_w": fc_w(p["fc3_w"], LANE, n_cls),
        "fc3_b": bias(p["fc3_b"], n_cls),
        "k1_pad": k1_pad, "k2_pad": k2_pad,
        "class_num": class_num,
        "compute_dtype": cd,
    }


# ---------------------------------------------------------------------------
# LeNet forward (Pallas path) and pure-JAX reference (PyTorch semantics)
# ---------------------------------------------------------------------------

def lenet_forward(x_nchw, kp):
    cd = kp["compute_dtype"]
    # TODO(synk): NCHW->NHWC input transpose is layout glue kept in XLA.
    x = jnp.transpose(x_nchw.astype(jnp.float32), (0, 2, 3, 1)).astype(cd)

    # Stage 1: conv1 + bias + ReLU + 2x2 maxpool — one pallas_call.
    p1, (bsz, h1, w1) = _im2col_pool_corners(x, 5, 5, kp["k1_pad"], cd)
    y1 = conv_pool_pallas(p1, kp["conv1_w"], kp["conv1_b"], cd)      # [B*h1*w1, 8]
    y1 = y1.reshape(bsz, h1, w1, kp["conv1_w"].shape[1])

    # Stage 2: conv2 + bias + ReLU + 2x2 maxpool — one pallas_call.
    p2, (_, h2, w2) = _im2col_pool_corners(y1, 5, 5, kp["k2_pad"], cd)
    y2 = conv_pool_pallas(p2, kp["conv2_w"], kp["conv2_b"], cd)      # [B*h2*w2, 16]
    feat = y2.reshape(bsz, h2 * w2 * kp["conv2_w"].shape[1])         # NHWC flatten

    # Stage 3: fc1+ReLU -> fc2+ReLU -> fc3 — one pallas_call.
    logits = fc_chain_pallas(feat.astype(cd),
                             kp["fc1_w"], kp["fc1_b"],
                             kp["fc2_w"], kp["fc2_b"],
                             kp["fc3_w"], kp["fc3_b"],
                             out_dtype=jnp.float32)
    return logits[:, :kp["class_num"]]


def lenet_reference(x_nchw, torch_params):
    p = {k: jnp.asarray(v, jnp.float32) for k, v in torch_params.items()}
    x = x_nchw.astype(jnp.float32)

    def conv(x, w, b):
        y = lax.conv_general_dilated(
            x, w, window_strides=(1, 1), padding="VALID",
            dimension_numbers=("NCHW", "OIHW", "NCHW"))
        return y + b[None, :, None, None]

    def pool(x):
        return lax.reduce_window(
            x, -jnp.inf, lax.max,
            window_dimensions=(1, 1, 2, 2), window_strides=(1, 1, 2, 2),
            padding="VALID")

    y = pool(jnp.maximum(conv(x, p["conv1_w"], p["conv1_b"]), 0.0))
    y = pool(jnp.maximum(conv(y, p["conv2_w"], p["conv2_b"]), 0.0))
    y = y.reshape(y.shape[0], -1)
    y = jnp.maximum(y @ p["fc1_w"].T + p["fc1_b"], 0.0)
    y = jnp.maximum(y @ p["fc2_w"].T + p["fc2_b"], 0.0)
    return y @ p["fc3_w"].T + p["fc3_b"]


if __name__ == "__main__":
    # CIFAR-10-like shapes (CIFAR branch of LeNet): B=2, 3x32x32, 10 classes.
    B, C, H, W = 2, 3, 32, 32
    class_num = 10

    key = jax.random.PRNGKey(0)
    keys = jax.random.split(key, 11)

    def u(k, shape, fan_in):
        bound = 1.0 / np.sqrt(fan_in)
        return jax.random.uniform(k, shape, jnp.float32, -bound, bound)

    torch_params = {
        "conv1_w": u(keys[0], (6, C, 5, 5), C * 25),
        "conv1_b": u(keys[1], (6,), C * 25),
        "conv2_w": u(keys[2], (16, 6, 5, 5), 6 * 25),
        "conv2_b": u(keys[3], (16,), 6 * 25),
        "fc1_w": u(keys[4], (120, 16 * 5 * 5), 400),
        "fc1_b": u(keys[5], (120,), 400),
        "fc2_w": u(keys[6], (84, 120), 120),
        "fc2_b": u(keys[7], (84,), 120),
        "fc3_w": u(keys[8], (class_num, 84), 84),
        "fc3_b": u(keys[9], (class_num,), 84),
    }
    x = jax.random.normal(keys[10], (B, C, H, W), dtype=jnp.float32)

    # compute_dtype=jnp.bfloat16 halves weight/activation DMA on v6e/v7x; the demo
    # keeps float32 so the allclose check against the f32 reference stays tight.
    kparams = prepare_params(torch_params, compute_dtype=jnp.float32)

    fwd = jax.jit(lambda xx: lenet_forward(xx, kparams))
    out = jax.block_until_ready(fwd(x))
    assert out.shape == (B, class_num)

    ref = lenet_reference(x, torch_params)
    np.testing.assert_allclose(np.asarray(out), np.asarray(ref), rtol=1e-3, atol=1e-3)

    print("KERNEL_OK")
</pallas_src>

<mosaic_0001>
module attributes {stable_mosaic.version = 11 : i64} {
  func.func @_conv_pool_kernel(%arg0: i32, %arg1: memref<4x392x128xf32, #tpu.memory_space<vmem>>, %arg2: memref<128x8xf32, #tpu.memory_space<vmem>>, %arg3: memref<1x8xf32, #tpu.memory_space<vmem>>, %arg4: memref<392x8xf32, #tpu.memory_space<vmem>>) attributes {dimension_semantics = [#tpu.dimension_semantics<parallel>], iteration_bounds = array<i64: 1>, scalar_prefetch = 0 : i64, scratch_operands = 0 : i64, tpu.core_type = #tpu.core_type<tc>, window_params = [{transform_indices = @transform_0, window_bounds = array<i64: 4, 392, 128>}, {pipeline_mode = #tpu.pipeline_mode<synchronous>, transform_indices = @transform_1, window_bounds = array<i64: 128, 8>}, {pipeline_mode = #tpu.pipeline_mode<synchronous>, transform_indices = @transform_2, window_bounds = array<i64: 1, 8>}, {transform_indices = @transform_3, window_bounds = array<i64: 392, 8>}]} {
    %c0 = arith.constant 0 : index
    %c0_0 = arith.constant 0 : index
    %0 = vector.load %arg2[%c0, %c0_0] : memref<128x8xf32, #tpu.memory_space<vmem>>, vector<128x8xf32>
    %c0_1 = arith.constant 0 : index
    %c0_2 = arith.constant 0 : index
    %c0_3 = arith.constant 0 : index
    %1 = vector.load %arg1[%c0_1, %c0_2, %c0_3] : memref<4x392x128xf32, #tpu.memory_space<vmem>>, vector<1x392x128xf32>
    %2 = vector.shape_cast %1 : vector<1x392x128xf32> to vector<392x128xf32>
    %cst = arith.constant dense<0.000000e+00> : vector<392x8xf32>
    %3 = tpu.matmul %2, %0, %cst {dimension_numbers = #tpu.dot_dimension_numbers<[1], [0], [0], [1], [0, 0, 1, 1], [], []>} : vector<392x128xf32>, vector<128x8xf32>, vector<392x8xf32> -> vector<392x8xf32>
    %c1 = arith.constant 1 : index
    %c0_4 = arith.constant 0 : index
    %c0_5 = arith.constant 0 : index
    %4 = vector.load %arg1[%c1, %c0_4, %c0_5] : memref<4x392x128xf32, #tpu.memory_space<vmem>>, vector<1x392x128xf32>
    %5 = vector.shape_cast %4 : vector<1x392x128xf32> to vector<392x128xf32>
    %cst_6 = arith.constant dense<0.000000e+00> : vector<392x8xf32>
    %6 = tpu.matmul %5, %0, %cst_6 {dimension_numbers = #tpu.dot_dimension_numbers<[1], [0], [0], [1], [0, 0, 1, 1], [], []>} : vector<392x128xf32>, vector<128x8xf32>, vector<392x8xf32> -> vector<392x8xf32>
    %c2 = arith.constant 2 : index
    %c0_7 = arith.constant 0 : index
    %c0_8 = arith.constant 0 : index
    %7 = vector.load %arg1[%c2, %c0_7, %c0_8] : memref<4x392x128xf32, #tpu.memory_space<vmem>>, vector<1x392x128xf32>
    %8 = vector.shape_cast %7 : vector<1x392x128xf32> to vector<392x128xf32>
    %cst_9 = arith.constant dense<0.000000e+00> : vector<392x8xf32>
    %9 = tpu.matmul %8, %0, %cst_9 {dimension_numbers = #tpu.dot_dimension_numbers<[1], [0], [0], [1], [0, 0, 1, 1], [], []>} : vector<392x128xf32>, vector<128x8xf32>, vector<392x8xf32> -> vector<392x8xf32>
    %c3 = arith.constant 3 : index
    %c0_10 = arith.constant 0 : index
    %c0_11 = arith.constant 0 : index
    %10 = vector.load %arg1[%c3, %c0_10, %c0_11] : memref<4x392x128xf32, #tpu.memory_space<vmem>>, vector<1x392x128xf32>
    %11 = vector.shape_cast %10 : vector<1x392x128xf32> to vector<392x128xf32>
    %cst_12 = arith.constant dense<0.000000e+00> : vector<392x8xf32>
    %12 = tpu.matmul %11, %0, %cst_12 {dimension_numbers = #tpu.dot_dimension_numbers<[1], [0], [0], [1], [0, 0, 1, 1], [], []>} : vector<392x128xf32>, vector<128x8xf32>, vector<392x8xf32> -> vector<392x8xf32>
    %13 = arith.maximumf %3, %6 : vector<392x8xf32>
    %14 = arith.maximumf %9, %12 : vector<392x8xf32>
    %15 = arith.maximumf %13, %14 : vector<392x8xf32>
    %c0_13 = arith.constant 0 : index
    %c0_14 = arith.constant 0 : index
    %16 = vector.load %arg3[%c0_13, %c0_14] : memref<1x8xf32, #tpu.memory_space<vmem>>, vector<1x8xf32>
    %17 = vector.broadcast %16 : vector<1x8xf32> to vector<392x8xf32>
    %18 = arith.addf %15, %17 : vector<392x8xf32>
    %cst_15 = arith.constant 0.000000e+00 : f32
    %19 = vector.broadcast %cst_15 : f32 to vector<392x8xf32>
    %20 = arith.maximumf %18, %19 : vector<392x8xf32>
    %c0_16 = arith.constant 0 : index
    %c0_17 = arith.constant 0 : index
    %21 = vector.load %arg4[%c0_16, %c0_17] : memref<392x8xf32, #tpu.memory_space<vmem>>, vector<392x8xf32>
    tpu.vector_store %arg4[%c0_16, %c0_17], %20 {strides = array<i32>} : memref<392x8xf32, #tpu.memory_space<vmem>>, vector<392x8xf32>,
    return
  }
  func.func @transform_0(%arg0: i32) -> (i32, i32, i32) {
    %c0_i32 = arith.constant 0 : i32
    %c0_i32_0 = arith.constant 0 : i32
    %c0_i32_1 = arith.constant 0 : i32
    return %c0_i32, %arg0, %c0_i32_0 : i32, i32, i32
  }
  func.func @transform_1(%arg0: i32) -> (i32, i32) {
    %c0_i32 = arith.constant 0 : i32
    %c0_i32_0 = arith.constant 0 : i32
    %c0_i32_1 = arith.constant 0 : i32
    return %c0_i32, %c0_i32_0 : i32, i32
  }
  func.func @transform_2(%arg0: i32) -> (i32, i32) {
    %c0_i32 = arith.constant 0 : i32
    %c0_i32_0 = arith.constant 0 : i32
    %c0_i32_1 = arith.constant 0 : i32
    return %c0_i32, %c0_i32_0 : i32, i32
  }
  func.func @transform_3(%arg0: i32) -> (i32, i32) {
    %c0_i32 = arith.constant 0 : i32
    %c0_i32_0 = arith.constant 0 : i32
    return %arg0, %c0_i32 : i32, i32
  }
}

module attributes {stable_mosaic.version = 11 : i64} {
  func.func @_conv_pool_kernel(%arg0: i32, %arg1: memref<4x50x256xf32, #tpu.memory_space<vmem>>, %arg2: memref<256x16xf32, #tpu.memory_space<vmem>>, %arg3: memref<1x16xf32, #tpu.memory_space<vmem>>, %arg4: memref<50x16xf32, #tpu.memory_space<vmem>>) attributes {dimension_semantics = [#tpu.dimension_semantics<parallel>], iteration_bounds = array<i64: 1>, scalar_prefetch = 0 : i64, scratch_operands = 0 : i64, tpu.core_type = #tpu.core_type<tc>, window_params = [{transform_indices = @transform_0, window_bounds = array<i64: 4, 50, 256>}, {pipeline_mode = #tpu.pipeline_mode<synchronous>, transform_indices = @transform_1, window_bounds = array<i64: 256, 16>}, {pipeline_mode = #tpu.pipeline_mode<synchronous>, transform_indices = @transform_2, window_bounds = array<i64: 1, 16>}, {transform_indices = @transform_3, window_bounds = array<i64: 50, 16>}]} {
    %c0 = arith.constant 0 : index
    %c0_0 = arith.constant 0 : index
    %0 = vector.load %arg2[%c0, %c0_0] : memref<256x16xf32, #tpu.memory_space<vmem>>, vector<256x16xf32>
    %c0_1 = arith.constant 0 : index
    %c0_2 = arith.constant 0 : index
    %c0_3 = arith.constant 0 : index
    %1 = vector.load %arg1[%c0_1, %c0_2, %c0_3] : memref<4x50x256xf32, #tpu.memory_space<vmem>>, vector<1x50x256xf32>
    %2 = vector.shape_cast %1 : vector<1x50x256xf32> to vector<50x256xf32>
    %cst = arith.constant dense<0.000000e+00> : vector<50x16xf32>
    %3 = tpu.matmul %2, %0, %cst {dimension_numbers = #tpu.dot_dimension_numbers<[1], [0], [0], [1], [0, 0, 1, 1], [], []>} : vector<50x256xf32>, vector<256x16xf32>, vector<50x16xf32> -> vector<50x16xf32>
    %c1 = arith.constant 1 : index
    %c0_4 = arith.constant 0 : index
    %c0_5 = arith.constant 0 : index
    %4 = vector.load %arg1[%c1, %c0_4, %c0_5] : memref<4x50x256xf32, #tpu.memory_space<vmem>>, vector<1x50x256xf32>
    %5 = vector.shape_cast %4 : vector<1x50x256xf32> to vector<50x256xf32>
    %cst_6 = arith.constant dense<0.000000e+00> : vector<50x16xf32>
    %6 = tpu.matmul %5, %0, %cst_6 {dimension_numbers = #tpu.dot_dimension_numbers<[1], [0], [0], [1], [0, 0, 1, 1], [], []>} : vector<50x256xf32>, vector<256x16xf32>, vector<50x16xf32> -> vector<50x16xf32>
    %c2 = arith.constant 2 : index
    %c0_7 = arith.constant 0 : index
    %c0_8 = arith.constant 0 : index
    %7 = vector.load %arg1[%c2, %c0_7, %c0_8] : memref<4x50x256xf32, #tpu.memory_space<vmem>>, vector<1x50x256xf32>
    %8 = vector.shape_cast %7 : vector<1x50x256xf32> to vector<50x256xf32>
    %cst_9 = arith.constant dense<0.000000e+00> : vector<50x16xf32>
    %9 = tpu.matmul %8, %0, %cst_9 {dimension_numbers = #tpu.dot_dimension_numbers<[1], [0], [0], [1], [0, 0, 1, 1], [], []>} : vector<50x256xf32>, vector<256x16xf32>, vector<50x16xf32> -> vector<50x16xf32>
    %c3 = arith.constant 3 : index
    %c0_10 = arith.constant 0 : index
    %c0_11 = arith.constant 0 : index
    %10 = vector.load %arg1[%c3, %c0_10, %c0_11] : memref<4x50x256xf32, #tpu.memory_space<vmem>>, vector<1x50x256xf32>
    %11 = vector.shape_cast %10 : vector<1x50x256xf32> to vector<50x256xf32>
    %cst_12 = arith.constant dense<0.000000e+00> : vector<50x16xf32>
    %12 = tpu.matmul %11, %0, %cst_12 {dimension_numbers = #tpu.dot_dimension_numbers<[1], [0], [0], [1], [0, 0, 1, 1], [], []>} : vector<50x256xf32>, vector<256x16xf32>, vector<50x16xf32> -> vector<50x16xf32>
    %13 = arith.maximumf %3, %6 : vector<50x16xf32>
    %14 = arith.maximumf %9, %12 : vector<50x16xf32>
    %15 = arith.maximumf %13, %14 : vector<50x16xf32>
    %c0_13 = arith.constant 0 : index
    %c0_14 = arith.constant 0 : index
    %16 = vector.load %arg3[%c0_13, %c0_14] : memref<1x16xf32, #tpu.memory_space<vmem>>, vector<1x16xf32>
    %17 = vector.broadcast %16 : vector<1x16xf32> to vector<50x16xf32>
    %18 = arith.addf %15, %17 : vector<50x16xf32>
    %cst_15 = arith.constant 0.000000e+00 : f32
    %19 = vector.broadcast %cst_15 : f32 to vector<50x16xf32>
    %20 = arith.maximumf %18, %19 : vector<50x16xf32>
    %c0_16 = arith.constant 0 : index
    %c0_17 = arith.constant 0 : index
    %21 = vector.load %arg4[%c0_16, %c0_17] : memref<50x16xf32, #tpu.memory_space<vmem>>, vector<50x16xf32>
    tpu.vector_store %arg4[%c0_16, %c0_17], %20 {strides = array<i32>} : memref<50x16xf32, #tpu.memory_space<vmem>>, vector<50x16xf32>,
    return
  }
  func.func @transform_0(%arg0: i32) -> (i32, i32, i32) {
    %c0_i32 = arith.constant 0 : i32
    %c0_i32_0 = arith.constant 0 : i32
    %c0_i32_1 = arith.constant 0 : i32
    return %c0_i32, %arg0, %c0_i32_0 : i32, i32, i32
  }
  func.func @transform_1(%arg0: i32) -> (i32, i32) {
    %c0_i32 = arith.constant 0 : i32
    %c0_i32_0 = arith.constant 0 : i32
    %c0_i32_1 = arith.constant 0 : i32
    return %c0_i32, %c0_i32_0 : i32, i32
  }
  func.func @transform_2(%arg0: i32) -> (i32, i32) {
    %c0_i32 = arith.constant 0 : i32
    %c0_i32_0 = arith.constant 0 : i32
    %c0_i32_1 = arith.constant 0 : i32
    return %c0_i32, %c0_i32_0 : i32, i32
  }
  func.func @transform_3(%arg0: i32) -> (i32, i32) {
    %c0_i32 = arith.constant 0 : i32
    %c0_i32_0 = arith.constant 0 : i32
    return %arg0, %c0_i32 : i32, i32
  }
}

module attributes {stable_mosaic.version = 11 : i64} {
  func.func @_fc_chain_kernel(%arg0: i32, %arg1: memref<2x400xf32, #tpu.memory_space<vmem>>, %arg2: memref<400x128xf32, #tpu.memory_space<vmem>>, %arg3: memref<1x128xf32, #tpu.memory_space<vmem>>, %arg4: memref<128x128xf32, #tpu.memory_space<vmem>>, %arg5: memref<1x128xf32, #tpu.memory_space<vmem>>, %arg6: memref<128x128xf32, #tpu.memory_space<vmem>>, %arg7: memref<1x128xf32, #tpu.memory_space<vmem>>, %arg8: memref<2x128xf32, #tpu.memory_space<vmem>>) attributes {dimension_semantics = [#tpu.dimension_semantics<parallel>], iteration_bounds = array<i64: 1>, scalar_prefetch = 0 : i64, scratch_operands = 0 : i64, tpu.core_type = #tpu.core_type<tc>, window_params = [{transform_indices = @transform_0, window_bounds = array<i64: 2, 400>}, {pipeline_mode = #tpu.pipeline_mode<synchronous>, transform_indices = @transform_1, window_bounds = array<i64: 400, 128>}, {pipeline_mode = #tpu.pipeline_mode<synchronous>, transform_indices = @transform_2, window_bounds = array<i64: 1, 128>}, {pipeline_mode = #tpu.pipeline_mode<synchronous>, transform_indices = @transform_3, window_bounds = array<i64: 128, 128>}, {pipeline_mode = #tpu.pipeline_mode<synchronous>, transform_indices = @transform_4, window_bounds = array<i64: 1, 128>}, {pipeline_mode = #tpu.pipeline_mode<synchronous>, transform_indices = @transform_5, window_bounds = array<i64: 128, 128>}, {pipeline_mode = #tpu.pipeline_mode<synchronous>, transform_indices = @transform_6, window_bounds = array<i64: 1, 128>}, {transform_indices = @transform_7, window_bounds = array<i64: 2, 128>}]} {
    %c0 = arith.constant 0 : index
    %c0_0 = arith.constant 0 : index
    %0 = vector.load %arg2[%c0, %c0_0] : memref<400x128xf32, #tpu.memory_space<vmem>>, vector<400x128xf32>
    %c0_1 = arith.constant 0 : index
    %c0_2 = arith.constant 0 : index
    %1 = vector.load %arg4[%c0_1, %c0_2] : memref<128x128xf32, #tpu.memory_space<vmem>>, vector<128x128xf32>
    %c0_3 = arith.constant 0 : index
    %c0_4 = arith.constant 0 : index
    %2 = vector.load %arg6[%c0_3, %c0_4] : memref<128x128xf32, #tpu.memory_space<vmem>>, vector<128x128xf32>
    %c0_5 = arith.constant 0 : index
    %c0_6 = arith.constant 0 : index
    %3 = vector.load %arg1[%c0_5, %c0_6] : memref<2x400xf32, #tpu.memory_space<vmem>>, vector<2x400xf32>
    %cst = arith.constant dense<0.000000e+00> : vector<2x128xf32>
    %4 = tpu.matmul %3, %0, %cst {dimension_numbers = #tpu.dot_dimension_numbers<[1], [0], [0], [1], [0, 0, 1, 1], [], []>} : vector<2x400xf32>, vector<400x128xf32>, vector<2x128xf32> -> vector<2x128xf32>
    %c0_7 = arith.constant 0 : index
    %c0_8 = arith.constant 0 : index
    %5 = vector.load %arg3[%c0_7, %c0_8] : memref<1x128xf32, #tpu.memory_space<vmem>>, vector<1x128xf32>
    %6 = vector.broadcast %5 : vector<1x128xf32> to vector<2x128xf32>
    %7 = arith.addf %4, %6 : vector<2x128xf32>
    %cst_9 = arith.constant 0.000000e+00 : f32
    %8 = vector.broadcast %cst_9 : f32 to vector<2x128xf32>
    %9 = arith.maximumf %7, %8 : vector<2x128xf32>
    %cst_10 = arith.constant dense<0.000000e+00> : vector<2x128xf32>
    %10 = tpu.matmul %9, %1, %cst_10 {dimension_numbers = #tpu.dot_dimension_numbers<[1], [0], [0], [1], [0, 0, 1, 1], [], []>} : vector<2x128xf32>, vector<128x128xf32>, vector<2x128xf32> -> vector<2x128xf32>
    %c0_11 = arith.constant 0 : index
    %c0_12 = arith.constant 0 : index
    %11 = vector.load %arg5[%c0_11, %c0_12] : memref<1x128xf32, #tpu.memory_space<vmem>>, vector<1x128xf32>
    %12 = vector.broadcast %11 : vector<1x128xf32> to vector<2x128xf32>
    %13 = arith.addf %10, %12 : vector<2x128xf32>
    %cst_13 = arith.constant 0.000000e+00 : f32
    %14 = vector.broadcast %cst_13 : f32 to vector<2x128xf32>
    %15 = arith.maximumf %13, %14 : vector<2x128xf32>
    %cst_14 = arith.constant dense<0.000000e+00> : vector<2x128xf32>
    %16 = tpu.matmul %15, %2, %cst_14 {dimension_numbers = #tpu.dot_dimension_numbers<[1], [0], [0], [1], [0, 0, 1, 1], [], []>} : vector<2x128xf32>, vector<128x128xf32>, vector<2x128xf32> -> vector<2x128xf32>
    %c0_15 = arith.constant 0 : index
    %c0_16 = arith.constant 0 : index
    %17 = vector.load %arg7[%c0_15, %c0_16] : memref<1x128xf32, #tpu.memory_space<vmem>>, vector<1x128xf32>
    %18 = vector.broadcast %17 : vector<1x128xf32> to vector<2x128xf32>
    %19 = arith.addf %16, %18 : vector<2x128xf32>
    %c0_17 = arith.constant 0 : index
    %c0_18 = arith.constant 0 : index
    %20 = vector.load %arg8[%c0_17, %c0_18] : memref<2x128xf32, #tpu.memory_space<vmem>>, vector<2x128xf32>
    tpu.vector_store %arg8[%c0_17, %c0_18], %19 {strides = array<i32>} : memref<2x128xf32, #tpu.memory_space<vmem>>, vector<2x128xf32>,
    return
  }
  func.func @transform_0(%arg0: i32) -> (i32, i32) {
    %c0_i32 = arith.constant 0 : i32
    %c0_i32_0 = arith.constant 0 : i32
    return %arg0, %c0_i32 : i32, i32
  }
  func.func @transform_1(%arg0: i32) -> (i32, i32) {
    %c0_i32 = arith.constant 0 : i32
    %c0_i32_0 = arith.constant 0 : i32
    %c0_i32_1 = arith.constant 0 : i32
    return %c0_i32, %c0_i32_0 : i32, i32
  }
  func.func @transform_2(%arg0: i32) -> (i32, i32) {
    %c0_i32 = arith.constant 0 : i32
    %c0_i32_0 = arith.constant 0 : i32
    %c0_i32_1 = arith.constant 0 : i32
    return %c0_i32, %c0_i32_0 : i32, i32
  }
  func.func @transform_3(%arg0: i32) -> (i32, i32) {
    %c0_i32 = arith.constant 0 : i32
    %c0_i32_0 = arith.constant 0 : i32
    %c0_i32_1 = arith.constant 0 : i32
    return %c0_i32, %c0_i32_0 : i32, i32
  }
  func.func @transform_4(%arg0: i32) -> (i32, i32) {
    %c0_i32 = arith.constant 0 : i32
    %c0_i32_0 = arith.constant 0 : i32
    %c0_i32_1 = arith.constant 0 : i32
    return %c0_i32, %c0_i32_0 : i32, i32
  }
  func.func @transform_5(%arg0: i32) -> (i32, i32) {
    %c0_i32 = arith.constant 0 : i32
    %c0_i32_0 = arith.constant 0 : i32
    %c0_i32_1 = arith.constant 0 : i32
    return %c0_i32, %c0_i32_0 : i32, i32
  }
  func.func @transform_6(%arg0: i32) -> (i32, i32) {
    %c0_i32 = arith.constant 0 : i32
    %c0_i32_0 = arith.constant 0 : i32
    %c0_i32_1 = arith.constant 0 : i32
    return %c0_i32, %c0_i32_0 : i32, i32
  }
  func.func @transform_7(%arg0: i32) -> (i32, i32) {
    %c0_i32 = arith.constant 0 : i32
    %c0_i32_0 = arith.constant 0 : i32
    return %arg0, %c0_i32 : i32, i32
  }
}

</mosaic_0001>

<bundles_post_ra>
// kernel: _lambda_.3
= control target key start
LH: loop header
LB: loop body
LE: loop exit
PB: predicated region body
PF: predicated region fallthrough
CT: control target
= control target key end

     0   :  { %v2998_v0 = vmov 0.0|0.0   ;;  %vm2999_vm0 = vmmov 0   ;;  %v3000_v6 = vmov 0.0   ;;  %vm1721_vm1 = vcmask 64512   ;;  %s4814_s1 = inlined_call_operand.vmem [shape: f32[128,8], index: 1, kind: input, shape index: {}]   ;;  %s4815_s0 = inlined_call_operand.vmem [shape: f32[4,392,128], index: 0, kind: input, shape index: {}]   ;;  %s4816_s2 = inlined_call_operand.vmem [shape: f32[1,8], index: 2, kind: input, shape index: {}]   ;;  %s4817_s3 = inlined_call_operand.vmem [shape: f32[392,8], index: 3, kind: output, shape index: {}]  }
   0x1   :  { %2899 = vmatprep.subr.bf16.mxu0 %v2998_v0  ;;  %2923 = vmatprep.subr.bf16.mxu1 %v2998_v0  ;;  %v14_v1 = vld [vmem:[%s4814_s1] sm:$0xff]  ;;  %v15_v2 = vld [vmem:[%s4814_s1 + $0x8] sm:$0xff]  ;;  %v16_v3 = vld [vmem:[%s4814_s1 + $0x10] sm:$0xff] }
   0x2   :  { %v2900_v4 = vpack.c.bf16 %v15_v2, %v14_v1  ;;  %v17_v5 = vld [vmem:[%s4814_s1 + $0x18] sm:$0xff]  ;;  %2215 = vmatprep.mubr.msk.f32.mxu0 %vm2999_vm0, %v3000_v6  ;;  %2394 = vmatprep.mubr.msk.f32.mxu1 %vm2999_vm0, %v3000_v6  ;;  %v18_v8 = vld [vmem:[%s4814_s1 + $0x20] sm:$0xff]  ;;  %v19_v9 = vld [vmem:[%s4814_s1 + $0x28] sm:$0xff] }
   0x3   :  { %v3039_v7 = vpack.c.bf16 %v17_v5, %v16_v3  ;;  %v3051_v10 = vpack.c.bf16 %v19_v9, %v18_v8  ;;  %v20_v11 = vld [vmem:[%s4814_s1 + $0x30] sm:$0xff]  ;;  %v21_v12 = vld [vmem:[%s4814_s1 + $0x38] sm:$0xff]  ;;  %v22_v14 = vld [vmem:[%s4814_s1 + $0x40] sm:$0xff] }
   0x4   :  { %2901 = vmatpush3.bf16.msra.mxu0 %v2900_v4  ;;  %2925 = vmatpush3.bf16.msra.mxu1 %v2900_v4  ;;  %v3063_v13 = vpack.c.bf16 %v21_v12, %v20_v11  ;;  %v23_v15 = vld [vmem:[%s4814_s1 + $0x48] sm:$0xff]  ;;  %v24_v17 = vld [vmem:[%s4814_s1 + $0x50] sm:$0xff]  ;;  %v25_v18 = vld [vmem:[%s4814_s1 + $0x58] sm:$0xff] }
   0x5   :  { %2902 = vmatprep.subr.bf16.mxu0 %v2998_v0  ;;  %2926 = vmatprep.subr.bf16.mxu1 %v2998_v0  ;;  %v3075_v16 = vpack.c.bf16 %v23_v15, %v22_v14  ;;  %v3087_v19 = vpack.c.bf16 %v25_v18, %v24_v17  ;;  %v26_v20 = vld [vmem:[%s4814_s1 + $0x60] sm:$0xff]  ;;  %v27_v21 = vld [vmem:[%s4814_s1 + $0x68] sm:$0xff]  ;;  %v28_v23 = vld [vmem:[%s4814_s1 + $0x70] sm:$0xff] }
   0x6   :  { %v3099_v22 = vpack.c.bf16 %v27_v21, %v26_v20  ;;  %v29_v24 = vld [vmem:[%s4814_s1 + $0x78] sm:$0xff]  ;;  %v30_v26 = vld [vmem:[%s4815_s0] sm:$0xff]  ;;  %v1775_v27 = vld [vmem:[%s4815_s0 + $0x188] sm:$0xff] }
   0x7   :  { %v3111_v25 = vpack.c.bf16 %v29_v24, %v28_v23  ;;  %v31_v28 = vld [vmem:[%s4815_s0 + $0x8] sm:$0xff]  ;;  %v1776_v29 = vld [vmem:[%s4815_s0 + $0x190] sm:$0xff]  ;;  %v1777_v31 = vld [vmem:[%s4815_s0 + $0x198] sm:$0xff] }
   0x8   :  { %2904 = vmatpush3.bf16.msra.mxu0 %v3039_v7  ;;  %2928 = vmatpush3.bf16.msra.mxu1 %v3039_v7  ;;  %v32_v30 = vld [vmem:[%s4815_s0 + $0x10] sm:$0xff]  ;;  %v33_v32 = vld [vmem:[%s4815_s0 + $0x18] sm:$0xff]  ;;  %v1778_v33 = vld [vmem:[%s4815_s0 + $0x1a0] sm:$0xff] }
   0x9   :  { %2905 = vmatprep.subr.bf16.mxu0 %v2998_v0  ;;  %2929 = vmatprep.subr.bf16.mxu1 %v2998_v0  ;;  %v34_v34 = vld [vmem:[%s4815_s0 + $0x20] sm:$0xff]  ;;  %v1779_v35 = vld [vmem:[%s4815_s0 + $0x1a8] sm:$0xff]  ;;  %v1780_v37 = vld [vmem:[%s4815_s0 + $0x1b0] sm:$0xff] }
   0xa   :  { %v35_v36 = vld [vmem:[%s4815_s0 + $0x28] sm:$0xff]  ;;  %v36_v38 = vld [vmem:[%s4815_s0 + $0x30] sm:$0xff]  ;;  %v1781_v39 = vld [vmem:[%s4815_s0 + $0x1b8] sm:$0xff] }
   0xb   :  { %v37_v40 = vld [vmem:[%s4815_s0 + $0x38] sm:$0xff]  ;;  %v1782_v41 = vld [vmem:[%s4815_s0 + $0x1c0] sm:$0xff]  ;;  %v1783_v43 = vld [vmem:[%s4815_s0 + $0x1c8] sm:$0xff] }
   0xc   :  { %2907 = vmatpush3.bf16.msra.mxu0 %v3051_v10  ;;  %2931 = vmatpush3.bf16.msra.mxu1 %v3051_v10  ;;  %v38_v42 = vld [vmem:[%s4815_s0 + $0x40] sm:$0xff]  ;;  %v39_v44 = vld [vmem:[%s4815_s0 + $0x48] sm:$0xff]  ;;  %v1784_v45 = vld [vmem:[%s4815_s0 + $0x1d0] sm:$0xff] }
   0xd   :  { %2908 = vmatprep.subr.bf16.mxu0 %v2998_v0  ;;  %2932 = vmatprep.subr.bf16.mxu1 %v2998_v0  ;;  %v40_v46 = vld [vmem:[%s4815_s0 + $0x50] sm:$0xff]  ;;  %v1785_v47 = vld [vmem:[%s4815_s0 + $0x1d8] sm:$0xff]  ;;  %v1786_v49 = vld [vmem:[%s4815_s0 + $0x1e0] sm:$0xff] }
   0xe   :  { %v41_v48 = vld [vmem:[%s4815_s0 + $0x58] sm:$0xff]  ;;  %v42_v50 = vld [vmem:[%s4815_s0 + $0x60] sm:$0xff]  ;;  %v1787_v51 = vld [vmem:[%s4815_s0 + $0x1e8] sm:$0xff] }
   0xf   :  { %v43_v52 = vld [vmem:[%s4815_s0 + $0x68] sm:$0xff]  ;;  %v1788_v53 = vld [vmem:[%s4815_s0 + $0x1f0] sm:$0xff]  ;;  %v1789_v55 = vld [vmem:[%s4815_s0 + $0x1f8] sm:$0xff] }
  0x10   :  { %2910 = vmatpush3.bf16.msra.mxu0 %v3063_v13  ;;  %2934 = vmatpush3.bf16.msra.mxu1 %v3063_v13  ;;  %v44_v54 = vld [vmem:[%s4815_s0 + $0x70] sm:$0xff]  ;;  %v45_v56 = vld [vmem:[%s4815_s0 + $0x78] sm:$0xff]  ;;  %v1790_v57 = vld [vmem:[%s4815_s0 + $0x200] sm:$0xff] }
  0x11   :  { %2911 = vmatprep.subr.bf16.mxu0 %v2998_v0  ;;  %2935 = vmatprep.subr.bf16.mxu1 %v2998_v0  ;;  %v46_v58 = vld [vmem:[%s4815_s0 + $0x80] sm:$0xff]  ;;  %v1791_v59 = vld [vmem:[%s4815_s0 + $0x208] sm:$0xff]  ;;  %v1792_v61 = vld [vmem:[%s4815_s0 + $0x210] sm:$0xff] }
  0x12   :  { %v47_v60 = vld [vmem:[%s4815_s0 + $0x88] sm:$0xff]  ;;  %v48_v62 = vld [vmem:[%s4815_s0 + $0x90] sm:$0xff]  ;;  %v1793_v63 = vld [vmem:[%s4815_s0 + $0x218] sm:$0xff] }
  0x13   :  { %v1794_v1 = vld [vmem:[%s4815_s0 + $0x220] sm:$0xff]  ;;  %v1795_v3 = vld [vmem:[%s4815_s0 + $0x228] sm:$0xff]  ;;  %v1796_v5 = vld [vmem:[%s4815_s0 + $0x230] sm:$0xff] }
  0x14   :  { %2913 = vmatpush3.bf16.msra.mxu0 %v3075_v16  ;;  %2937 = vmatpush3.bf16.msra.mxu1 %v3075_v16  ;;  %v50_v2 = vld [vmem:[%s4815_s0 + $0xa0] sm:$0xff]  ;;  %v1797_v8 = vld [vmem:[%s4815_s0 + $0x238] sm:$0xff]  ;;  %v1799_v12 = vld [vmem:[%s4815_s0 + $0x248] sm:$0xff] }
  0x15   :  { %2914 = vmatprep.subr.bf16.mxu0 %v2998_v0  ;;  %2938 = vmatprep.subr.bf16.mxu1 %v2998_v0  ;;  %v53_v9 = vld [vmem:[%s4815_s0 + $0xb8] sm:$0xff]  ;;  %v54_v11 = vld [vmem:[%s4815_s0 + $0xc0] sm:$0xff]  ;;  %v1800_v14 = vld [vmem:[%s4815_s0 + $0x250] sm:$0xff] }
  0x16   :  { %v56_v15 = vld [vmem:[%s4815_s0 + $0xd0] sm:$0xff]  ;;  %v57_v17 = vld [vmem:[%s4815_s0 + $0xd8] sm:$0xff]  ;;  %v1802_v18 = vld [vmem:[%s4815_s0 + $0x260] sm:$0xff] }
  0x17   :  { %v1803_v20 = vld [vmem:[%s4815_s0 + $0x268] sm:$0xff]  ;;  %v60_v23 = vld [vmem:[%s4815_s0 + $0xf0] sm:$0xff]  ;;  %v1805_v24 = vld [vmem:[%s4815_s0 + $0x278] sm:$0xff] }
  0x18   :  { %2916 = vmatpush3.bf16.msra.mxu0 %v3087_v19  ;;  %2940 = vmatpush3.bf16.msra.mxu1 %v3087_v19  ;;  %v59_v21 = vld [vmem:[%s4815_s0 + $0xe8] sm:$0xff] }
  0x19   :  { %2917 = vmatprep.subr.bf16.mxu0 %v2998_v0  ;;  %2941 = vmatprep.subr.bf16.mxu1 %v2998_v0 }
  0x1c   :  { %2919 = vmatpush3.bf16.msra.mxu0 %v3099_v22  ;;  %2943 = vmatpush3.bf16.msra.mxu1 %v3099_v22 }
  0x1d   :  { %2920 = vmatprep.subr.bf16.mxu0 %v2998_v0  ;;  %2944 = vmatprep.subr.bf16.mxu1 %v2998_v0 }
  0x20   :  { %2922 = vmatpush3.bf16.msra.mxu0 %v3111_v25  ;;  %2946 = vmatpush3.bf16.msra.mxu1 %v3111_v25 }
  0x21   :  { %2947 = vmatprep.subr.bf16.mxu0 %v2998_v0  ;;  %2971 = vmatprep.subr.bf16.mxu1 %v2998_v0 }
  0x23   :  { %2216 = vmatmul.mubr.f32.vlgmr.msra.gmra.mrb[0].mxu0 %v30_v26  ;;  %2395 = vmatmul.mubr.f32.vlgmr.msra.gmra.mrb[0].mxu1 %v1775_v27  ;;  %v1806_v26 = vld [vmem:[%s4815_s0 + $0x280] sm:$0xff] }
  0x24   :  { %2949 = vmatpush3.bf16.msra.mxu0 %v2900_v4  ;;  %2973 = vmatpush3.bf16.msra.mxu1 %v2900_v4  ;;  %v51_v4 = vld [vmem:[%s4815_s0 + $0xa8] sm:$0xff]  ;;  %v62_v27 = vld [vmem:[%s4815_s0 + $0x100] sm:$0xff] }
  0x25   :  { %2218 = vmatprep.mubr.msk.f32.mxu0 %vm2999_vm0, %v3000_v6  ;;  %2397 = vmatprep.mubr.msk.f32.mxu1 %vm2999_vm0, %v3000_v6 }
  0x26   :  { %2950 = vmatprep.subr.bf16.mxu0 %v2998_v0  ;;  %2974 = vmatprep.subr.bf16.mxu1 %v2998_v0 }
  0x27   :  { %2219 = vmatmul.mubr.f32.gmra.mrb[2].mxu0 %v31_v28  ;;  %2398 = vmatmul.mubr.f32.gmra.mrb[2].mxu1 %v1776_v29  ;;  %v1807_v28 = vld [vmem:[%s4815_s0 + $0x288] sm:$0xff] }
  0x28   :  { %2221 = vmatprep.mubr.msk.f32.mxu0 %vm2999_vm0, %v3000_v6  ;;  %2400 = vmatprep.mubr.msk.f32.mxu1 %vm2999_vm0, %v3000_v6  ;;  %v63_v29 = vld [vmem:[%s4815_s0 + $0x108] sm:$0xff] }
  0x29   :  { %2952 = vmatpush3.bf16.msra.mxu0 %v3039_v7  ;;  %2976 = vmatpush3.bf16.msra.mxu1 %v3039_v7  ;;  %v52_v7 = vld [vmem:[%s4815_s0 + $0xb0] sm:$0xff] }
  0x2a   :  { %2953 = vmatprep.subr.bf16.mxu0 %v2998_v0  ;;  %2977 = vmatprep.subr.bf16.mxu1 %v2998_v0 }
  0x2b   :  { %2222 = vmatmul.mubr.f32.gmra.mrb[4].mxu0 %v32_v30  ;;  %2401 = vmatmul.mubr.f32.gmra.mrb[4].mxu1 %v1777_v31  ;;  %v1808_v30 = vld [vmem:[%s4815_s0 + $0x290] sm:$0xff] }
  0x2c   :  { %2224 = vmatprep.mubr.msk.f32.mxu0 %vm2999_vm0, %v3000_v6  ;;  %2403 = vmatprep.mubr.msk.f32.mxu1 %vm2999_vm0, %v3000_v6  ;;  %v64_v31 = vld [vmem:[%s4815_s0 + $0x110] sm:$0xff] }
  0x2d   :  { %2955 = vmatpush3.bf16.msra.mxu0 %v3051_v10  ;;  %2979 = vmatpush3.bf16.msra.mxu1 %v3051_v10  ;;  %v1798_v10 = vld [vmem:[%s4815_s0 + $0x240] sm:$0xff] }
  0x2e   :  { %2956 = vmatprep.subr.bf16.mxu0 %v2998_v0  ;;  %2980 = vmatprep.subr.bf16.mxu1 %v2998_v0 }
  0x2f   :  { %2225 = vmatmul.mubr.f32.gmra.mrb[6].mxu0 %v33_v32  ;;  %2404 = vmatmul.mubr.f32.gmra.mrb[6].mxu1 %v1778_v33  ;;  %v1809_v32 = vld [vmem:[%s4815_s0 + $0x298] sm:$0xff] }
  0x30   :  { %2227 = vmatprep.mubr.msk.f32.mxu0 %vm2999_vm0, %v3000_v6  ;;  %2406 = vmatprep.mubr.msk.f32.mxu1 %vm2999_vm0, %v3000_v6  ;;  %v65_v33 = vld [vmem:[%s4815_s0 + $0x118] sm:$0xff] }
  0x31   :  { %2958 = vmatpush3.bf16.msra.mxu0 %v3063_v13  ;;  %2982 = vmatpush3.bf16.msra.mxu1 %v3063_v13  ;;  %v55_v13 = vld [vmem:[%s4815_s0 + $0xc8] sm:$0xff] }
  0x32   :  { %2959 = vmatprep.subr.bf16.mxu0 %v2998_v0  ;;  %2983 = vmatprep.subr.bf16.mxu1 %v2998_v0 }
  0x33   :  { %2228 = vmatmul.mubr.f32.gmra.mrb[8].mxu0 %v34_v34  ;;  %2407 = vmatmul.mubr.f32.gmra.mrb[8].mxu1 %v1779_v35  ;;  %v1810_v34 = vld [vmem:[%s4815_s0 + $0x2a0] sm:$0xff] }
  0x34   :  { %2230 = vmatprep.mubr.msk.f32.mxu0 %vm2999_vm0, %v3000_v6  ;;  %2409 = vmatprep.mubr.msk.f32.mxu1 %vm2999_vm0, %v3000_v6  ;;  %v66_v35 = vld [vmem:[%s4815_s0 + $0x120] sm:$0xff] }
  0x35   :  { %2961 = vmatpush3.bf16.msra.mxu0 %v3075_v16  ;;  %2985 = vmatpush3.bf16.msra.mxu1 %v3075_v16  ;;  %v1801_v16 = vld [vmem:[%s4815_s0 + $0x258] sm:$0xff] }
  0x36   :  { %2962 = vmatprep.subr.bf16.mxu0 %v2998_v0  ;;  %2986 = vmatprep.subr.bf16.mxu1 %v2998_v0 }
  0x37   :  { %2231 = vmatmul.mubr.f32.gmra.mrb[10].mxu0 %v35_v36  ;;  %2410 = vmatmul.mubr.f32.gmra.mrb[10].mxu1 %v1780_v37  ;;  %v1811_v36 = vld [vmem:[%s4815_s0 + $0x2a8] sm:$0xff] }
  0x38   :  { %2233 = vmatprep.mubr.msk.f32.mxu0 %vm2999_vm0, %v3000_v6  ;;  %2412 = vmatprep.mubr.msk.f32.mxu1 %vm2999_vm0, %v3000_v6  ;;  %v67_v37 = vld [vmem:[%s4815_s0 + $0x128] sm:$0xff] }
  0x39   :  { %2964 = vmatpush3.bf16.msra.mxu0 %v3087_v19  ;;  %2988 = vmatpush3.bf16.msra.mxu1 %v3087_v19  ;;  %v58_v19 = vld [vmem:[%s4815_s0 + $0xe0] sm:$0xff] }
  0x3a   :  { %2965 = vmatprep.subr.bf16.mxu0 %v2998_v0  ;;  %2989 = vmatprep.subr.bf16.mxu1 %v2998_v0 }
  0x3b   :  { %2234 = vmatmul.mubr.f32.gmra.mrb[12].mxu0 %v36_v38  ;;  %2413 = vmatmul.mubr.f32.gmra.mrb[12].mxu1 %v1781_v39  ;;  %v1812_v38 = vld [vmem:[%s4815_s0 + $0x2b0] sm:$0xff] }
  0x3c   :  { %2236 = vmatprep.mubr.msk.f32.mxu0 %vm2999_vm0, %v3000_v6  ;;  %2415 = vmatprep.mubr.msk.f32.mxu1 %vm2999_vm0, %v3000_v6  ;;  %v68_v39 = vld [vmem:[%s4815_s0 + $0x130] sm:$0xff] }
  0x3d   :  { %2967 = vmatpush3.bf16.msra.mxu0 %v3099_v22  ;;  %2991 = vmatpush3.bf16.msra.mxu1 %v3099_v22  ;;  %v1804_v22 = vld [vmem:[%s4815_s0 + $0x270] sm:$0xff] }
  0x3e   :  { %2968 = vmatprep.subr.bf16.mxu0 %v2998_v0  ;;  %2992 = vmatprep.subr.bf16.mxu1 %v2998_v0  ;;  %v49_v0 = vld [vmem:[%s4815_s0 + $0x98] sm:$0xff] }
  0x3f   :  { %2237 = vmatmul.mubr.f32.gmra.mrb[14].mxu0 %v37_v40  ;;  %2416 = vmatmul.mubr.f32.gmra.mrb[14].mxu1 %v1782_v41  ;;  %v1813_v40 = vld [vmem:[%s4815_s0 + $0x2b8] sm:$0xff] }
  0x40   :  { %2239 = vmatprep.mubr.msk.f32.mxu0 %vm2999_vm0, %v3000_v6  ;;  %2418 = vmatprep.mubr.msk.f32.mxu1 %vm2999_vm0, %v3000_v6  ;;  %v69_v41 = vld [vmem:[%s4815_s0 + $0x138] sm:$0xff] }
  0x41   :  { %2970 = vmatpush3.bf16.msra.mxu0 %v3111_v25  ;;  %2994 = vmatpush3.bf16.msra.mxu1 %v3111_v25  ;;  %v61_v25 = vld [vmem:[%s4815_s0 + $0xf8] sm:$0xff] }
  0x43   :  { %2240 = vmatmul.mubr.f32.gmra.mrb[16].mxu0 %v38_v42  ;;  %2419 = vmatmul.mubr.f32.gmra.mrb[16].mxu1 %v1783_v43  ;;  %v1814_v42 = vld [vmem:[%s4815_s0 + $0x2c0] sm:$0xff] }
  0x44   :  { %2242 = vmatprep.mubr.msk.f32.mxu0 %vm2999_vm0, %v3000_v6  ;;  %2421 = vmatprep.mubr.msk.f32.mxu1 %vm2999_vm0, %v3000_v6  ;;  %v70_v43 = vld [vmem:[%s4815_s0 + $0x140] sm:$0xff] }
  0x47   :  { %2243 = vmatmul.mubr.f32.gmra.mrb[18].mxu0 %v39_v44  ;;  %2422 = vmatmul.mubr.f32.gmra.mrb[18].mxu1 %v1784_v45  ;;  %v1815_v44 = vld [vmem:[%s4815_s0 + $0x2c8] sm:$0xff] }
  0x48   :  { %2245 = vmatprep.mubr.msk.f32.mxu0 %vm2999_vm0, %v3000_v6  ;;  %2424 = vmatprep.mubr.msk.f32.mxu1 %vm2999_vm0, %v3000_v6  ;;  %v71_v45 = vld [vmem:[%s4815_s0 + $0x148] sm:$0xff] }
  0x4b   :  { %2246 = vmatmul.mubr.f32.gmra.mrb[20].mxu0 %v40_v46  ;;  %2425 = vmatmul.mubr.f32.gmra.mrb[20].mxu1 %v1785_v47  ;;  %v1816_v46 = vld [vmem:[%s4815_s0 + $0x2d0] sm:$0xff] }
  0x4c   :  { %2248 = vmatprep.mubr.msk.f32.mxu0 %vm2999_vm0, %v3000_v6  ;;  %2427 = vmatprep.mubr.msk.f32.mxu1 %vm2999_vm0, %v3000_v6  ;;  %v72_v47 = vld [vmem:[%s4815_s0 + $0x150] sm:$0xff] }
  0x4f   :  { %2249 = vmatmul.mubr.f32.gmra.mrb[22].mxu0 %v41_v48  ;;  %2428 = vmatmul.mubr.f32.gmra.mrb[22].mxu1 %v1786_v49  ;;  %v1817_v48 = vld [vmem:[%s4815_s0 + $0x2d8] sm:$0xff] }
  0x50   :  { %2251 = vmatprep.mubr.msk.f32.mxu0 %vm2999_vm0, %v3000_v6  ;;  %2430 = vmatprep.mubr.msk.f32.mxu1 %vm2999_vm0, %v3000_v6  ;;  %v73_v49 = vld [vmem:[%s4815_s0 + $0x158] sm:$0xff] }
  0x53   :  { %2252 = vmatmul.mubr.f32.gmra.mrb[24].mxu0 %v42_v50  ;;  %2431 = vmatmul.mubr.f32.gmra.mrb[24].mxu1 %v1787_v51  ;;  %v1818_v50 = vld [vmem:[%s4815_s0 + $0x2e0] sm:$0xff] }
  0x54   :  { %2254 = vmatprep.mubr.msk.f32.mxu0 %vm2999_vm0, %v3000_v6  ;;  %2433 = vmatprep.mubr.msk.f32.mxu1 %vm2999_vm0, %v3000_v6  ;;  %v74_v51 = vld [vmem:[%s4815_s0 + $0x160] sm:$0xff] }
  0x57   :  { %2255 = vmatmul.mubr.f32.gmra.mrb[26].mxu0 %v43_v52  ;;  %2434 = vmatmul.mubr.f32.gmra.mrb[26].mxu1 %v1788_v53  ;;  %v1819_v52 = vld [vmem:[%s4815_s0 + $0x2e8] sm:$0xff] }
  0x58   :  { %2257 = vmatprep.mubr.msk.f32.mxu0 %vm2999_vm0, %v3000_v6  ;;  %2436 = vmatprep.mubr.msk.f32.mxu1 %vm2999_vm0, %v3000_v6  ;;  %v75_v53 = vld [vmem:[%s4815_s0 + $0x168] sm:$0xff] }
  0x5b   :  { %2258 = vmatmul.mubr.f32.gmra.mrb[28].mxu0 %v44_v54  ;;  %2437 = vmatmul.mubr.f32.gmra.mrb[28].mxu1 %v1789_v55  ;;  %v1820_v54 = vld [vmem:[%s4815_s0 + $0x2f0] sm:$0xff] }
  0x5c   :  { %2260 = vmatprep.mubr.msk.f32.mxu0 %vm2999_vm0, %v3000_v6  ;;  %2439 = vmatprep.mubr.msk.f32.mxu1 %vm2999_vm0, %v3000_v6  ;;  %v76_v55 = vld [vmem:[%s4815_s0 + $0x170] sm:$0xff] }
  0x5f   :  { %2261 = vmatmul.mubr.f32.gmra.mrb[30].mxu0 %v45_v56  ;;  %2440 = vmatmul.mubr.f32.gmra.mrb[30].mxu1 %v1790_v57  ;;  %v1821_v56 = vld [vmem:[%s4815_s0 + $0x2f8] sm:$0xff] }
  0x60   :  { %2263 = vmatprep.mubr.msk.f32.mxu0 %vm2999_vm0, %v3000_v6  ;;  %2442 = vmatprep.mubr.msk.f32.mxu1 %vm2999_vm0, %v3000_v6  ;;  %v77_v57 = vld [vmem:[%s4815_s0 + $0x178] sm:$0xff] }
  0x63   :  { %2264 = vmatmul.mubr.f32.gmra.mrb[32].mxu0 %v46_v58  ;;  %2443 = vmatmul.mubr.f32.gmra.mrb[32].mxu1 %v1791_v59  ;;  %v1822_v58 = vld [vmem:[%s4815_s0 + $0x300] sm:$0xff] }
  0x64   :  { %2266 = vmatprep.mubr.msk.f32.mxu0 %vm2999_vm0, %v3000_v6  ;;  %2445 = vmatprep.mubr.msk.f32.mxu1 %vm2999_vm0, %v3000_v6  ;;  %v78_v59 = vld [vmem:[%s4815_s0 + $0x180] sm:$0xff] }
  0x67   :  { %2267 = vmatmul.mubr.f32.gmra.mrb[34].mxu0 %v47_v60  ;;  %2446 = vmatmul.mubr.f32.gmra.mrb[34].mxu1 %v1792_v61  ;;  %v1823_v60 = vld [vmem:[%s4815_s0 + $0x308] sm:$0xff]  ;;  %v1824_v61 = vld [vmem:[%s4815_s0 + $0x310] sm:$0xff] }
  0x68   :  { %2269 = vmatprep.mubr.msk.f32.mxu0 %vm2999_vm0, %v3000_v6  ;;  %2448 = vmatprep.mubr.msk.f32.mxu1 %vm2999_vm0, %v3000_v6 }
  0x6b   :  { %2270 = vmatmul.mubr.f32.gmra.mrb[36].mxu0 %v48_v62  ;;  %2449 = vmatmul.mubr.f32.gmra.mrb[36].mxu1 %v1793_v63  ;;  %v1873_v62 = vld [vmem:[%s4815_s0 + $0x498] sm:$0xff] }
  0x6c   :  { %2272 = vmatprep.mubr.msk.f32.mxu0 %vm2999_vm0, %v3000_v6  ;;  %2451 = vmatprep.mubr.msk.f32.mxu1 %vm2999_vm0, %v3000_v6  ;;  %v1825_v63 = vld [vmem:[%s4815_s0 + $0x318] sm:$0xff] }
  0x6f   :  { %2273 = vmatmul.mubr.f32.gmra.mrb[38].mxu0 %v49_v0  ;;  %2452 = vmatmul.mubr.f32.gmra.mrb[38].mxu1 %v1794_v1  ;;  %v1874_v0 = vld [vmem:[%s4815_s0 + $0x4a0] sm:$0xff] }
  0x70   :  { %2275 = vmatprep.mubr.msk.f32.mxu0 %vm2999_vm0, %v3000_v6  ;;  %2454 = vmatprep.mubr.msk.f32.mxu1 %vm2999_vm0, %v3000_v6  ;;  %v1826_v1 = vld [vmem:[%s4815_s0 + $0x320] sm:$0xff] }
  0x73   :  { %2276 = vmatmul.mubr.f32.gmra.mrb[40].mxu0 %v50_v2  ;;  %2455 = vmatmul.mubr.f32.gmra.mrb[40].mxu1 %v1795_v3  ;;  %v1875_v2 = vld [vmem:[%s4815_s0 + $0x4a8] sm:$0xff] }
  0x74   :  { %2278 = vmatprep.mubr.msk.f32.mxu0 %vm2999_vm0, %v3000_v6  ;;  %2457 = vmatprep.mubr.msk.f32.mxu1 %vm2999_vm0, %v3000_v6  ;;  %v1827_v3 = vld [vmem:[%s4815_s0 + $0x328] sm:$0xff] }
  0x77   :  { %2279 = vmatmul.mubr.f32.gmra.mrb[42].mxu0 %v51_v4  ;;  %2458 = vmatmul.mubr.f32.gmra.mrb[42].mxu1 %v1796_v5  ;;  %v1876_v4 = vld [vmem:[%s4815_s0 + $0x4b0] sm:$0xff] }
  0x78   :  { %2281 = vmatprep.mubr.msk.f32.mxu0 %vm2999_vm0, %v3000_v6  ;;  %2460 = vmatprep.mubr.msk.f32.mxu1 %vm2999_vm0, %v3000_v6  ;;  %v1828_v5 = vld [vmem:[%s4815_s0 + $0x330] sm:$0xff] }
  0x7b   :  { %2282 = vmatmul.mubr.f32.gmra.mrb[44].mxu0 %v52_v7  ;;  %2461 = vmatmul.mubr.f32.gmra.mrb[44].mxu1 %v1797_v8  ;;  %v1877_v7 = vld [vmem:[%s4815_s0 + $0x4b8] sm:$0xff] }
  0x7c   :  { %2284 = vmatprep.mubr.msk.f32.mxu0 %vm2999_vm0, %v3000_v6  ;;  %2463 = vmatprep.mubr.msk.f32.mxu1 %vm2999_vm0, %v3000_v6 }
  0x7f   :  { %2285 = vmatmul.mubr.f32.gmra.mrb[46].mxu0 %v53_v9  ;;  %2464 = vmatmul.mubr.f32.gmra.mrb[46].mxu1 %v1798_v10  ;;  %v1905_v10 = vld [vmem:[%s4815_s0 + $0x598] sm:$0xff] }
  0x80   :  { %2287 = vmatprep.mubr.msk.f32.mxu0 %vm2999_vm0, %v3000_v6  ;;  %2466 = vmatprep.mubr.msk.f32.mxu1 %vm2999_vm0, %v3000_v6 }
  0x83   :  { %2288 = vmatmul.mubr.f32.gmra.mrb[48].mxu0 %v54_v11  ;;  %2467 = vmatmul.mubr.f32.gmra.mrb[48].mxu1 %v1799_v12 }
  0x84   :  { %2290 = vmatprep.mubr.msk.f32.mxu0 %vm2999_vm0, %v3000_v6  ;;  %2469 = vmatprep.mubr.msk.f32.mxu1 %vm2999_vm0, %v3000_v6 }
  0x87   :  { %2291 = vmatmul.mubr.f32.gmra.mrb[50].mxu0 %v55_v13  ;;  %2470 = vmatmul.mubr.f32.gmra.mrb[50].mxu1 %v1800_v14  ;;  %v1829_v13 = vld [vmem:[%s4815_s0 + $0x338] sm:$0xff]  ;;  %v1878_v14 = vld [vmem:[%s4815_s0 + $0x4c0] sm:$0xff] }
  0x88   :  { %2293 = vmatprep.mubr.msk.f32.mxu0 %vm2999_vm0, %v3000_v6  ;;  %2472 = vmatprep.mubr.msk.f32.mxu1 %vm2999_vm0, %v3000_v6 }
  0x8b   :  { %2294 = vmatmul.mubr.f32.gmra.mrb[52].mxu0 %v56_v15  ;;  %2473 = vmatmul.mubr.f32.gmra.mrb[52].mxu1 %v1801_v16 }
  0x8c   :  { %2296 = vmatprep.mubr.msk.f32.mxu0 %vm2999_vm0, %v3000_v6  ;;  %2475 = vmatprep.mubr.msk.f32.mxu1 %vm2999_vm0, %v3000_v6 }
  0x8f   :  { %2297 = vmatmul.mubr.f32.gmra.mrb[54].mxu0 %v57_v17  ;;  %2476 = vmatmul.mubr.f32.gmra.mrb[54].mxu1 %v1802_v18 }
  0x90   :  { %2299 = vmatprep.mubr.msk.f32.mxu0 %vm2999_vm0, %v3000_v6  ;;  %2478 = vmatprep.mubr.msk.f32.mxu1 %vm2999_vm0, %v3000_v6 }
  0x93   :  { %2300 = vmatmul.mubr.f32.gmra.mrb[56].mxu0 %v58_v19  ;;  %2479 = vmatmul.mubr.f32.gmra.mrb[56].mxu1 %v1803_v20  ;;  %v1830_v20 = vld [vmem:[%s4815_s0 + $0x340] sm:$0xff] }
  0x94   :  { %2302 = vmatprep.mubr.msk.f32.mxu0 %vm2999_vm0, %v3000_v6  ;;  %2481 = vmatprep.mubr.msk.f32.mxu1 %vm2999_vm0, %v3000_v6 }
  0x97   :  { %2303 = vmatmul.mubr.f32.gmra.mrb[58].mxu0 %v59_v21  ;;  %2482 = vmatmul.mubr.f32.gmra.mrb[58].mxu1 %v1804_v22  ;;  %v1879_v21 = vld [vmem:[%s4815_s0 + $0x4c8] sm:$0xff] }
  0x98   :  { %2305 = vmatprep.mubr.msk.f32.mxu0 %vm2999_vm0, %v3000_v6  ;;  %2484 = vmatprep.mubr.msk.f32.mxu1 %vm2999_vm0, %v3000_v6 }
  0x9b   :  { %2306 = vmatmul.mubr.f32.gmra.mrb[60].mxu0 %v60_v23  ;;  %2485 = vmatmul.mubr.f32.gmra.mrb[60].mxu1 %v1805_v24  ;;  %v1904_v24 = vld [vmem:[%s4815_s0 + $0x590] sm:$0xff] }
  0x9c   :  { %2308 = vmatprep.mubr.msk.f32.mxu0 %vm2999_vm0, %v3000_v6  ;;  %2487 = vmatprep.mubr.msk.f32.mxu1 %vm2999_vm0, %v3000_v6 }
  0x9f   :  { %2309 = vmatmul.mubr.f32.gmra.mrb[62].mxu0 %v61_v25  ;;  %2488 = vmatmul.mubr.f32.gmra.mrb[62].mxu1 %v1806_v26 }
  0xa0   :  { %2311 = vmatprep.mubr.msk.f32.mxu0 %vm2999_vm0, %v3000_v6  ;;  %2490 = vmatprep.mubr.msk.f32.mxu1 %vm2999_vm0, %v3000_v6 }
  0xa3   :  { %2312 = vmatmul.mubr.f32.gmra.mrb[64].mxu0 %v62_v27  ;;  %2491 = vmatmul.mubr.f32.gmra.mrb[64].mxu1 %v1807_v28  ;;  %v1831_v27 = vld [vmem:[%s4815_s0 + $0x348] sm:$0xff]  ;;  %v1880_v28 = vld [vmem:[%s4815_s0 + $0x4d0] sm:$0xff] }
  0xa4   :  { %2314 = vmatprep.mubr.msk.f32.mxu0 %vm2999_vm0, %v3000_v6  ;;  %2493 = vmatprep.mubr.msk.f32.mxu1 %vm2999_vm0, %v3000_v6 }
  0xa7   :  { %2315 = vmatmul.mubr.f32.gmra.mrb[66].mxu0 %v63_v29  ;;  %2494 = vmatmul.mubr.f32.gmra.mrb[66].mxu1 %v1808_v30 }
  0xa8   :  { %2317 = vmatprep.mubr.msk.f32.mxu0 %vm2999_vm0, %v3000_v6  ;;  %2496 = vmatprep.mubr.msk.f32.mxu1 %vm2999_vm0, %v3000_v6 }
  0xab   :  { %2318 = vmatmul.mubr.f32.gmra.mrb[68].mxu0 %v64_v31  ;;  %2497 = vmatmul.mubr.f32.gmra.mrb[68].mxu1 %v1809_v32 }
  0xac   :  { %2320 = vmatprep.mubr.msk.f32.mxu0 %vm2999_vm0, %v3000_v6  ;;  %2499 = vmatprep.mubr.msk.f32.mxu1 %vm2999_vm0, %v3000_v6 }
  0xaf   :  { %2321 = vmatmul.mubr.f32.gmra.mrb[70].mxu0 %v65_v33  ;;  %2500 = vmatmul.mubr.f32.gmra.mrb[70].mxu1 %v1810_v34  ;;  %v1832_v34 = vld [vmem:[%s4815_s0 + $0x350] sm:$0xff] }
  0xb0   :  { %2323 = vmatprep.mubr.msk.f32.mxu0 %vm2999_vm0, %v3000_v6  ;;  %2502 = vmatprep.mubr.msk.f32.mxu1 %vm2999_vm0, %v3000_v6 }
  0xb3   :  { %2324 = vmatmul.mubr.f32.gmra.mrb[72].mxu0 %v66_v35  ;;  %2503 = vmatmul.mubr.f32.gmra.mrb[72].mxu1 %v1811_v36  ;;  %v1881_v35 = vld [vmem:[%s4815_s0 + $0x4d8] sm:$0xff] }
  0xb4   :  { %2326 = vmatprep.mubr.msk.f32.mxu0 %vm2999_vm0, %v3000_v6  ;;  %2505 = vmatprep.mubr.msk.f32.mxu1 %vm2999_vm0, %v3000_v6 }
  0xb7   :  { %2327 = vmatmul.mubr.f32.gmra.mrb[74].mxu0 %v67_v37  ;;  %2506 = vmatmul.mubr.f32.gmra.mrb[74].mxu1 %v1812_v38  ;;  %v1903_v38 = vld [vmem:[%s4815_s0 + $0x588] sm:$0xff] }
  0xb8   :  { %2329 = vmatprep.mubr.msk.f32.mxu0 %vm2999_vm0, %v3000_v6  ;;  %2508 = vmatprep.mubr.msk.f32.mxu1 %vm2999_vm0, %v3000_v6 }
  0xbb   :  { %2330 = vmatmul.mubr.f32.gmra.mrb[76].mxu0 %v68_v39  ;;  %2509 = vmatmul.mubr.f32.gmra.mrb[76].mxu1 %v1813_v40 }
  0xbc   :  { %2332 = vmatprep.mubr.msk.f32.mxu0 %vm2999_vm0, %v3000_v6  ;;  %2511 = vmatprep.mubr.msk.f32.mxu1 %vm2999_vm0, %v3000_v6 }
  0xbf   :  { %2333 = vmatmul.mubr.f32.gmra.mrb[78].mxu0 %v69_v41  ;;  %2512 = vmatmul.mubr.f32.gmra.mrb[78].mxu1 %v1814_v42  ;;  %v1833_v41 = vld [vmem:[%s4815_s0 + $0x358] sm:$0xff]  ;;  %v1882_v42 = vld [vmem:[%s4815_s0 + $0x4e0] sm:$0xff] }
  0xc0   :  { %2335 = vmatprep.mubr.msk.f32.mxu0 %vm2999_vm0, %v3000_v6  ;;  %2514 = vmatprep.mubr.msk.f32.mxu1 %vm2999_vm0, %v3000_v6 }
  0xc3   :  { %2336 = vmatmul.mubr.f32.gmra.mrb[80].mxu0 %v70_v43  ;;  %2515 = vmatmul.mubr.f32.gmra.mrb[80].mxu1 %v1815_v44 }
  0xc4   :  { %2338 = vmatprep.mubr.msk.f32.mxu0 %vm2999_vm0, %v3000_v6  ;;  %2517 = vmatprep.mubr.msk.f32.mxu1 %vm2999_vm0, %v3000_v6 }
  0xc7   :  { %2339 = vmatmul.mubr.f32.gmra.mrb[82].mxu0 %v71_v45  ;;  %2518 = vmatmul.mubr.f32.gmra.mrb[82].mxu1 %v1816_v46 }
  0xc8   :  { %2341 = vmatprep.mubr.msk.f32.mxu0 %vm2999_vm0, %v3000_v6  ;;  %2520 = vmatprep.mubr.msk.f32.mxu1 %vm2999_vm0, %v3000_v6 }
  0xcb   :  { %2342 = vmatmul.mubr.f32.gmra.mrb[84].mxu0 %v72_v47  ;;  %2521 = vmatmul.mubr.f32.gmra.mrb[84].mxu1 %v1817_v48  ;;  %v1834_v48 = vld [vmem:[%s4815_s0 + $0x360] sm:$0xff] }
  0xcc   :  { %2344 = vmatprep.mubr.msk.f32.mxu0 %vm2999_vm0, %v3000_v6  ;;  %2523 = vmatprep.mubr.msk.f32.mxu1 %vm2999_vm0, %v3000_v6 }
  0xcf   :  { %2345 = vmatmul.mubr.f32.gmra.mrb[86].mxu0 %v73_v49  ;;  %2524 = vmatmul.mubr.f32.gmra.mrb[86].mxu1 %v1818_v50  ;;  %v1883_v49 = vld [vmem:[%s4815_s0 + $0x4e8] sm:$0xff] }
  0xd0   :  { %2347 = vmatprep.mubr.msk.f32.mxu0 %vm2999_vm0, %v3000_v6  ;;  %2526 = vmatprep.mubr.msk.f32.mxu1 %vm2999_vm0, %v3000_v6 }
  0xd3   :  { %2348 = vmatmul.mubr.f32.gmra.mrb[88].mxu0 %v74_v51  ;;  %2527 = vmatmul.mubr.f32.gmra.mrb[88].mxu1 %v1819_v52  ;;  %v1902_v52 = vld [vmem:[%s4815_s0 + $0x580] sm:$0xff] }
  0xd4   :  { %2350 = vmatprep.mubr.msk.f32.mxu0 %vm2999_vm0, %v3000_v6  ;;  %2529 = vmatprep.mubr.msk.f32.mxu1 %vm2999_vm0, %v3000_v6 }
  0xd7   :  { %2351 = vmatmul.mubr.f32.gmra.mrb[90].mxu0 %v75_v53  ;;  %2530 = vmatmul.mubr.f32.gmra.mrb[90].mxu1 %v1820_v54 }
  0xd8   :  { %2353 = vmatprep.mubr.msk.f32.mxu0 %vm2999_vm0, %v3000_v6  ;;  %2532 = vmatprep.mubr.msk.f32.mxu1 %vm2999_vm0, %v3000_v6 }
  0xdb   :  { %2354 = vmatmul.mubr.f32.gmra.mrb[92].mxu0 %v76_v55  ;;  %2533 = vmatmul.mubr.f32.gmra.mrb[92].mxu1 %v1821_v56  ;;  %v1835_v55 = vld [vmem:[%s4815_s0 + $0x368] sm:$0xff]  ;;  %v1884_v56 = vld [vmem:[%s4815_s0 + $0x4f0] sm:$0xff] }
  0xdc   :  { %2356 = vmatprep.mubr.msk.f32.mxu0 %vm2999_vm0, %v3000_v6  ;;  %2535 = vmatprep.mubr.msk.f32.mxu1 %vm2999_vm0, %v3000_v6 }
  0xdf   :  { %2357 = vmatmul.mubr.f32.gmra.mrb[94].mxu0 %v77_v57  ;;  %2536 = vmatmul.mubr.f32.gmra.mrb[94].mxu1 %v1822_v58 }
  0xe0   :  { %2359 = vmatprep.mubr.msk.f32.mxu0 %vm2999_vm0, %v3000_v6  ;;  %2538 = vmatprep.mubr.msk.f32.mxu1 %vm2999_vm0, %v3000_v6 }
  0xe3   :  { %2360 = vmatmul.mubr.f32.gmra.mrb[96].mxu0 %v78_v59  ;;  %2539 = vmatmul.mubr.f32.gmra.mrb[96].mxu1 %v1823_v60 }
  0xe4   :  { %2573 = vmatprep.mubr.msk.f32.mxu0 %vm2999_vm0, %v3000_v6  ;;  %2752 = vmatprep.mubr.msk.f32.mxu1 %vm2999_vm0, %v3000_v6 }
  0xe7   :  { %2574 = vmatmul.mubr.f32.vlgmr.msra.gmra.mrb[98].mxu0 %v1824_v61  ;;  %2753 = vmatmul.mubr.f32.vlgmr.msra.gmra.mrb[98].mxu1 %v1873_v62  ;;  %v1836_v62 = vld [vmem:[%s4815_s0 + $0x370] sm:$0xff] }
  0xe8   :  { %2576 = vmatprep.mubr.msk.f32.mxu0 %vm2999_vm0, %v3000_v6  ;;  %2755 = vmatprep.mubr.msk.f32.mxu1 %vm2999_vm0, %v3000_v6 }
  0xeb   :  { %2577 = vmatmul.mubr.f32.gmra.mrb[100].mxu0 %v1825_v63  ;;  %2756 = vmatmul.mubr.f32.gmra.mrb[100].mxu1 %v1874_v0  ;;  %v1885_v63 = vld [vmem:[%s4815_s0 + $0x4f8] sm:$0xff] }
  0xec   :  { %2579 = vmatprep.mubr.msk.f32.mxu0 %vm2999_vm0, %v3000_v6  ;;  %2758 = vmatprep.mubr.msk.f32.mxu1 %vm2999_vm0, %v3000_v6 }
  0xef   :  { %2580 = vmatmul.mubr.f32.gmra.mrb[102].mxu0 %v1826_v1  ;;  %2759 = vmatmul.mubr.f32.gmra.mrb[102].mxu1 %v1875_v2  ;;  %v1901_v2 = vld [vmem:[%s4815_s0 + $0x578] sm:$0xff] }
  0xf0   :  { %2582 = vmatprep.mubr.msk.f32.mxu0 %vm2999_vm0, %v3000_v6  ;;  %2761 = vmatprep.mubr.msk.f32.mxu1 %vm2999_vm0, %v3000_v6 }
  0xf3   :  { %2583 = vmatmul.mubr.f32.gmra.mrb[104].mxu0 %v1827_v3  ;;  %2762 = vmatmul.mubr.f32.gmra.mrb[104].mxu1 %v1876_v4 }
  0xf4   :  { %2585 = vmatprep.mubr.msk.f32.mxu0 %vm2999_vm0, %v3000_v6  ;;  %2764 = vmatprep.mubr.msk.f32.mxu1 %vm2999_vm0, %v3000_v6 }
  0xf6   :  { %v3683_v8 = vpop.f32.mrb[0].mxu0  ;;  %v3685_v9 = vpop.f32.mrb[0].mxu1 }
  0xf7   :  { %v2217_v11 = vpop.f32.mrb[1].mxu0  ;;  %v2396_v12 = vpop.f32.mrb[1].mxu1  ;;  %2586 = vmatmul.mubr.f32.gmra.mrb[106].mxu0 %v1828_v5  ;;  %2765 = vmatmul.mubr.f32.gmra.mrb[106].mxu1 %v1877_v7  ;;  %v1837_v5 = vld [vmem:[%s4815_s0 + $0x378] sm:$0xff]  ;;  %v1886_v7 = vld [vmem:[%s4815_s0 + $0x500] sm:$0xff] }
  0xf8   :  { %2588 = vmatprep.mubr.msk.f32.mxu0 %vm2999_vm0, %v3000_v6  ;;  %2767 = vmatprep.mubr.msk.f32.mxu1 %vm2999_vm0, %v3000_v6 }
  0xfa   :  { %v3699_v15 = vpop.f32.mrb[2].mxu0  ;;  %v3701_v16 = vpop.f32.mrb[2].mxu1 }
  0xfb   :  { %v2220_v18 = vpop.f32.mrb[3].mxu0  ;;  %v2399_v19 = vpop.f32.mrb[3].mxu1  ;;  %2589 = vmatmul.mubr.f32.gmra.mrb[108].mxu0 %v1829_v13  ;;  %2768 = vmatmul.mubr.f32.gmra.mrb[108].mxu1 %v1878_v14 }
  0xfc   :  { %2591 = vmatprep.mubr.msk.f32.mxu0 %vm2999_vm0, %v3000_v6  ;;  %2770 = vmatprep.mubr.msk.f32.mxu1 %vm2999_vm0, %v3000_v6  ;;  %v1838_v19 = vld [vmem:[%s4815_s0 + $0x380] sm:$0xff] }
  0xfe   :  { %v3715_v22 = vpop.f32.mrb[4].mxu0  ;;  %v3717_v23 = vpop.f32.mrb[4].mxu1 }
  0xff   :  { %v2223_v25 = vpop.f32.mrb[5].mxu0  ;;  %v2402_v26 = vpop.f32.mrb[5].mxu1  ;;  %2592 = vmatmul.mubr.f32.gmra.mrb[110].mxu0 %v1830_v20  ;;  %2771 = vmatmul.mubr.f32.gmra.mrb[110].mxu1 %v1879_v21  ;;  %v1887_v20 = vld [vmem:[%s4815_s0 + $0x508] sm:$0xff] }
 0x100   :  { %2594 = vmatprep.mubr.msk.f32.mxu0 %vm2999_vm0, %v3000_v6  ;;  %2773 = vmatprep.mubr.msk.f32.mxu1 %vm2999_vm0, %v3000_v6  ;;  %v1900_v26 = vld [vmem:[%s4815_s0 + $0x570] sm:$0xff] }
 0x102   :  { %v3731_v29 = vpop.f32.mrb[6].mxu0  ;;  %v3733_v30 = vpop.f32.mrb[6].mxu1 }
 0x103   :  { %v2226_v32 = vpop.f32.mrb[7].mxu0  ;;  %v2405_v33 = vpop.f32.mrb[7].mxu1  ;;  %2595 = vmatmul.mubr.f32.gmra.mrb[112].mxu0 %v1831_v27  ;;  %2774 = vmatmul.mubr.f32.gmra.mrb[112].mxu1 %v1880_v28 }
 0x104   :  { %2597 = vmatprep.mubr.msk.f32.mxu0 %vm2999_vm0, %v3000_v6  ;;  %2776 = vmatprep.mubr.msk.f32.mxu1 %vm2999_vm0, %v3000_v6  ;;  %v1839_v32 = vld [vmem:[%s4815_s0 + $0x388] sm:$0xff]  ;;  %v1888_v33 = vld [vmem:[%s4815_s0 + $0x510] sm:$0xff] }
 0x106   :  { %v3747_v36 = vpop.f32.mrb[8].mxu0  ;;  %v3749_v37 = vpop.f32.mrb[8].mxu1 }
 0x107   :  { %v2229_v39 = vpop.f32.mrb[9].mxu0  ;;  %v2408_v40 = vpop.f32.mrb[9].mxu1  ;;  %2598 = vmatmul.mubr.f32.gmra.mrb[114].mxu0 %v1832_v34  ;;  %2777 = vmatmul.mubr.f32.gmra.mrb[114].mxu1 %v1881_v35 }
 0x108   :  { %2600 = vmatprep.mubr.msk.f32.mxu0 %vm2999_vm0, %v3000_v6  ;;  %2779 = vmatprep.mubr.msk.f32.mxu1 %vm2999_vm0, %v3000_v6 }
 0x10a   :  { %v3763_v43 = vpop.f32.mrb[10].mxu0  ;;  %v3765_v44 = vpop.f32.mrb[10].mxu1 }
 0x10b   :  { %v2232_v46 = vpop.f32.mrb[11].mxu0  ;;  %v2411_v47 = vpop.f32.mrb[11].mxu1  ;;  %2601 = vmatmul.mubr.f32.gmra.mrb[116].mxu0 %v1833_v41  ;;  %2780 = vmatmul.mubr.f32.gmra.mrb[116].mxu1 %v1882_v42  ;;  %v1840_v42 = vld [vmem:[%s4815_s0 + $0x390] sm:$0xff] }
 0x10c   :  { %2603 = vmatprep.mubr.msk.f32.mxu0 %vm2999_vm0, %v3000_v6  ;;  %2782 = vmatprep.mubr.msk.f32.mxu1 %vm2999_vm0, %v3000_v6  ;;  %v1889_v46 = vld [vmem:[%s4815_s0 + $0x518] sm:$0xff] }
 0x10e   :  { %v3779_v50 = vpop.f32.mrb[12].mxu0  ;;  %v3781_v51 = vpop.f32.mrb[12].mxu1 }
 0x10f   :  { %v2235_v53 = vpop.f32.mrb[13].mxu0  ;;  %v2414_v54 = vpop.f32.mrb[13].mxu1  ;;  %2604 = vmatmul.mubr.f32.gmra.mrb[118].mxu0 %v1834_v48  ;;  %2783 = vmatmul.mubr.f32.gmra.mrb[118].mxu1 %v1883_v49  ;;  %v1899_v49 = vld [vmem:[%s4815_s0 + $0x568] sm:$0xff] }
 0x110   :  { %2606 = vmatprep.mubr.msk.f32.mxu0 %vm2999_vm0, %v3000_v6  ;;  %2785 = vmatprep.mubr.msk.f32.mxu1 %vm2999_vm0, %v3000_v6 }
 0x112   :  { %v3795_v57 = vpop.f32.mrb[14].mxu0  ;;  %v3797_v58 = vpop.f32.mrb[14].mxu1 }
 0x113   :  { %v2238_v60 = vpop.f32.mrb[15].mxu0  ;;  %v2417_v61 = vpop.f32.mrb[15].mxu1  ;;  %2607 = vmatmul.mubr.f32.gmra.mrb[120].mxu0 %v1835_v55  ;;  %2786 = vmatmul.mubr.f32.gmra.mrb[120].mxu1 %v1884_v56  ;;  %v1841_v55 = vld [vmem:[%s4815_s0 + $0x398] sm:$0xff]  ;;  %v1890_v56 = vld [vmem:[%s4815_s0 + $0x520] sm:$0xff] }
 0x114   :  { %2609 = vmatprep.mubr.msk.f32.mxu0 %vm2999_vm0, %v3000_v6  ;;  %2788 = vmatprep.mubr.msk.f32.mxu1 %vm2999_vm0, %v3000_v6 }
 0x116   :  { %v3811_v0 = vpop.f32.mrb[16].mxu0  ;;  %v3813_v1 = vpop.f32.mrb[16].mxu1 }
 0x117   :  { %v2241_v3 = vpop.f32.mrb[17].mxu0  ;;  %v2420_v4 = vpop.f32.mrb[17].mxu1  ;;  %2610 = vmatmul.mubr.f32.gmra.mrb[122].mxu0 %v1836_v62  ;;  %2789 = vmatmul.mubr.f32.gmra.mrb[122].mxu1 %v1885_v63 }
 0x118   :  { %2612 = vmatprep.mubr.msk.f32.mxu0 %vm2999_vm0, %v3000_v6  ;;  %2791 = vmatprep.mubr.msk.f32.mxu1 %vm2999_vm0, %v3000_v6  ;;  %v1842_v4 = vld [vmem:[%s4815_s0 + $0x3a0] sm:$0xff] }
 0x11a   :  { %v3827_v11 = vpop.f32.mrb[18].mxu0  ;;  %v3829_v12 = vpop.f32.mrb[18].mxu1 }
 0x11b   :  { %v2244_v14 = vpop.f32.mrb[19].mxu0  ;;  %v2423_v18 = vpop.f32.mrb[19].mxu1  ;;  %2613 = vmatmul.mubr.f32.gmra.mrb[124].mxu0 %v1837_v5  ;;  %2792 = vmatmul.mubr.f32.gmra.mrb[124].mxu1 %v1886_v7  ;;  %v1891_v5 = vld [vmem:[%s4815_s0 + $0x528] sm:$0xff] }
 0x11c   :  { %2615 = vmatprep.mubr.msk.f32.mxu0 %vm2999_vm0, %v3000_v6  ;;  %2794 = vmatprep.mubr.msk.f32.mxu1 %vm2999_vm0, %v3000_v6  ;;  %v1898_v18 = vld [vmem:[%s4815_s0 + $0x560] sm:$0xff] }
 0x11e   :  { %v3843_v21 = vpop.f32.mrb[20].mxu0  ;;  %v3845_v25 = vpop.f32.mrb[20].mxu1 }
 0x11f   :  { %v2247_v27 = vpop.f32.mrb[21].mxu0  ;;  %v2426_v28 = vpop.f32.mrb[21].mxu1  ;;  %2616 = vmatmul.mubr.f32.gmra.mrb[126].mxu0 %v1838_v19  ;;  %2795 = vmatmul.mubr.f32.gmra.mrb[126].mxu1 %v1887_v20 }
 0x120   :  { %2618 = vmatprep.mubr.msk.f32.mxu0 %vm2999_vm0, %v3000_v6  ;;  %2797 = vmatprep.mubr.msk.f32.mxu1 %vm2999_vm0, %v3000_v6  ;;  %v1843_v27 = vld [vmem:[%s4815_s0 + $0x3a8] sm:$0xff]  ;;  %v1892_v28 = vld [vmem:[%s4815_s0 + $0x530] sm:$0xff] }
 0x122   :  { %v3859_v34 = vpop.f32.mrb[22].mxu0  ;;  %v3861_v35 = vpop.f32.mrb[22].mxu1 }
 0x123   :  { %v2250_v40 = vpop.f32.mrb[23].mxu0  ;;  %v2429_v41 = vpop.f32.mrb[23].mxu1  ;;  %2619 = vmatmul.mubr.f32.gmra.mrb[128].mxu0 %v1839_v32  ;;  %2798 = vmatmul.mubr.f32.gmra.mrb[128].mxu1 %v1888_v33 }
 0x124   :  { %2621 = vmatprep.mubr.msk.f32.mxu0 %vm2999_vm0, %v3000_v6  ;;  %2800 = vmatprep.mubr.msk.f32.mxu1 %vm2999_vm0, %v3000_v6 }
 0x126   :  { %v3875_v47 = vpop.f32.mrb[24].mxu0  ;;  %v3877_v48 = vpop.f32.mrb[24].mxu1 }
 0x127   :  { %v2253_v53 = vpop.f32.mrb[25].mxu0  ;;  %v2432_v54 = vpop.f32.mrb[25].mxu1  ;;  %2622 = vmatmul.mubr.f32.gmra.mrb[130].mxu0 %v1840_v42  ;;  %2801 = vmatmul.mubr.f32.gmra.mrb[130].mxu1 %v1889_v46  ;;  %v1844_v46 = vld [vmem:[%s4815_s0 + $0x3b0] sm:$0xff] }
 0x128   :  { %2624 = vmatprep.mubr.msk.f32.mxu0 %vm2999_vm0, %v3000_v6  ;;  %2803 = vmatprep.mubr.msk.f32.mxu1 %vm2999_vm0, %v3000_v6  ;;  %v1893_v53 = vld [vmem:[%s4815_s0 + $0x538] sm:$0xff] }
 0x12a   :  { %v3891_v60 = vpop.f32.mrb[26].mxu0  ;;  %v3893_v61 = vpop.f32.mrb[26].mxu1 }
 0x12b   :  { %v2256_v63 = vpop.f32.mrb[27].mxu0  ;;  %v2435_v3 = vpop.f32.mrb[27].mxu1  ;;  %2625 = vmatmul.mubr.f32.gmra.mrb[132].mxu0 %v1841_v55  ;;  %2804 = vmatmul.mubr.f32.gmra.mrb[132].mxu1 %v1890_v56  ;;  %v1897_v56 = vld [vmem:[%s4815_s0 + $0x558] sm:$0xff] }
 0x12c   :  { %2627 = vmatprep.mubr.msk.f32.mxu0 %vm2999_vm0, %v3000_v6  ;;  %2806 = vmatprep.mubr.msk.f32.mxu1 %vm2999_vm0, %v3000_v6 }
 0x12e   :  { %v3907_v7 = vpop.f32.mrb[28].mxu0  ;;  %v3909_v14 = vpop.f32.mrb[28].mxu1 }
 0x12f   :  { %v2259_v19 = vpop.f32.mrb[29].mxu0  ;;  %v2438_v20 = vpop.f32.mrb[29].mxu1  ;;  %2628 = vmatmul.mubr.f32.gmra.mrb[134].mxu0 %v1842_v4  ;;  %2807 = vmatmul.mubr.f32.gmra.mrb[134].mxu1 %v1891_v5  ;;  %v1845_v4 = vld [vmem:[%s4815_s0 + $0x3b8] sm:$0xff]  ;;  %v1894_v5 = vld [vmem:[%s4815_s0 + $0x540] sm:$0xff] }
 0x130   :  { %2630 = vmatprep.mubr.msk.f32.mxu0 %vm2999_vm0, %v3000_v6  ;;  %2809 = vmatprep.mubr.msk.f32.mxu1 %vm2999_vm0, %v3000_v6 }
 0x132   :  { %v3923_v32 = vpop.f32.mrb[30].mxu0  ;;  %v3925_v33 = vpop.f32.mrb[30].mxu1 }
 0x133   :  { %v2262_v41 = vpop.f32.mrb[31].mxu0  ;;  %v2441_v42 = vpop.f32.mrb[31].mxu1  ;;  %2631 = vmatmul.mubr.f32.gmra.mrb[136].mxu0 %v1843_v27  ;;  %2810 = vmatmul.mubr.f32.gmra.mrb[136].mxu1 %v1892_v28 }
 0x134   :  { %2633 = vmatprep.mubr.msk.f32.mxu0 %vm2999_vm0, %v3000_v6  ;;  %2812 = vmatprep.mubr.msk.f32.mxu1 %vm2999_vm0, %v3000_v6  ;;  %v1846_v42 = vld [vmem:[%s4815_s0 + $0x3c0] sm:$0xff] }
 0x136   :  { %v3939_v54 = vpop.f32.mrb[32].mxu0  ;;  %v3941_v55 = vpop.f32.mrb[32].mxu1 }
 0x137   :  { %v2265_v63 = vpop.f32.mrb[33].mxu0  ;;  %v2444_v3 = vpop.f32.mrb[33].mxu1  ;;  %2634 = vmatmul.mubr.f32.gmra.mrb[138].mxu0 %v1844_v46  ;;  %2813 = vmatmul.mubr.f32.gmra.mrb[138].mxu1 %v1893_v53  ;;  %v1895_v46 = vld [vmem:[%s4815_s0 + $0x548] sm:$0xff] }
 0x138   :  { %2636 = vmatprep.mubr.msk.f32.mxu0 %vm2999_vm0, %v3000_v6  ;;  %2815 = vmatprep.mubr.msk.f32.mxu1 %vm2999_vm0, %v3000_v6  ;;  %v1848_v3 = vld [vmem:[%s4815_s0 + $0x3d0] sm:$0xff] }
 0x13a   :  { %v3955_v19 = vpop.f32.mrb[34].mxu0  ;;  %v3957_v20 = vpop.f32.mrb[34].mxu1 }
 0x13b   :  { %v2268_v28 = vpop.f32.mrb[35].mxu0  ;;  %v2447_v41 = vpop.f32.mrb[35].mxu1  ;;  %2637 = vmatmul.mubr.f32.gmra.mrb[140].mxu0 %v1845_v4  ;;  %2816 = vmatmul.mubr.f32.gmra.mrb[140].mxu1 %v1894_v5 }
 0x13c   :  { %2639 = vmatprep.mubr.msk.f32.mxu0 %vm2999_vm0, %v3000_v6  ;;  %2818 = vmatprep.mubr.msk.f32.mxu1 %vm2999_vm0, %v3000_v6  ;;  %v1847_v28 = vld [vmem:[%s4815_s0 + $0x3c8] sm:$0xff]  ;;  %v1896_v41 = vld [vmem:[%s4815_s0 + $0x550] sm:$0xff] }
 0x13e   :  { %v3971_v53 = vpop.f32.mrb[36].mxu0  ;;  %v3973_v63 = vpop.f32.mrb[36].mxu1 }
 0x13f   :  { %v2271_v4 = vpop.f32.mrb[37].mxu0  ;;  %v2450_v5 = vpop.f32.mrb[37].mxu1  ;;  %2640 = vmatmul.mubr.f32.gmra.mrb[142].mxu0 %v1846_v42  ;;  %2819 = vmatmul.mubr.f32.gmra.mrb[142].mxu1 %v1895_v46  ;;  %v1849_v42 = vld [vmem:[%s4815_s0 + $0x3d8] sm:$0xff] }
 0x140   :  { %2642 = vmatprep.mubr.msk.f32.mxu0 %vm2999_vm0, %v3000_v6  ;;  %2821 = vmatprep.mubr.msk.f32.mxu1 %vm2999_vm0, %v3000_v6 }
 0x142   :  { %v3987_v27 = vpop.f32.mrb[38].mxu0  ;;  %v3989_v4 = vpop.f32.mrb[38].mxu1 }
 0x143   :  { %v2274_v46 = vpop.f32.mrb[39].mxu0  ;;  %v2453_v5 = vpop.f32.mrb[39].mxu1  ;;  %2643 = vmatmul.mubr.f32.gmra.mrb[144].mxu0 %v1847_v28  ;;  %2822 = vmatmul.mubr.f32.gmra.mrb[144].mxu1 %v1896_v41  ;;  %v1850_v28 = vld [vmem:[%s4815_s0 + $0x3e0] sm:$0xff] }
 0x144   :  { %2645 = vmatprep.mubr.msk.f32.mxu0 %vm2999_vm0, %v3000_v6  ;;  %2824 = vmatprep.mubr.msk.f32.mxu1 %vm2999_vm0, %v3000_v6 }
 0x146   :  { %v4003_v40 = vpop.f32.mrb[40].mxu0  ;;  %v4005_v46 = vpop.f32.mrb[40].mxu1 }
 0x147   :  { %v2277_v41 = vpop.f32.mrb[41].mxu0  ;;  %v2456_v5 = vpop.f32.mrb[41].mxu1  ;;  %2646 = vmatmul.mubr.f32.gmra.mrb[146].mxu0 %v1848_v3  ;;  %2825 = vmatmul.mubr.f32.gmra.mrb[146].mxu1 %v1897_v56  ;;  %v1851_v56 = vld [vmem:[%s4815_s0 + $0x3e8] sm:$0xff] }
 0x148   :  { %2648 = vmatprep.mubr.msk.f32.mxu0 %vm2999_vm0, %v3000_v6  ;;  %2827 = vmatprep.mubr.msk.f32.mxu1 %vm2999_vm0, %v3000_v6 }
 0x14a   :  { %v4019_v62 = vpop.f32.mrb[42].mxu0  ;;  %v4021_v41 = vpop.f32.mrb[42].mxu1 }
 0x14b   :  { %v2280_v3 = vpop.f32.mrb[43].mxu0  ;;  %v2459_v5 = vpop.f32.mrb[43].mxu1  ;;  %2649 = vmatmul.mubr.f32.gmra.mrb[148].mxu0 %v1849_v42  ;;  %2828 = vmatmul.mubr.f32.gmra.mrb[148].mxu1 %v1898_v18  ;;  %v1852_v18 = vld [vmem:[%s4815_s0 + $0x3f0] sm:$0xff] }
 0x14c   :  { %2651 = vmatprep.mubr.msk.f32.mxu0 %vm2999_vm0, %v3000_v6  ;;  %2830 = vmatprep.mubr.msk.f32.mxu1 %vm2999_vm0, %v3000_v6 }
 0x14e   :  { %v4035_v39 = vpop.f32.mrb[44].mxu0  ;;  %v4037_v3 = vpop.f32.mrb[44].mxu1 }
 0x14f   :  { %v2283_v42 = vpop.f32.mrb[45].mxu0  ;;  %v2462_v5 = vpop.f32.mrb[45].mxu1  ;;  %2652 = vmatmul.mubr.f32.gmra.mrb[150].mxu0 %v1850_v28  ;;  %2831 = vmatmul.mubr.f32.gmra.mrb[150].mxu1 %v1899_v49  ;;  %v1853_v49 = vld [vmem:[%s4815_s0 + $0x3f8] sm:$0xff] }
 0x150   :  { %2654 = vmatprep.mubr.msk.f32.mxu0 %vm2999_vm0, %v3000_v6  ;;  %2833 = vmatprep.mubr.msk.f32.mxu1 %vm2999_vm0, %v3000_v6 }
 0x152   :  { %v4051_v13 = vpop.f32.mrb[46].mxu0  ;;  %v4053_v42 = vpop.f32.mrb[46].mxu1 }
 0x153   :  { %v2286_v28 = vpop.f32.mrb[47].mxu0  ;;  %v2465_v5 = vpop.f32.mrb[47].mxu1  ;;  %2655 = vmatmul.mubr.f32.gmra.mrb[152].mxu0 %v1851_v56  ;;  %2834 = vmatmul.mubr.f32.gmra.mrb[152].mxu1 %v1900_v26  ;;  %v1854_v26 = vld [vmem:[%s4815_s0 + $0x400] sm:$0xff] }
 0x154   :  { %2657 = vmatprep.mubr.msk.f32.mxu0 %vm2999_vm0, %v3000_v6  ;;  %2836 = vmatprep.mubr.msk.f32.mxu1 %vm2999_vm0, %v3000_v6 }
 0x156   :  { %v4067_v59 = vpop.f32.mrb[48].mxu0  ;;  %v4069_v28 = vpop.f32.mrb[48].mxu1 }
 0x157   :  { %4867 = vst [vmem:[#allocation2_spill] sm:$0xff] %v4069_v28  ;;  %v2289_v56 = vpop.f32.mrb[49].mxu0  ;;  %v2468_v5 = vpop.f32.mrb[49].mxu1  ;;  %2658 = vmatmul.mubr.f32.gmra.mrb[154].mxu0 %v1852_v18  ;;  %2837 = vmatmul.mubr.f32.gmra.mrb[154].mxu1 %v1901_v2  ;;  %v1855_v2 = vld [vmem:[%s4815_s0 + $0x408] sm:$0xff] }
 0x158   :  { %2660 = vmatprep.mubr.msk.f32.mxu0 %vm2999_vm0, %v3000_v6  ;;  %2839 = vmatprep.mubr.msk.f32.mxu1 %vm2999_vm0, %v3000_v6 }
 0x15a   :  { %v4083_v45 = vpop.f32.mrb[50].mxu0  ;;  %v4085_v56 = vpop.f32.mrb[50].mxu1 }
 0x15b   :  { %4868 = vst [vmem:[#allocation3_spill] sm:$0xff] %v4083_v45  ;;  %4869 = vst [vmem:[#allocation4_spill] sm:$0xff] %v4085_v56  ;;  %v2292_v18 = vpop.f32.mrb[51].mxu0  ;;  %v2471_v5 = vpop.f32.mrb[51].mxu1  ;;  %2661 = vmatmul.mubr.f32.gmra.mrb[156].mxu0 %v1853_v49  ;;  %2840 = vmatmul.mubr.f32.gmra.mrb[156].mxu1 %v1902_v52  ;;  %v1856_v52 = vld [vmem:[%s4815_s0 + $0x410] sm:$0xff] }
 0x15c   :  { %2663 = vmatprep.mubr.msk.f32.mxu0 %vm2999_vm0, %v3000_v6  ;;  %2842 = vmatprep.mubr.msk.f32.mxu1 %vm2999_vm0, %v3000_v6 }
 0x15e   :  { %v4099_v31 = vpop.f32.mrb[52].mxu0  ;;  %v4101_v18 = vpop.f32.mrb[52].mxu1 }
 0x15f   :  { %4870 = vst [vmem:[#allocation5_spill] sm:$0xff] %v4099_v31  ;;  %4871 = vst [vmem:[#allocation6_spill] sm:$0xff] %v4101_v18  ;;  %v2295_v49 = vpop.f32.mrb[53].mxu0  ;;  %v2474_v5 = vpop.f32.mrb[53].mxu1  ;;  %2664 = vmatmul.mubr.f32.gmra.mrb[158].mxu0 %v1854_v26  ;;  %2843 = vmatmul.mubr.f32.gmra.mrb[158].mxu1 %v1903_v38  ;;  %v1857_v38 = vld [vmem:[%s4815_s0 + $0x418] sm:$0xff] }
 0x160   :  { %2666 = vmatprep.mubr.msk.f32.mxu0 %vm2999_vm0, %v3000_v6  ;;  %2845 = vmatprep.mubr.msk.f32.mxu1 %vm2999_vm0, %v3000_v6 }
 0x162   :  { %v4115_v17 = vpop.f32.mrb[54].mxu0  ;;  %v4117_v49 = vpop.f32.mrb[54].mxu1 }
 0x163   :  { %4872 = vst [vmem:[#allocation7_spill] sm:$0xff] %v4115_v17  ;;  %4873 = vst [vmem:[#allocation8_spill] sm:$0xff] %v4117_v49  ;;  %v2298_v26 = vpop.f32.mrb[55].mxu0  ;;  %v2477_v5 = vpop.f32.mrb[55].mxu1  ;;  %2667 = vmatmul.mubr.f32.gmra.mrb[160].mxu0 %v1855_v2  ;;  %2846 = vmatmul.mubr.f32.gmra.mrb[160].mxu1 %v1904_v24  ;;  %v1906_v49 = vld [vmem:[%s4815_s0 + $0x5a0] sm:$0xff] }
 0x164   :  { %2669 = vmatprep.mubr.msk.f32.mxu0 %vm2999_vm0, %v3000_v6  ;;  %2848 = vmatprep.mubr.msk.f32.mxu1 %vm2999_vm0, %v3000_v6  ;;  %v1858_v24 = vld [vmem:[%s4815_s0 + $0x420] sm:$0xff] }
 0x166   :  { %v4131_v18 = vpop.f32.mrb[56].mxu0  ;;  %v4133_v26 = vpop.f32.mrb[56].mxu1 }
 0x167   :  { %4874 = vst [vmem:[#allocation9_spill] sm:$0xff] %v4131_v18  ;;  %4875 = vst [vmem:[#allocation10_spill] sm:$0xff] %v4133_v26  ;;  %v2301_v2 = vpop.f32.mrb[57].mxu0  ;;  %v2480_v5 = vpop.f32.mrb[57].mxu1  ;;  %2670 = vmatmul.mubr.f32.gmra.mrb[162].mxu0 %v1856_v52  ;;  %2849 = vmatmul.mubr.f32.gmra.mrb[162].mxu1 %v1905_v10  ;;  %v1907_v26 = vld [vmem:[%s4815_s0 + $0x5a8] sm:$0xff] }
 0x168   :  { %2672 = vmatprep.mubr.msk.f32.mxu0 %vm2999_vm0, %v3000_v6  ;;  %2851 = vmatprep.mubr.msk.f32.mxu1 %vm2999_vm0, %v3000_v6  ;;  %v1859_v10 = vld [vmem:[%s4815_s0 + $0x428] sm:$0xff] }
 0x16a   :  { %v4147_v17 = vpop.f32.mrb[58].mxu0  ;;  %v4149_v2 = vpop.f32.mrb[58].mxu1 }
 0x16b   :  { %4876 = vst [vmem:[#allocation11_spill] sm:$0xff] %v4147_v17  ;;  %4877 = vst [vmem:[#allocation12_spill] sm:$0xff] %v4149_v2  ;;  %v2304_v52 = vpop.f32.mrb[59].mxu0  ;;  %v2483_v5 = vpop.f32.mrb[59].mxu1  ;;  %2673 = vmatmul.mubr.f32.gmra.mrb[164].mxu0 %v1857_v38  ;;  %2852 = vmatmul.mubr.f32.gmra.mrb[164].mxu1 %v1906_v49  ;;  %v1908_v2 = vld [vmem:[%s4815_s0 + $0x5b0] sm:$0xff] }
 0x16c   :  { %2675 = vmatprep.mubr.msk.f32.mxu0 %vm2999_vm0, %v3000_v6  ;;  %2854 = vmatprep.mubr.msk.f32.mxu1 %vm2999_vm0, %v3000_v6  ;;  %v1860_v49 = vld [vmem:[%s4815_s0 + $0x430] sm:$0xff] }
 0x16e   :  { %v4163_v18 = vpop.f32.mrb[60].mxu0  ;;  %v4165_v52 = vpop.f32.mrb[60].mxu1 }
 0x16f   :  { %4878 = vst [vmem:[#allocation13_spill] sm:$0xff] %v4163_v18  ;;  %4879 = vst [vmem:[#allocation14_spill] sm:$0xff] %v4165_v52  ;;  %v2307_v38 = vpop.f32.mrb[61].mxu0  ;;  %v2486_v5 = vpop.f32.mrb[61].mxu1  ;;  %2676 = vmatmul.mubr.f32.gmra.mrb[166].mxu0 %v1858_v24  ;;  %2855 = vmatmul.mubr.f32.gmra.mrb[166].mxu1 %v1907_v26  ;;  %v1909_v52 = vld [vmem:[%s4815_s0 + $0x5b8] sm:$0xff] }
 0x170   :  { %2678 = vmatprep.mubr.msk.f32.mxu0 %vm2999_vm0, %v3000_v6  ;;  %2857 = vmatprep.mubr.msk.f32.mxu1 %vm2999_vm0, %v3000_v6  ;;  %v1861_v26 = vld [vmem:[%s4815_s0 + $0x438] sm:$0xff] }
 0x172   :  { %v4179_v17 = vpop.f32.mrb[62].mxu0  ;;  %v4181_v38 = vpop.f32.mrb[62].mxu1 }
 0x173   :  { %4880 = vst [vmem:[#allocation15_spill] sm:$0xff] %v4179_v17  ;;  %4881 = vst [vmem:[#allocation16_spill] sm:$0xff] %v4181_v38  ;;  %v2310_v24 = vpop.f32.mrb[63].mxu0  ;;  %v2489_v5 = vpop.f32.mrb[63].mxu1  ;;  %2679 = vmatmul.mubr.f32.gmra.mrb[168].mxu0 %v1859_v10  ;;  %2858 = vmatmul.mubr.f32.gmra.mrb[168].mxu1 %v1908_v2  ;;  %v1910_v38 = vld [vmem:[%s4815_s0 + $0x5c0] sm:$0xff] }
 0x174   :  { %2681 = vmatprep.mubr.msk.f32.mxu0 %vm2999_vm0, %v3000_v6  ;;  %2860 = vmatprep.mubr.msk.f32.mxu1 %vm2999_vm0, %v3000_v6  ;;  %v1862_v2 = vld [vmem:[%s4815_s0 + $0x440] sm:$0xff] }
 0x176   :  { %v4195_v18 = vpop.f32.mrb[64].mxu0  ;;  %v4197_v24 = vpop.f32.mrb[64].mxu1 }
 0x177   :  { %4882 = vst [vmem:[#allocation17_spill] sm:$0xff] %v4195_v18  ;;  %4883 = vst [vmem:[#allocation18_spill] sm:$0xff] %v4197_v24  ;;  %v2313_v10 = vpop.f32.mrb[65].mxu0  ;;  %v2492_v5 = vpop.f32.mrb[65].mxu1  ;;  %2682 = vmatmul.mubr.f32.gmra.mrb[170].mxu0 %v1860_v49  ;;  %2861 = vmatmul.mubr.f32.gmra.mrb[170].mxu1 %v1909_v52  ;;  %v1911_v24 = vld [vmem:[%s4815_s0 + $0x5c8] sm:$0xff] }
 0x178   :  { %2684 = vmatprep.mubr.msk.f32.mxu0 %vm2999_vm0, %v3000_v6  ;;  %2863 = vmatprep.mubr.msk.f32.mxu1 %vm2999_vm0, %v3000_v6  ;;  %v1863_v52 = vld [vmem:[%s4815_s0 + $0x448] sm:$0xff] }
 0x17a   :  { %v4211_v17 = vpop.f32.mrb[66].mxu0  ;;  %v4213_v10 = vpop.f32.mrb[66].mxu1 }
 0x17b   :  { %4884 = vst [vmem:[#allocation19_spill] sm:$0xff] %v4211_v17  ;;  %4885 = vst [vmem:[#allocation20_spill] sm:$0xff] %v4213_v10  ;;  %v2316_v49 = vpop.f32.mrb[67].mxu0  ;;  %v2495_v5 = vpop.f32.mrb[67].mxu1  ;;  %2685 = vmatmul.mubr.f32.gmra.mrb[172].mxu0 %v1861_v26  ;;  %2864 = vmatmul.mubr.f32.gmra.mrb[172].mxu1 %v1910_v38  ;;  %v1912_v10 = vld [vmem:[%s4815_s0 + $0x5d0] sm:$0xff] }
 0x17c   :  { %2687 = vmatprep.mubr.msk.f32.mxu0 %vm2999_vm0, %v3000_v6  ;;  %2866 = vmatprep.mubr.msk.f32.mxu1 %vm2999_vm0, %v3000_v6  ;;  %v1864_v38 = vld [vmem:[%s4815_s0 + $0x450] sm:$0xff] }
 0x17e   :  { %v4227_v18 = vpop.f32.mrb[68].mxu0  ;;  %v4229_v49 = vpop.f32.mrb[68].mxu1 }
 0x17f   :  { %4886 = vst [vmem:[#allocation21_spill] sm:$0xff] %v4227_v18  ;;  %4887 = vst [vmem:[#allocation22_spill] sm:$0xff] %v4229_v49  ;;  %v2319_v26 = vpop.f32.mrb[69].mxu0  ;;  %v2498_v5 = vpop.f32.mrb[69].mxu1  ;;  %2688 = vmatmul.mubr.f32.gmra.mrb[174].mxu0 %v1862_v2  ;;  %2867 = vmatmul.mubr.f32.gmra.mrb[174].mxu1 %v1911_v24  ;;  %v1913_v49 = vld [vmem:[%s4815_s0 + $0x5d8] sm:$0xff] }
 0x180   :  { %2690 = vmatprep.mubr.msk.f32.mxu0 %vm2999_vm0, %v3000_v6  ;;  %2869 = vmatprep.mubr.msk.f32.mxu1 %vm2999_vm0, %v3000_v6  ;;  %v1865_v24 = vld [vmem:[%s4815_s0 + $0x458] sm:$0xff] }
 0x182   :  { %v4243_v17 = vpop.f32.mrb[70].mxu0  ;;  %v4245_v26 = vpop.f32.mrb[70].mxu1 }
 0x183   :  { %4888 = vst [vmem:[#allocation23_spill] sm:$0xff] %v4243_v17  ;;  %4889 = vst [vmem:[#allocation24_spill] sm:$0xff] %v4245_v26  ;;  %v2322_v2 = vpop.f32.mrb[71].mxu0  ;;  %v2501_v5 = vpop.f32.mrb[71].mxu1  ;;  %2691 = vmatmul.mubr.f32.gmra.mrb[176].mxu0 %v1863_v52  ;;  %2870 = vmatmul.mubr.f32.gmra.mrb[176].mxu1 %v1912_v10  ;;  %v1914_v26 = vld [vmem:[%s4815_s0 + $0x5e0] sm:$0xff] }
 0x184   :  { %2693 = vmatprep.mubr.msk.f32.mxu0 %vm2999_vm0, %v3000_v6  ;;  %2872 = vmatprep.mubr.msk.f32.mxu1 %vm2999_vm0, %v3000_v6  ;;  %v1866_v10 = vld [vmem:[%s4815_s0 + $0x460] sm:$0xff] }
 0x186   :  { %v4259_v18 = vpop.f32.mrb[72].mxu0  ;;  %v4261_v2 = vpop.f32.mrb[72].mxu1 }
 0x187   :  { %4890 = vst [vmem:[#allocation25_spill] sm:$0xff] %v4259_v18  ;;  %4891 = vst [vmem:[#allocation26_spill] sm:$0xff] %v4261_v2  ;;  %v2325_v52 = vpop.f32.mrb[73].mxu0  ;;  %v2504_v5 = vpop.f32.mrb[73].mxu1  ;;  %2694 = vmatmul.mubr.f32.gmra.mrb[178].mxu0 %v1864_v38  ;;  %2873 = vmatmul.mubr.f32.gmra.mrb[178].mxu1 %v1913_v49  ;;  %v1915_v2 = vld [vmem:[%s4815_s0 + $0x5e8] sm:$0xff] }
 0x188   :  { %2696 = vmatprep.mubr.msk.f32.mxu0 %vm2999_vm0, %v3000_v6  ;;  %2875 = vmatprep.mubr.msk.f32.mxu1 %vm2999_vm0, %v3000_v6  ;;  %v1867_v49 = vld [vmem:[%s4815_s0 + $0x468] sm:$0xff] }
 0x18a   :  { %v4275_v17 = vpop.f32.mrb[74].mxu0  ;;  %v4277_v52 = vpop.f32.mrb[74].mxu1 }
 0x18b   :  { %4892 = vst [vmem:[#allocation27_spill] sm:$0xff] %v4275_v17  ;;  %4893 = vst [vmem:[#allocation28_spill] sm:$0xff] %v4277_v52  ;;  %v2328_v38 = vpop.f32.mrb[75].mxu0  ;;  %v2507_v5 = vpop.f32.mrb[75].mxu1  ;;  %2697 = vmatmul.mubr.f32.gmra.mrb[180].mxu0 %v1865_v24  ;;  %2876 = vmatmul.mubr.f32.gmra.mrb[180].mxu1 %v1914_v26  ;;  %v1916_v52 = vld [vmem:[%s4815_s0 + $0x5f0] sm:$0xff] }
 0x18c   :  { %2699 = vmatprep.mubr.msk.f32.mxu0 %vm2999_vm0, %v3000_v6  ;;  %2878 = vmatprep.mubr.msk.f32.mxu1 %vm2999_vm0, %v3000_v6  ;;  %v1868_v26 = vld [vmem:[%s4815_s0 + $0x470] sm:$0xff] }
 0x18e   :  { %v4291_v18 = vpop.f32.mrb[76].mxu0  ;;  %v4293_v38 = vpop.f32.mrb[76].mxu1 }
 0x18f   :  { %4894 = vst [vmem:[#allocation29_spill] sm:$0xff] %v4291_v18  ;;  %4895 = vst [vmem:[#allocation30_spill] sm:$0xff] %v4293_v38  ;;  %v2331_v24 = vpop.f32.mrb[77].mxu0  ;;  %v2510_v5 = vpop.f32.mrb[77].mxu1  ;;  %2700 = vmatmul.mubr.f32.gmra.mrb[182].mxu0 %v1866_v10  ;;  %2879 = vmatmul.mubr.f32.gmra.mrb[182].mxu1 %v1915_v2  ;;  %v1917_v38 = vld [vmem:[%s4815_s0 + $0x5f8] sm:$0xff] }
 0x190   :  { %2702 = vmatprep.mubr.msk.f32.mxu0 %vm2999_vm0, %v3000_v6  ;;  %2881 = vmatprep.mubr.msk.f32.mxu1 %vm2999_vm0, %v3000_v6  ;;  %v1869_v2 = vld [vmem:[%s4815_s0 + $0x478] sm:$0xff] }
 0x192   :  { %v4307_v17 = vpop.f32.mrb[78].mxu0  ;;  %v4309_v24 = vpop.f32.mrb[78].mxu1 }
 0x193   :  { %4896 = vst [vmem:[#allocation31_spill] sm:$0xff] %v4307_v17  ;;  %4897 = vst [vmem:[#allocation32_spill] sm:$0xff] %v4309_v24  ;;  %v2334_v10 = vpop.f32.mrb[79].mxu0  ;;  %v2513_v5 = vpop.f32.mrb[79].mxu1  ;;  %2703 = vmatmul.mubr.f32.gmra.mrb[184].mxu0 %v1867_v49  ;;  %2882 = vmatmul.mubr.f32.gmra.mrb[184].mxu1 %v1916_v52  ;;  %v1918_v24 = vld [vmem:[%s4815_s0 + $0x600] sm:$0xff] }
 0x194   :  { %2705 = vmatprep.mubr.msk.f32.mxu0 %vm2999_vm0, %v3000_v6  ;;  %2884 = vmatprep.mubr.msk.f32.mxu1 %vm2999_vm0, %v3000_v6  ;;  %v1870_v52 = vld [vmem:[%s4815_s0 + $0x480] sm:$0xff] }
 0x196   :  { %v4323_v18 = vpop.f32.mrb[80].mxu0  ;;  %v4325_v10 = vpop.f32.mrb[80].mxu1 }
 0x197   :  { %4898 = vst [vmem:[#allocation33_spill] sm:$0xff] %v4323_v18  ;;  %4899 = vst [vmem:[#allocation34_spill] sm:$0xff] %v4325_v10  ;;  %v2337_v49 = vpop.f32.mrb[81].mxu0  ;;  %v2516_v5 = vpop.f32.mrb[81].mxu1  ;;  %2706 = vmatmul.mubr.f32.gmra.mrb[186].mxu0 %v1868_v26  ;;  %2885 = vmatmul.mubr.f32.gmra.mrb[186].mxu1 %v1917_v38  ;;  %v1919_v10 = vld [vmem:[%s4815_s0 + $0x608] sm:$0xff] }
 0x198   :  { %2708 = vmatprep.mubr.msk.f32.mxu0 %vm2999_vm0, %v3000_v6  ;;  %2887 = vmatprep.mubr.msk.f32.mxu1 %vm2999_vm0, %v3000_v6  ;;  %v1871_v38 = vld [vmem:[%s4815_s0 + $0x488] sm:$0xff] }
 0x19a   :  { %v4339_v17 = vpop.f32.mrb[82].mxu0  ;;  %v4341_v49 = vpop.f32.mrb[82].mxu1 }
 0x19b   :  { %4900 = vst [vmem:[#allocation35_spill] sm:$0xff] %v4339_v17  ;;  %4901 = vst [vmem:[#allocation36_spill] sm:$0xff] %v4341_v49  ;;  %v2340_v26 = vpop.f32.mrb[83].mxu0  ;;  %v2519_v5 = vpop.f32.mrb[83].mxu1  ;;  %2709 = vmatmul.mubr.f32.gmra.mrb[188].mxu0 %v1869_v2  ;;  %2888 = vmatmul.mubr.f32.gmra.mrb[188].mxu1 %v1918_v24  ;;  %v1920_v49 = vld [vmem:[%s4815_s0 + $0x610] sm:$0xff] }
 0x19c   :  { %2711 = vmatprep.mubr.msk.f32.mxu0 %vm2999_vm0, %v3000_v6  ;;  %2890 = vmatprep.mubr.msk.f32.mxu1 %vm2999_vm0, %v3000_v6  ;;  %v1872_v24 = vld [vmem:[%s4815_s0 + $0x490] sm:$0xff] }
 0x19e   :  { %v4355_v18 = vpop.f32.mrb[84].mxu0  ;;  %v4357_v26 = vpop.f32.mrb[84].mxu1 }
 0x19f   :  { %4902 = vst [vmem:[#allocation37_spill] sm:$0xff] %v4355_v18  ;;  %4903 = vst [vmem:[#allocation38_spill] sm:$0xff] %v4357_v26  ;;  %v2343_v2 = vpop.f32.mrb[85].mxu0  ;;  %v2522_v5 = vpop.f32.mrb[85].mxu1  ;;  %2712 = vmatmul.mubr.f32.gmra.mrb[190].mxu0 %v1870_v52  ;;  %2891 = vmatmul.mubr.f32.gmra.mrb[190].mxu1 %v1919_v10  ;;  %v1921_v26 = vld [vmem:[%s4815_s0 + $0x618] sm:$0xff] }
 0x1a0   :  { %2714 = vmatprep.mubr.msk.f32.mxu0 %vm2999_vm0, %v3000_v6  ;;  %2893 = vmatprep.mubr.msk.f32.mxu1 %vm2999_vm0, %v3000_v6 }
 0x1a2   :  { %v4371_v17 = vpop.f32.mrb[86].mxu0  ;;  %v4373_v2 = vpop.f32.mrb[86].mxu1 }
 0x1a3   :  { %4904 = vst [vmem:[#allocation39_spill] sm:$0xff] %v4371_v17  ;;  %4905 = vst [vmem:[#allocation40_spill] sm:$0xff] %v4373_v2  ;;  %v2346_v52 = vpop.f32.mrb[87].mxu0  ;;  %v2525_v5 = vpop.f32.mrb[87].mxu1  ;;  %2715 = vmatmul.mubr.f32.gmra.mrb[192].mxu0 %v1871_v38  ;;  %2894 = vmatmul.mubr.f32.gmra.mrb[192].mxu1 %v1920_v49 }
 0x1a4   :  { %2717 = vmatprep.mubr.msk.f32.mxu0 %vm2999_vm0, %v3000_v6  ;;  %2896 = vmatprep.mubr.msk.f32.mxu1 %vm2999_vm0, %v3000_v6 }
 0x1a6   :  { %v4387_v18 = vpop.f32.mrb[88].mxu0  ;;  %v4389_v52 = vpop.f32.mrb[88].mxu1 }
 0x1a7   :  { %4906 = vst [vmem:[#allocation41_spill] sm:$0xff] %v4387_v18  ;;  %4907 = vst [vmem:[#allocation42_spill] sm:$0xff] %v4389_v52  ;;  %v2349_v38 = vpop.f32.mrb[89].mxu0  ;;  %v2528_v5 = vpop.f32.mrb[89].mxu1  ;;  %2718 = vmatmul.mubr.f32.gmra.mrb[194].mxu0 %v1872_v24  ;;  %2897 = vmatmul.mubr.f32.gmra.mrb[194].mxu1 %v1921_v26  ;;  %v4420_v52 = vld [vmem:[%s4816_s2] ss:$0 sm:$0xff] }
 0x1aa   :  { %v4393_v6 = vpop.f32.mrb[90].mxu0  ;;  %v4395_v10 = vpop.f32.mrb[90].mxu1 }
 0x1ab   :  { %4908 = vst [vmem:[#allocation43_spill] sm:$0xff] %v4393_v6  ;;  %4909 = vst [vmem:[#allocation44_spill] sm:$0xff] %v4395_v10  ;;  %v2352_v17 = vpop.f32.mrb[91].mxu0  ;;  %v2531_v31 = vpop.f32.mrb[91].mxu1 }
 0x1ae   :  { %v4399_v56 = vpop.f32.mrb[92].mxu0  ;;  %v4401_v45 = vpop.f32.mrb[92].mxu1 }
 0x1af   :  { %4910 = vst [vmem:[#allocation45_spill] sm:$0xff] %v4399_v56  ;;  %4911 = vst [vmem:[#allocation46_spill] sm:$0xff] %v4401_v45  ;;  %v2355_v38 = vpop.f32.mrb[93].mxu0  ;;  %v2534_v5 = vpop.f32.mrb[93].mxu1 }
 0x1b2   :  { %v4405_v24 = vpop.f32.mrb[94].mxu0  ;;  %v4407_v26 = vpop.f32.mrb[94].mxu1 }
 0x1b3   :  { %4912 = vst [vmem:[#allocation47_spill] sm:$0xff] %v4405_v24  ;;  %4913 = vst [vmem:[#allocation48_spill] sm:$0xff] %v4407_v26  ;;  %v2358_v18 = vpop.f32.mrb[95].mxu0  ;;  %v2537_v2 = vpop.f32.mrb[95].mxu1 }
 0x1b4   :  { %v4916_v18 = vmax.f32 %v3683_v8, %v3685_v9 }
 0x1b6   :  { %v4411_v17 = vpop.f32.mrb[96].mxu0  ;;  %v4413_v31 = vpop.f32.mrb[96].mxu1 }
 0x1b7   :  { %4914 = vst [vmem:[#allocation49_spill] sm:$0xff] %v4411_v17  ;;  %4915 = vst [vmem:[#allocation50_spill] sm:$0xff] %v4413_v31  ;;  %v2361_v6 = vpop.f32.mrb[97].mxu0  ;;  %v2540_v49 = vpop.f32.mrb[97].mxu1 }
 0x1ba   :  { %v865_v38 = vpop.f32.mrb[98].mxu0  ;;  %v1225_v5 = vpop.f32.mrb[98].mxu1 }
 0x1bb   :  { %v1518_v45 = vmax.f32 %v865_v38, %v1225_v5  ;;  %v2575_v56 = vpop.f32.mrb[99].mxu0  ;;  %v2754_v28 = vpop.f32.mrb[99].mxu1 }
 0x1bc   :  { %v4917_v28 = vmax.f32 %v3699_v15, %v3701_v16 }
 0x1bd   :  { %v1567_v2 = vmax.f32 %v4916_v18, %v1518_v45 }
 0x1be   :  { %v870_v26 = vpop.f32.mrb[100].mxu0  ;;  %v1230_v24 = vpop.f32.mrb[100].mxu1 }
 0x1bf   :  { %v1623_v10 = vadd.f32 %v4420_v52, %v1567_v2  ;;  %v1519_v6 = vmax.f32 %v870_v26, %v1230_v24  ;;  %v2578_v49 = vpop.f32.mrb[101].mxu0  ;;  %v2757_v31 = vpop.f32.mrb[101].mxu1 }
 0x1c1   :  { %v1672_v38 = vmax.f32 %v1623_v10, 0.0  ;;  %v1568_v56 = vmax.f32 %v4917_v28, %v1519_v6  ;;  %v4918_v10 = vmax.f32 %v3715_v22, %v3717_v23 }
 0x1c2   :  { %v875_v5 = vpop.f32.mrb[102].mxu0  ;;  %v1235_v17 = vpop.f32.mrb[102].mxu1 }
 0x1c3   :  { %1722 = vst.msk [vmem:[%s4817_s3] sm:$0xff] %vm1721_vm1, %v1672_v38  ;;  %v1624_v8 = vadd.f32 %v4420_v52, %v1568_v56  ;;  %v1520_v9 = vmax.f32 %v875_v5, %v1235_v17  ;;  %v2581_v45 = vpop.f32.mrb[103].mxu0  ;;  %v2760_v24 = vpop.f32.mrb[103].mxu1  ;;  %v4919_v38 = vmax.f32 %v3731_v29, %v3733_v30 }
 0x1c4   :  { %v4920_v24 = vmax.f32 %v3747_v36, %v3749_v37 }
 0x1c5   :  { %v1673_v26 = vmax.f32 %v1624_v8, 0.0  ;;  %v1569_v31 = vmax.f32 %v4918_v10, %v1520_v9 }
 0x1c6   :  { %v880_v18 = vpop.f32.mrb[104].mxu0  ;;  %v1240_v15 = vpop.f32.mrb[104].mxu1 }
 0x1c7   :  { %1723 = vst.msk [vmem:[%s4817_s3 + $0x8] sm:$0xff] %vm1721_vm1, %v1673_v26  ;;  %v1625_v16 = vadd.f32 %v4420_v52, %v1569_v31  ;;  %v1521_v2 = vmax.f32 %v880_v18, %v1240_v15  ;;  %v2584_v6 = vpop.f32.mrb[105].mxu0  ;;  %v2763_v49 = vpop.f32.mrb[105].mxu1 }
 0x1c9   :  { %v1674_v17 = vmax.f32 %v1625_v16, 0.0  ;;  %v1570_v28 = vmax.f32 %v4919_v38, %v1521_v2  ;;  %v4921_v2 = vmax.f32 %v3763_v43, %v3765_v44 }
 0x1ca   :  { %v885_v56 = vpop.f32.mrb[106].mxu0  ;;  %v1245_v22 = vpop.f32.mrb[106].mxu1 }
 0x1cb   :  { %1724 = vst.msk [vmem:[%s4817_s3 + $0x10] sm:$0xff] %vm1721_vm1, %v1674_v17  ;;  %v1626_v23 = vadd.f32 %v4420_v52, %v1570_v28  ;;  %v1522_v5 = vmax.f32 %v885_v56, %v1245_v22  ;;  %v2587_v8 = vpop.f32.mrb[107].mxu0  ;;  %v2766_v9 = vpop.f32.mrb[107].mxu1  ;;  %v4922_v22 = vmax.f32 %v3779_v50, %v3781_v51 }
 0x1cd   :  { %v1675_v45 = vmax.f32 %v1626_v23, 0.0  ;;  %v1571_v26 = vmax.f32 %v4920_v24, %v1522_v5 }
 0x1ce   :  { %v890_v10 = vpop.f32.mrb[108].mxu0  ;;  %v1250_v29 = vpop.f32.mrb[108].mxu1 }
 0x1cf   :  { %1725 = vst.msk [vmem:[%s4817_s3 + $0x18] sm:$0xff] %vm1721_vm1, %v1675_v45  ;;  %v1627_v30 = vadd.f32 %v4420_v52, %v1571_v26  ;;  %v1523_v31 = vmax.f32 %v890_v10, %v1250_v29  ;;  %v2590_v18 = vpop.f32.mrb[109].mxu0  ;;  %v2769_v15 = vpop.f32.mrb[109].mxu1  ;;  %v4923_v26 = vmax.f32 %v3795_v57, %v3797_v58 }
 0x1d1   :  { %v1676_v16 = vmax.f32 %v1627_v30, 0.0  ;;  %v1572_v6 = vmax.f32 %v4921_v2, %v1523_v31 }
 0x1d2   :  { %v895_v49 = vpop.f32.mrb[110].mxu0  ;;  %v1255_v36 = vpop.f32.mrb[110].mxu1 }
 0x1d3   :  { %1726 = vst.msk [vmem:[%s4817_s3 + $0x20] sm:$0xff] %vm1721_vm1, %v1676_v16  ;;  %v1628_v37 = vadd.f32 %v4420_v52, %v1572_v6  ;;  %v1524_v17 = vmax.f32 %v895_v49, %v1255_v36  ;;  %v2593_v38 = vpop.f32.mrb[111].mxu0  ;;  %v2772_v28 = vpop.f32.mrb[111].mxu1  ;;  %v4924_v16 = vmax.f32 %v3811_v0, %v3813_v1 }
 0x1d4   :  { %v4925_v38 = vmax.f32 %v3827_v11, %v3829_v12 }
 0x1d5   :  { %v1677_v56 = vmax.f32 %v1628_v37, 0.0  ;;  %v1573_v23 = vmax.f32 %v4922_v22, %v1524_v17 }
 0x1d6   :  { %v900_v5 = vpop.f32.mrb[112].mxu0  ;;  %v1260_v43 = vpop.f32.mrb[112].mxu1 }
 0x1d7   :  { %1727 = vst.msk [vmem:[%s4817_s3 + $0x28] sm:$0xff] %vm1721_vm1, %v1677_v56  ;;  %v1629_v44 = vadd.f32 %v4420_v52, %v1573_v23  ;;  %v1525_v8 = vmax.f32 %v900_v5, %v1260_v43  ;;  %v2596_v9 = vpop.f32.mrb[113].mxu0  ;;  %v2775_v45 = vpop.f32.mrb[113].mxu1 }
 0x1d9   :  { %v1678_v24 = vmax.f32 %v1629_v44, 0.0  ;;  %v1574_v10 = vmax.f32 %v4923_v26, %v1525_v8  ;;  %v4926_v44 = vmax.f32 %v3843_v21, %v3845_v25 }
 0x1da   :  { %v905_v29 = vpop.f32.mrb[114].mxu0  ;;  %v1265_v50 = vpop.f32.mrb[114].mxu1 }
 0x1db   :  { %1728 = vst.msk [vmem:[%s4817_s3 + $0x30] sm:$0xff] %vm1721_vm1, %v1678_v24  ;;  %v1630_v51 = vadd.f32 %v4420_v52, %v1574_v10  ;;  %v1526_v30 = vmax.f32 %v905_v29, %v1265_v50  ;;  %v2599_v31 = vpop.f32.mrb[115].mxu0  ;;  %v2778_v18 = vpop.f32.mrb[115].mxu1  ;;  %v4927_v29 = vmax.f32 %v3859_v34, %v3861_v35 }
 0x1dd   :  { %v1679_v15 = vmax.f32 %v1630_v51, 0.0  ;;  %v1575_v2 = vmax.f32 %v4924_v16, %v1526_v30  ;;  %v4928_v16 = vmax.f32 %v3875_v47, %v3877_v48 }
 0x1de   :  { %v910_v6 = vpop.f32.mrb[116].mxu0  ;;  %v1270_v57 = vpop.f32.mrb[116].mxu1 }
 0x1df   :  { %1729 = vst.msk [vmem:[%s4817_s3 + $0x38] sm:$0xff] %vm1721_vm1, %v1679_v15  ;;  %v1631_v58 = vadd.f32 %v4420_v52, %v1575_v2  ;;  %v1527_v49 = vmax.f32 %v910_v6, %v1270_v57  ;;  %v2602_v36 = vpop.f32.mrb[117].mxu0  ;;  %v2781_v37 = vpop.f32.mrb[117].mxu1 }
 0x1e0   :  { %v4929_v37 = vmax.f32 %v3891_v60, %v3893_v61 }
 0x1e1   :  { %v1680_v17 = vmax.f32 %v1631_v58, 0.0  ;;  %v1576_v28 = vmax.f32 %v4925_v38, %v1527_v49 }
 0x1e2   :  { %v915_v56 = vpop.f32.mrb[118].mxu0  ;;  %v1275_v0 = vpop.f32.mrb[118].mxu1 }
 0x1e3   :  { %1730 = vst.msk [vmem:[%s4817_s3 + $0x40] sm:$0xff] %vm1721_vm1, %v1680_v17  ;;  %v1632_v1 = vadd.f32 %v4420_v52, %v1576_v28  ;;  %v1528_v22 = vmax.f32 %v915_v56, %v1275_v0  ;;  %v2605_v23 = vpop.f32.mrb[119].mxu0  ;;  %v2784_v5 = vpop.f32.mrb[119].mxu1 }
 0x1e5   :  { %v1681_v43 = vmax.f32 %v1632_v1, 0.0  ;;  %v1577_v8 = vmax.f32 %v4926_v44, %v1528_v22  ;;  %v4930_v22 = vmax.f32 %v3907_v7, %v3909_v14 }
 0x1e6   :  { %v920_v9 = vpop.f32.mrb[120].mxu0  ;;  %v1280_v11 = vpop.f32.mrb[120].mxu1 }
 0x1e7   :  { %1731 = vst.msk [vmem:[%s4817_s3 + $0x48] sm:$0xff] %vm1721_vm1, %v1681_v43  ;;  %v1633_v12 = vadd.f32 %v4420_v52, %v1577_v8  ;;  %v1529_v45 = vmax.f32 %v920_v9, %v1280_v11  ;;  %v2608_v24 = vpop.f32.mrb[121].mxu0  ;;  %v2787_v26 = vpop.f32.mrb[121].mxu1  ;;  %v4931_v11 = vmax.f32 %v3923_v32, %v3925_v33 }
 0x1e9   :  { %v1682_v10 = vmax.f32 %v1633_v12, 0.0  ;;  %v1578_v50 = vmax.f32 %v4927_v29, %v1529_v45 }
 0x1ea   :  { %v925_v51 = vpop.f32.mrb[122].mxu0  ;;  %v1285_v21 = vpop.f32.mrb[122].mxu1 }
 0x1eb   :  { %1732 = vst.msk [vmem:[%s4817_s3 + $0x50] sm:$0xff] %vm1721_vm1, %v1682_v10  ;;  %v1634_v25 = vadd.f32 %v4420_v52, %v1578_v50  ;;  %v1530_v30 = vmax.f32 %v925_v51, %v1285_v21  ;;  %v2611_v31 = vpop.f32.mrb[123].mxu0  ;;  %v2790_v18 = vpop.f32.mrb[123].mxu1  ;;  %v4932_v50 = vmax.f32 %v3939_v54, %v3941_v55 }
 0x1ed   :  { %v1683_v15 = vmax.f32 %v1634_v25, 0.0  ;;  %v1579_v2 = vmax.f32 %v4928_v16, %v1530_v30 }
 0x1ee   :  { %v930_v6 = vpop.f32.mrb[124].mxu0  ;;  %v1290_v34 = vpop.f32.mrb[124].mxu1 }
 0x1ef   :  { %1733 = vst.msk [vmem:[%s4817_s3 + $0x58] sm:$0xff] %vm1721_vm1, %v1683_v15  ;;  %v1635_v35 = vadd.f32 %v4420_v52, %v1579_v2  ;;  %v1531_v57 = vmax.f32 %v930_v6, %v1290_v34  ;;  %v2614_v58 = vpop.f32.mrb[125].mxu0  ;;  %v2793_v49 = vpop.f32.mrb[125].mxu1  ;;  %v4933_v15 = vmax.f32 %v3955_v19, %v3957_v20 }
 0x1f0   :  { %v4934_v58 = vmax.f32 %v3971_v53, %v3973_v63 }
 0x1f1   :  { %v1684_v36 = vmax.f32 %v1635_v35, 0.0  ;;  %v1580_v17 = vmax.f32 %v4929_v37, %v1531_v57 }
 0x1f2   :  { %v935_v38 = vpop.f32.mrb[126].mxu0  ;;  %v1295_v47 = vpop.f32.mrb[126].mxu1 }
 0x1f3   :  { %1734 = vst.msk [vmem:[%s4817_s3 + $0x60] sm:$0xff] %vm1721_vm1, %v1684_v36  ;;  %v1636_v48 = vadd.f32 %v4420_v52, %v1580_v17  ;;  %v1532_v28 = vmax.f32 %v935_v38, %v1295_v47  ;;  %v2617_v56 = vpop.f32.mrb[127].mxu0  ;;  %v2796_v0 = vpop.f32.mrb[127].mxu1 }
 0x1f5   :  { %v1685_v1 = vmax.f32 %v1636_v48, 0.0  ;;  %v1581_v23 = vmax.f32 %v4930_v22, %v1532_v28  ;;  %v4935_v48 = vmax.f32 %v3987_v27, %v3989_v4 }
 0x1f6   :  { %v940_v5 = vpop.f32.mrb[128].mxu0  ;;  %v1300_v60 = vpop.f32.mrb[128].mxu1 }
 0x1f7   :  { %1735 = vst.msk [vmem:[%s4817_s3 + $0x68] sm:$0xff] %vm1721_vm1, %v1685_v1  ;;  %v1637_v61 = vadd.f32 %v4420_v52, %v1581_v23  ;;  %v1533_v43 = vmax.f32 %v940_v5, %v1300_v60  ;;  %v2620_v44 = vpop.f32.mrb[129].mxu0  ;;  %v2799_v8 = vpop.f32.mrb[129].mxu1  ;;  %v4936_v5 = vmax.f32 %v4003_v40, %v4005_v46 }
 0x1f9   :  { %v1686_v9 = vmax.f32 %v1637_v61, 0.0  ;;  %v1582_v12 = vmax.f32 %v4931_v11, %v1533_v43  ;;  %v4937_v11 = vmax.f32 %v4019_v62, %v4021_v41 }
 0x1fa   :  { %v945_v45 = vpop.f32.mrb[130].mxu0  ;;  %v1305_v7 = vpop.f32.mrb[130].mxu1 }
 0x1fb   :  { %1736 = vst.msk [vmem:[%s4817_s3 + $0x70] sm:$0xff] %vm1721_vm1, %v1686_v9  ;;  %v1638_v14 = vadd.f32 %v4420_v52, %v1582_v12  ;;  %v1534_v24 = vmax.f32 %v945_v45, %v1305_v7  ;;  %v2623_v26 = vpop.f32.mrb[131].mxu0  ;;  %v2802_v10 = vpop.f32.mrb[131].mxu1 }
 0x1fc   :  { %v4938_v10 = vmax.f32 %v4035_v39, %v4037_v3 }
 0x1fd   :  { %v1687_v29 = vmax.f32 %v1638_v14, 0.0  ;;  %v1583_v51 = vmax.f32 %v4932_v50, %v1534_v24 }
 0x1fe   :  { %v950_v21 = vpop.f32.mrb[132].mxu0  ;;  %v1310_v32 = vpop.f32.mrb[132].mxu1 }
 0x1ff   :  { %1737 = vst.msk [vmem:[%s4817_s3 + $0x78] sm:$0xff] %vm1721_vm1, %v1687_v29  ;;  %v1639_v33 = vadd.f32 %v4420_v52, %v1583_v51  ;;  %v1535_v25 = vmax.f32 %v950_v21, %v1310_v32  ;;  %v2626_v30 = vpop.f32.mrb[133].mxu0  ;;  %v2805_v31 = vpop.f32.mrb[133].mxu1 }
 0x201   :  { %v1688_v18 = vmax.f32 %v1639_v33, 0.0  ;;  %v1584_v16 = vmax.f32 %v4933_v15, %v1535_v25  ;;  %v4939_v25 = vmax.f32 %v4051_v13, %v4053_v42 }
 0x202   :  { %v955_v2 = vpop.f32.mrb[134].mxu0  ;;  %v1315_v54 = vpop.f32.mrb[134].mxu1 }
 0x203   :  { %1738 = vst.msk [vmem:[%s4817_s3 + $0x80] sm:$0xff] %vm1721_vm1, %v1688_v18  ;;  %v1640_v55 = vadd.f32 %v4420_v52, %v1584_v16  ;;  %v1536_v6 = vmax.f32 %v955_v2, %v1315_v54  ;;  %v2629_v34 = vpop.f32.mrb[135].mxu0  ;;  %v2808_v35 = vpop.f32.mrb[135].mxu1  ;;  %v4940_v54 = vld [vmem:[#allocation2_spill] sm:$0xff] }
 0x205   :  { %v1689_v57 = vmax.f32 %v1640_v55, 0.0  ;;  %v1585_v49 = vmax.f32 %v4934_v58, %v1536_v6  ;;  %v4941_v55 = vmax.f32 %v4067_v59, %v4940_v54 }
 0x206   :  { %v960_v36 = vpop.f32.mrb[136].mxu0  ;;  %v1320_v19 = vpop.f32.mrb[136].mxu1 }
 0x207   :  { %1739 = vst.msk [vmem:[%s4817_s3 + $0x88] sm:$0xff] %vm1721_vm1, %v1689_v57  ;;  %v1641_v20 = vadd.f32 %v4420_v52, %v1585_v49  ;;  %v1537_v37 = vmax.f32 %v960_v36, %v1320_v19  ;;  %v2632_v17 = vpop.f32.mrb[137].mxu0  ;;  %v2811_v38 = vpop.f32.mrb[137].mxu1  ;;  %v4942_v36 = vld [vmem:[#allocation3_spill] sm:$0xff]  ;;  %v4943_v19 = vld [vmem:[#allocation4_spill] sm:$0xff] }
 0x209   :  { %v1690_v47 = vmax.f32 %v1641_v20, 0.0  ;;  %v1586_v28 = vmax.f32 %v4935_v48, %v1537_v37  ;;  %v4944_v20 = vmax.f32 %v4942_v36, %v4943_v19 }
 0x20a   :  { %v965_v56 = vpop.f32.mrb[138].mxu0  ;;  %v1325_v53 = vpop.f32.mrb[138].mxu1 }
 0x20b   :  { %1740 = vst.msk [vmem:[%s4817_s3 + $0x90] sm:$0xff] %vm1721_vm1, %v1690_v47  ;;  %v1642_v63 = vadd.f32 %v4420_v52, %v1586_v28  ;;  %v1538_v0 = vmax.f32 %v965_v56, %v1325_v53  ;;  %v2635_v1 = vpop.f32.mrb[139].mxu0  ;;  %v2814_v22 = vpop.f32.mrb[139].mxu1  ;;  %v4945_v53 = vld [vmem:[#allocation5_spill] sm:$0xff] }
 0x20d   :  { %v1691_v23 = vmax.f32 %v1642_v63, 0.0  ;;  %v1587_v60 = vmax.f32 %v4936_v5, %v1538_v0  ;;  %v4946_v63 = vld [vmem:[#allocation6_spill] sm:$0xff] }
 0x20e   :  { %v970_v61 = vpop.f32.mrb[140].mxu0  ;;  %v1330_v27 = vpop.f32.mrb[140].mxu1  ;;  %v4947_v0 = vmax.f32 %v4945_v53, %v4946_v63 }
 0x20f   :  { %1741 = vst.msk [vmem:[%s4817_s3 + $0x98] sm:$0xff] %vm1721_vm1, %v1691_v23  ;;  %v1643_v4 = vadd.f32 %v4420_v52, %v1587_v60  ;;  %v1539_v43 = vmax.f32 %v970_v61, %v1330_v27  ;;  %v2638_v44 = vpop.f32.mrb[141].mxu0  ;;  %v2817_v8 = vpop.f32.mrb[141].mxu1 }
 0x210   :  { %v4949_v44 = vld [vmem:[#allocation8_spill] sm:$0xff] }
 0x211   :  { %v1692_v9 = vmax.f32 %v1643_v4, 0.0  ;;  %v1588_v12 = vmax.f32 %v4937_v11, %v1539_v43  ;;  %v4948_v43 = vld [vmem:[#allocation7_spill] sm:$0xff] }
 0x212   :  { %v975_v45 = vpop.f32.mrb[142].mxu0  ;;  %v1335_v40 = vpop.f32.mrb[142].mxu1  ;;  %v4950_v8 = vmax.f32 %v4948_v43, %v4949_v44 }
 0x213   :  { %1742 = vst.msk [vmem:[%s4817_s3 + $0xa0] sm:$0xff] %vm1721_vm1, %v1692_v9  ;;  %v1644_v46 = vadd.f32 %v4420_v52, %v1588_v12  ;;  %v1540_v7 = vmax.f32 %v975_v45, %v1335_v40  ;;  %v2641_v14 = vpop.f32.mrb[143].mxu0  ;;  %v2820_v24 = vpop.f32.mrb[143].mxu1 }
 0x214   :  { %v4951_v24 = vld [vmem:[#allocation9_spill] sm:$0xff] }
 0x215   :  { %v1693_v26 = vmax.f32 %v1644_v46, 0.0  ;;  %v1589_v29 = vmax.f32 %v4938_v10, %v1540_v7 }
 0x216   :  { %v980_v50 = vpop.f32.mrb[144].mxu0  ;;  %v1340_v62 = vpop.f32.mrb[144].mxu1 }
 0x217   :  { %1743 = vst.msk [vmem:[%s4817_s3 + $0xa8] sm:$0xff] %vm1721_vm1, %v1693_v26  ;;  %v1645_v41 = vadd.f32 %v4420_v52, %v1589_v29  ;;  %v1541_v51 = vmax.f32 %v980_v50, %v1340_v62  ;;  %v2644_v21 = vpop.f32.mrb[145].mxu0  ;;  %v2823_v32 = vpop.f32.mrb[145].mxu1  ;;  %v4952_v26 = vld [vmem:[#allocation10_spill] sm:$0xff] }
 0x218   :  { %v4953_v10 = vmax.f32 %v4951_v24, %v4952_v26 }
 0x219   :  { %v1694_v33 = vmax.f32 %v1645_v41, 0.0  ;;  %v1590_v30 = vmax.f32 %v4939_v25, %v1541_v51  ;;  %v4954_v25 = vld [vmem:[#allocation11_spill] sm:$0xff] }
 0x21a   :  { %v985_v31 = vpop.f32.mrb[146].mxu0  ;;  %v1345_v39 = vpop.f32.mrb[146].mxu1 }
 0x21b   :  { %1744 = vst.msk [vmem:[%s4817_s3 + $0xb0] sm:$0xff] %vm1721_vm1, %v1694_v33  ;;  %v1646_v3 = vadd.f32 %v4420_v52, %v1590_v30  ;;  %v1542_v18 = vmax.f32 %v985_v31, %v1345_v39  ;;  %v2647_v15 = vpop.f32.mrb[147].mxu0  ;;  %v2826_v16 = vpop.f32.mrb[147].mxu1  ;;  %v4955_v30 = vld [vmem:[#allocation12_spill] sm:$0xff] }
 0x21c   :  { %v4956_v31 = vmax.f32 %v4954_v25, %v4955_v30 }
 0x21d   :  { %v1695_v2 = vmax.f32 %v1646_v3, 0.0  ;;  %v1591_v6 = vmax.f32 %v4941_v55, %v1542_v18 }
 0x21e   :  { %v990_v34 = vpop.f32.mrb[148].mxu0  ;;  %v1350_v13 = vpop.f32.mrb[148].mxu1 }
 0x21f   :  { %1745 = vst.msk [vmem:[%s4817_s3 + $0xb8] sm:$0xff] %vm1721_vm1, %v1695_v2  ;;  %v1647_v42 = vadd.f32 %v4420_v52, %v1591_v6  ;;  %v1543_v35 = vmax.f32 %v990_v34, %v1350_v13  ;;  %v2650_v57 = vpop.f32.mrb[149].mxu0  ;;  %v2829_v58 = vpop.f32.mrb[149].mxu1  ;;  %v4957_v6 = vld [vmem:[#allocation13_spill] sm:$0xff]  ;;  %v4958_v34 = vld [vmem:[#allocation14_spill] sm:$0xff] }
 0x220   :  { %v4959_v13 = vmax.f32 %v4957_v6, %v4958_v34 }
 0x221   :  { %v1696_v49 = vmax.f32 %v1647_v42, 0.0  ;;  %v1592_v37 = vmax.f32 %v4944_v20, %v1543_v35 }
 0x222   :  { %v995_v17 = vpop.f32.mrb[150].mxu0  ;;  %v1355_v59 = vpop.f32.mrb[150].mxu1 }
 0x223   :  { %1746 = vst.msk [vmem:[%s4817_s3 + $0xc0] sm:$0xff] %vm1721_vm1, %v1696_v49  ;;  %v1648_v38 = vadd.f32 %v4420_v52, %v1592_v37  ;;  %v1544_v47 = vmax.f32 %v995_v17, %v1355_v59  ;;  %v2653_v48 = vpop.f32.mrb[151].mxu0  ;;  %v2832_v28 = vpop.f32.mrb[151].mxu1  ;;  %v4960_v37 = vld [vmem:[#allocation15_spill] sm:$0xff]  ;;  %v4961_v17 = vld [vmem:[#allocation16_spill] sm:$0xff] }
 0x224   :  { %v4962_v59 = vmax.f32 %v4960_v37, %v4961_v17 }
 0x225   :  { %v1697_v56 = vmax.f32 %v1648_v38, 0.0  ;;  %v1593_v1 = vmax.f32 %v4947_v0, %v1544_v47 }
 0x226   :  { %v1000_v22 = vpop.f32.mrb[152].mxu0  ;;  %v1360_v23 = vpop.f32.mrb[152].mxu1 }
 0x227   :  { %1747 = vst.msk [vmem:[%s4817_s3 + $0xc8] sm:$0xff] %vm1721_vm1, %v1697_v56  ;;  %v1649_v5 = vadd.f32 %v4420_v52, %v1593_v1  ;;  %v1545_v60 = vmax.f32 %v1000_v22, %v1360_v23  ;;  %v2656_v61 = vpop.f32.mrb[153].mxu0  ;;  %v2835_v27 = vpop.f32.mrb[153].mxu1  ;;  %v4963_v1 = vld [vmem:[#allocation17_spill] sm:$0xff]  ;;  %v4964_v22 = vld [vmem:[#allocation18_spill] sm:$0xff] }
 0x228   :  { %v4965_v23 = vmax.f32 %v4963_v1, %v4964_v22 }
 0x229   :  { %v1698_v4 = vmax.f32 %v1649_v5, 0.0  ;;  %v1594_v9 = vmax.f32 %v4950_v8, %v1545_v60 }
 0x22a   :  { %v1005_v11 = vpop.f32.mrb[154].mxu0  ;;  %v1365_v12 = vpop.f32.mrb[154].mxu1 }
 0x22b   :  { %1748 = vst.msk [vmem:[%s4817_s3 + $0xd0] sm:$0xff] %vm1721_vm1, %v1698_v4  ;;  %v1650_v45 = vadd.f32 %v4420_v52, %v1594_v9  ;;  %v1546_v40 = vmax.f32 %v1005_v11, %v1365_v12  ;;  %v2659_v46 = vpop.f32.mrb[155].mxu0  ;;  %v2838_v7 = vpop.f32.mrb[155].mxu1  ;;  %v4966_v9 = vld [vmem:[#allocation19_spill] sm:$0xff]  ;;  %v4967_v11 = vld [vmem:[#allocation20_spill] sm:$0xff] }
 0x22c   :  { %v4968_v12 = vmax.f32 %v4966_v9, %v4967_v11 }
 0x22d   :  { %v1699_v14 = vmax.f32 %v1650_v45, 0.0  ;;  %v1595_v29 = vmax.f32 %v4953_v10, %v1546_v40 }
 0x22e   :  { %v1010_v50 = vpop.f32.mrb[156].mxu0  ;;  %v1370_v62 = vpop.f32.mrb[156].mxu1 }
 0x22f   :  { %1749 = vst.msk [vmem:[%s4817_s3 + $0xd8] sm:$0xff] %vm1721_vm1, %v1699_v14  ;;  %v1651_v41 = vadd.f32 %v4420_v52, %v1595_v29  ;;  %v1547_v51 = vmax.f32 %v1010_v50, %v1370_v62  ;;  %v2662_v21 = vpop.f32.mrb[157].mxu0  ;;  %v2841_v32 = vpop.f32.mrb[157].mxu1  ;;  %v4969_v29 = vld [vmem:[#allocation21_spill] sm:$0xff]  ;;  %v4970_v50 = vld [vmem:[#allocation22_spill] sm:$0xff] }
 0x230   :  { %v4971_v62 = vmax.f32 %v4969_v29, %v4970_v50 }
 0x231   :  { %v1700_v33 = vmax.f32 %v1651_v41, 0.0  ;;  %v1596_v39 = vmax.f32 %v4956_v31, %v1547_v51 }
 0x232   :  { %v1015_v3 = vpop.f32.mrb[158].mxu0  ;;  %v1375_v18 = vpop.f32.mrb[158].mxu1 }
 0x233   :  { %1750 = vst.msk [vmem:[%s4817_s3 + $0xe0] sm:$0xff] %vm1721_vm1, %v1700_v33  ;;  %v1652_v15 = vadd.f32 %v4420_v52, %v1596_v39  ;;  %v1548_v16 = vmax.f32 %v1015_v3, %v1375_v18  ;;  %v2665_v2 = vpop.f32.mrb[159].mxu0  ;;  %v2844_v54 = vpop.f32.mrb[159].mxu1  ;;  %v4972_v39 = vld [vmem:[#allocation23_spill] sm:$0xff]  ;;  %v4973_v3 = vld [vmem:[#allocation24_spill] sm:$0xff] }
 0x234   :  { %v4974_v18 = vmax.f32 %v4972_v39, %v4973_v3 }
 0x235   :  { %v1701_v55 = vmax.f32 %v1652_v15, 0.0  ;;  %v1597_v42 = vmax.f32 %v4959_v13, %v1548_v16 }
 0x236   :  { %v1020_v35 = vpop.f32.mrb[160].mxu0  ;;  %v1380_v57 = vpop.f32.mrb[160].mxu1 }
 0x237   :  { %1751 = vst.msk [vmem:[%s4817_s3 + $0xe8] sm:$0xff] %vm1721_vm1, %v1701_v55  ;;  %v1653_v58 = vadd.f32 %v4420_v52, %v1597_v42  ;;  %v1549_v49 = vmax.f32 %v1020_v35, %v1380_v57  ;;  %v2668_v36 = vpop.f32.mrb[161].mxu0  ;;  %v2847_v19 = vpop.f32.mrb[161].mxu1  ;;  %v4975_v42 = vld [vmem:[#allocation25_spill] sm:$0xff]  ;;  %v4976_v35 = vld [vmem:[#allocation26_spill] sm:$0xff] }
 0x238   :  { %v4977_v57 = vmax.f32 %v4975_v42, %v4976_v35 }
 0x239   :  { %v1702_v20 = vmax.f32 %v1653_v58, 0.0  ;;  %v1598_v38 = vmax.f32 %v4962_v59, %v1549_v49 }
 0x23a   :  { %v1025_v47 = vpop.f32.mrb[162].mxu0  ;;  %v1385_v48 = vpop.f32.mrb[162].mxu1 }
 0x23b   :  { %1752 = vst.msk [vmem:[%s4817_s3 + $0xf0] sm:$0xff] %vm1721_vm1, %v1702_v20  ;;  %v1654_v28 = vadd.f32 %v4420_v52, %v1598_v38  ;;  %v1550_v56 = vmax.f32 %v1025_v47, %v1385_v48  ;;  %v2671_v53 = vpop.f32.mrb[163].mxu0  ;;  %v2850_v63 = vpop.f32.mrb[163].mxu1  ;;  %v4978_v38 = vld [vmem:[#allocation27_spill] sm:$0xff]  ;;  %v4979_v47 = vld [vmem:[#allocation28_spill] sm:$0xff] }
 0x23c   :  { %v4980_v48 = vmax.f32 %v4978_v38, %v4979_v47 }
 0x23d   :  { %v1703_v0 = vmax.f32 %v1654_v28, 0.0  ;;  %v1599_v5 = vmax.f32 %v4965_v23, %v1550_v56 }
 0x23e   :  { %v1030_v60 = vpop.f32.mrb[164].mxu0  ;;  %v1390_v61 = vpop.f32.mrb[164].mxu1 }
 0x23f   :  { %1753 = vst.msk [vmem:[%s4817_s3 + $0xf8] sm:$0xff] %vm1721_vm1, %v1703_v0  ;;  %v1655_v27 = vadd.f32 %v4420_v52, %v1599_v5  ;;  %v1551_v4 = vmax.f32 %v1030_v60, %v1390_v61  ;;  %v2674_v43 = vpop.f32.mrb[165].mxu0  ;;  %v2853_v44 = vpop.f32.mrb[165].mxu1  ;;  %v4981_v5 = vld [vmem:[#allocation29_spill] sm:$0xff]  ;;  %v4982_v60 = vld [vmem:[#allocation30_spill] sm:$0xff] }
 0x240   :  { %v4983_v61 = vmax.f32 %v4981_v5, %v4982_v60 }
 0x241   :  { %v1704_v8 = vmax.f32 %v1655_v27, 0.0  ;;  %v1600_v45 = vmax.f32 %v4968_v12, %v1551_v4 }
 0x242   :  { %v1035_v40 = vpop.f32.mrb[166].mxu0  ;;  %v1395_v46 = vpop.f32.mrb[166].mxu1 }
 0x243   :  { %1754 = vst.msk [vmem:[%s4817_s3 + $0x100] sm:$0xff] %vm1721_vm1, %v1704_v8  ;;  %v1656_v7 = vadd.f32 %v4420_v52, %v1600_v45  ;;  %v1552_v14 = vmax.f32 %v1035_v40, %v1395_v46  ;;  %v2677_v24 = vpop.f32.mrb[167].mxu0  ;;  %v2856_v26 = vpop.f32.mrb[167].mxu1  ;;  %v4984_v45 = vld [vmem:[#allocation31_spill] sm:$0xff]  ;;  %v4985_v40 = vld [vmem:[#allocation32_spill] sm:$0xff] }
 0x244   :  { %v4986_v46 = vmax.f32 %v4984_v45, %v4985_v40 }
 0x245   :  { %v1705_v10 = vmax.f32 %v1656_v7, 0.0  ;;  %v1601_v41 = vmax.f32 %v4971_v62, %v1552_v14 }
 0x246   :  { %v1040_v51 = vpop.f32.mrb[168].mxu0  ;;  %v1400_v21 = vpop.f32.mrb[168].mxu1 }
 0x247   :  { %1755 = vst.msk [vmem:[%s4817_s3 + $0x108] sm:$0xff] %vm1721_vm1, %v1705_v10  ;;  %v1657_v32 = vadd.f32 %v4420_v52, %v1601_v41  ;;  %v1553_v33 = vmax.f32 %v1040_v51, %v1400_v21  ;;  %v2680_v25 = vpop.f32.mrb[169].mxu0  ;;  %v2859_v30 = vpop.f32.mrb[169].mxu1  ;;  %v4987_v41 = vld [vmem:[#allocation33_spill] sm:$0xff]  ;;  %v4988_v51 = vld [vmem:[#allocation34_spill] sm:$0xff] }
 0x248   :  { %v4989_v21 = vmax.f32 %v4987_v41, %v4988_v51 }
 0x249   :  { %v1706_v31 = vmax.f32 %v1657_v32, 0.0  ;;  %v1602_v15 = vmax.f32 %v4974_v18, %v1553_v33 }
 0x24a   :  { %v1045_v16 = vpop.f32.mrb[170].mxu0  ;;  %v1405_v2 = vpop.f32.mrb[170].mxu1 }
 0x24b   :  { %1756 = vst.msk [vmem:[%s4817_s3 + $0x110] sm:$0xff] %vm1721_vm1, %v1706_v31  ;;  %v1658_v54 = vadd.f32 %v4420_v52, %v1602_v15  ;;  %v1554_v55 = vmax.f32 %v1045_v16, %v1405_v2  ;;  %v2683_v6 = vpop.f32.mrb[171].mxu0  ;;  %v2862_v34 = vpop.f32.mrb[171].mxu1  ;;  %v4990_v15 = vld [vmem:[#allocation35_spill] sm:$0xff]  ;;  %v4991_v16 = vld [vmem:[#allocation36_spill] sm:$0xff] }
 0x24c   :  { %v4992_v2 = vmax.f32 %v4990_v15, %v4991_v16 }
 0x24d   :  { %v1707_v13 = vmax.f32 %v1658_v54, 0.0  ;;  %v1603_v58 = vmax.f32 %v4977_v57, %v1554_v55 }
 0x24e   :  { %v1050_v49 = vpop.f32.mrb[172].mxu0  ;;  %v1410_v36 = vpop.f32.mrb[172].mxu1 }
 0x24f   :  { %1757 = vst.msk [vmem:[%s4817_s3 + $0x118] sm:$0xff] %vm1721_vm1, %v1707_v13  ;;  %v1659_v19 = vadd.f32 %v4420_v52, %v1603_v58  ;;  %v1555_v20 = vmax.f32 %v1050_v49, %v1410_v36  ;;  %v2686_v37 = vpop.f32.mrb[173].mxu0  ;;  %v2865_v17 = vpop.f32.mrb[173].mxu1  ;;  %v4993_v58 = vld [vmem:[#allocation37_spill] sm:$0xff]  ;;  %v4994_v49 = vld [vmem:[#allocation38_spill] sm:$0xff] }
 0x250   :  { %v4995_v36 = vmax.f32 %v4993_v58, %v4994_v49 }
 0x251   :  { %v1708_v59 = vmax.f32 %v1659_v19, 0.0  ;;  %v1604_v28 = vmax.f32 %v4980_v48, %v1555_v20 }
 0x252   :  { %v1055_v56 = vpop.f32.mrb[174].mxu0  ;;  %v1415_v53 = vpop.f32.mrb[174].mxu1 }
 0x253   :  { %1758 = vst.msk [vmem:[%s4817_s3 + $0x120] sm:$0xff] %vm1721_vm1, %v1708_v59  ;;  %v1660_v63 = vadd.f32 %v4420_v52, %v1604_v28  ;;  %v1556_v0 = vmax.f32 %v1055_v56, %v1415_v53  ;;  %v2689_v1 = vpop.f32.mrb[175].mxu0  ;;  %v2868_v22 = vpop.f32.mrb[175].mxu1  ;;  %v4996_v28 = vld [vmem:[#allocation39_spill] sm:$0xff]  ;;  %v4997_v56 = vld [vmem:[#allocation40_spill] sm:$0xff] }
 0x254   :  { %v4998_v53 = vmax.f32 %v4996_v28, %v4997_v56 }
 0x255   :  { %v1709_v23 = vmax.f32 %v1660_v63, 0.0  ;;  %v1605_v27 = vmax.f32 %v4983_v61, %v1556_v0 }
 0x256   :  { %v1060_v4 = vpop.f32.mrb[176].mxu0  ;;  %v1420_v43 = vpop.f32.mrb[176].mxu1 }
 0x257   :  { %1759 = vst.msk [vmem:[%s4817_s3 + $0x128] sm:$0xff] %vm1721_vm1, %v1709_v23  ;;  %v1661_v44 = vadd.f32 %v4420_v52, %v1605_v27  ;;  %v1557_v8 = vmax.f32 %v1060_v4, %v1420_v43  ;;  %v2692_v9 = vpop.f32.mrb[177].mxu0  ;;  %v2871_v11 = vpop.f32.mrb[177].mxu1  ;;  %v4999_v27 = vld [vmem:[#allocation41_spill] sm:$0xff]  ;;  %v5000_v4 = vld [vmem:[#allocation42_spill] sm:$0xff] }
 0x258   :  { %v5001_v43 = vmax.f32 %v4999_v27, %v5000_v4 }
 0x259   :  { %v1710_v12 = vmax.f32 %v1661_v44, 0.0  ;;  %v1606_v7 = vmax.f32 %v4986_v46, %v1557_v8 }
 0x25a   :  { %v1065_v14 = vpop.f32.mrb[178].mxu0  ;;  %v1425_v24 = vpop.f32.mrb[178].mxu1 }
 0x25b   :  { %1760 = vst.msk [vmem:[%s4817_s3 + $0x130] sm:$0xff] %vm1721_vm1, %v1710_v12  ;;  %v1662_v26 = vadd.f32 %v4420_v52, %v1606_v7  ;;  %v1558_v10 = vmax.f32 %v1065_v14, %v1425_v24  ;;  %v2695_v29 = vpop.f32.mrb[179].mxu0  ;;  %v2874_v50 = vpop.f32.mrb[179].mxu1  ;;  %v5002_v7 = vld [vmem:[#allocation43_spill] sm:$0xff]  ;;  %v5003_v14 = vld [vmem:[#allocation44_spill] sm:$0xff] }
 0x25c   :  { %v5004_v24 = vmax.f32 %v5002_v7, %v5003_v14 }
 0x25d   :  { %v1711_v62 = vmax.f32 %v1662_v26, 0.0  ;;  %v1607_v32 = vmax.f32 %v4989_v21, %v1558_v10 }
 0x25e   :  { %v1070_v33 = vpop.f32.mrb[180].mxu0  ;;  %v1430_v25 = vpop.f32.mrb[180].mxu1 }
 0x25f   :  { %1761 = vst.msk [vmem:[%s4817_s3 + $0x138] sm:$0xff] %vm1721_vm1, %v1711_v62  ;;  %v1663_v30 = vadd.f32 %v4420_v52, %v1607_v32  ;;  %v1559_v31 = vmax.f32 %v1070_v33, %v1430_v25  ;;  %v2698_v39 = vpop.f32.mrb[181].mxu0  ;;  %v2877_v3 = vpop.f32.mrb[181].mxu1  ;;  %v5005_v32 = vld [vmem:[#allocation45_spill] sm:$0xff]  ;;  %v5006_v33 = vld [vmem:[#allocation46_spill] sm:$0xff] }
 0x260   :  { %v5007_v25 = vmax.f32 %v5005_v32, %v5006_v33 }
 0x261   :  { %v1712_v18 = vmax.f32 %v1663_v30, 0.0  ;;  %v1608_v54 = vmax.f32 %v4992_v2, %v1559_v31 }
 0x262   :  { %v1075_v55 = vpop.f32.mrb[182].mxu0  ;;  %v1435_v6 = vpop.f32.mrb[182].mxu1 }
 0x263   :  { %1762 = vst.msk [vmem:[%s4817_s3 + $0x140] sm:$0xff] %vm1721_vm1, %v1712_v18  ;;  %v1664_v34 = vadd.f32 %v4420_v52, %v1608_v54  ;;  %v1560_v13 = vmax.f32 %v1075_v55, %v1435_v6  ;;  %v2701_v42 = vpop.f32.mrb[183].mxu0  ;;  %v2880_v35 = vpop.f32.mrb[183].mxu1  ;;  %v5008_v54 = vld [vmem:[#allocation47_spill] sm:$0xff]  ;;  %v5009_v55 = vld [vmem:[#allocation48_spill] sm:$0xff] }
 0x264   :  { %v5010_v6 = vmax.f32 %v5008_v54, %v5009_v55 }
 0x265   :  { %v1713_v57 = vmax.f32 %v1664_v34, 0.0  ;;  %v1609_v19 = vmax.f32 %v4995_v36, %v1560_v13 }
 0x266   :  { %v1080_v20 = vpop.f32.mrb[184].mxu0  ;;  %v1440_v37 = vpop.f32.mrb[184].mxu1 }
 0x267   :  { %1763 = vst.msk [vmem:[%s4817_s3 + $0x148] sm:$0xff] %vm1721_vm1, %v1713_v57  ;;  %v1665_v17 = vadd.f32 %v4420_v52, %v1609_v19  ;;  %v1561_v59 = vmax.f32 %v1080_v20, %v1440_v37  ;;  %v2704_v38 = vpop.f32.mrb[185].mxu0  ;;  %v2883_v47 = vpop.f32.mrb[185].mxu1  ;;  %v5011_v19 = vld [vmem:[#allocation49_spill] sm:$0xff]  ;;  %v5012_v20 = vld [vmem:[#allocation50_spill] sm:$0xff] }
 0x268   :  { %v5013_v37 = vmax.f32 %v5011_v19, %v5012_v20 }
 0x269   :  { %v1714_v48 = vmax.f32 %v1665_v17, 0.0  ;;  %v1610_v63 = vmax.f32 %v4998_v53, %v1561_v59 }
 0x26a   :  { %v1085_v0 = vpop.f32.mrb[186].mxu0  ;;  %v1445_v1 = vpop.f32.mrb[186].mxu1 }
 0x26b   :  { %1764 = vst.msk [vmem:[%s4817_s3 + $0x150] sm:$0xff] %vm1721_vm1, %v1714_v48  ;;  %v1666_v22 = vadd.f32 %v4420_v52, %v1610_v63  ;;  %v1562_v23 = vmax.f32 %v1085_v0, %v1445_v1  ;;  %v2707_v5 = vpop.f32.mrb[187].mxu0  ;;  %v2886_v60 = vpop.f32.mrb[187].mxu1 }
 0x26d   :  { %v1715_v61 = vmax.f32 %v1666_v22, 0.0  ;;  %v1611_v44 = vmax.f32 %v5001_v43, %v1562_v23 }
 0x26e   :  { %v1090_v8 = vpop.f32.mrb[188].mxu0  ;;  %v1450_v9 = vpop.f32.mrb[188].mxu1 }
 0x26f   :  { %1765 = vst.msk [vmem:[%s4817_s3 + $0x158] sm:$0xff] %vm1721_vm1, %v1715_v61  ;;  %v1667_v11 = vadd.f32 %v4420_v52, %v1611_v44  ;;  %v1563_v12 = vmax.f32 %v1090_v8, %v1450_v9  ;;  %v2710_v45 = vpop.f32.mrb[189].mxu0  ;;  %v2889_v40 = vpop.f32.mrb[189].mxu1 }
 0x271   :  { %v1716_v46 = vmax.f32 %v1667_v11, 0.0  ;;  %v1612_v26 = vmax.f32 %v5004_v24, %v1563_v12 }
 0x272   :  { %v1095_v10 = vpop.f32.mrb[190].mxu0  ;;  %v1455_v29 = vpop.f32.mrb[190].mxu1 }
 0x273   :  { %1766 = vst.msk [vmem:[%s4817_s3 + $0x160] sm:$0xff] %vm1721_vm1, %v1716_v46  ;;  %v1668_v50 = vadd.f32 %v4420_v52, %v1612_v26  ;;  %v1564_v62 = vmax.f32 %v1095_v10, %v1455_v29  ;;  %v2713_v41 = vpop.f32.mrb[191].mxu0  ;;  %v2892_v51 = vpop.f32.mrb[191].mxu1 }
 0x275   :  { %v1717_v21 = vmax.f32 %v1668_v50, 0.0  ;;  %v1613_v30 = vmax.f32 %v5007_v25, %v1564_v62 }
 0x276   :  { %v1100_v31 = vpop.f32.mrb[192].mxu0  ;;  %v1460_v39 = vpop.f32.mrb[192].mxu1 }
 0x277   :  { %1767 = vst.msk [vmem:[%s4817_s3 + $0x168] sm:$0xff] %vm1721_vm1, %v1717_v21  ;;  %v1669_v3 = vadd.f32 %v4420_v52, %v1613_v30  ;;  %v1565_v18 = vmax.f32 %v1100_v31, %v1460_v39  ;;  %v2716_v15 = vpop.f32.mrb[193].mxu0  ;;  %v2895_v16 = vpop.f32.mrb[193].mxu1 }
 0x279   :  { %v1718_v2 = vmax.f32 %v1669_v3, 0.0  ;;  %v1614_v34 = vmax.f32 %v5010_v6, %v1565_v18 }
 0x27a   :  { %v1105_v13 = vpop.f32.mrb[194].mxu0  ;;  %v1465_v42 = vpop.f32.mrb[194].mxu1 }
 0x27b   :  { %1768 = vst.msk [vmem:[%s4817_s3 + $0x170] sm:$0xff] %vm1721_vm1, %v1718_v2  ;;  %v1670_v35 = vadd.f32 %v4420_v52, %v1614_v34  ;;  %v1566_v57 = vmax.f32 %v1105_v13, %v1465_v42  ;;  %v2719_v58 = vpop.f32.mrb[195].mxu0  ;;  %v2898_v49 = vpop.f32.mrb[195].mxu1 }
 0x27d   :  { %v1719_v36 = vmax.f32 %v1670_v35, 0.0  ;;  %v1615_v17 = vmax.f32 %v5013_v37, %v1566_v57 }
 0x27f   :  { %1769 = vst.msk [vmem:[%s4817_s3 + $0x178] sm:$0xff] %vm1721_vm1, %v1719_v36  ;;  %v1671_v59 = vadd.f32 %v4420_v52, %v1615_v17 }
 0x281   :  { %v1720_v38 = vmax.f32 %v1671_v59, 0.0 }
 0x283   :  { %1770 = vst.msk [vmem:[%s4817_s3 + $0x180] sm:$0xff] %vm1721_vm1, %v1720_v38 }

// kernel: _lambda_.4
= control target key start
LH: loop header
LB: loop body
LE: loop exit
PB: predicated region body
PF: predicated region fallthrough
CT: control target
= control target key end

     0   :  { %vm547_vm0 = vcmask 130048   ;;  %vm554_vm1 = vcmask 123904   ;;  %s1413_s1 = inlined_call_operand.vmem [shape: f32[256,16], index: 1, kind: input, shape index: {}]   ;;  %s1414_s0 = inlined_call_operand.vmem [shape: f32[4,50,256], index: 0, kind: input, shape index: {}]   ;;  %s1415_s2 = inlined_call_operand.vmem [shape: f32[1,16], index: 2, kind: input, shape index: {}]   ;;  %s1416_s3 = inlined_call_operand.vmem [shape: f32[50,16], index: 3, kind: output, shape index: {}]  }
   0x1   :  { %v30_v0 = vld [vmem:[%s1413_s1 + $0x80] sm:$0xff]  ;;  %v31_v1 = vld [vmem:[%s1413_s1 + $0x88] sm:$0xff]  ;;  %v32_v5 = vld [vmem:[%s1413_s1 + $0x90] sm:$0xff] }
   0x2   :  { %v14_v2 = vld [vmem:[%s1413_s1] sm:$0xff]  ;;  %v972_v3 = vpack.c.bf16 %v31_v1, %v30_v0  ;;  %v15_v4 = vld [vmem:[%s1413_s1 + $0x8] sm:$0xff]  ;;  %v33_v6 = vld [vmem:[%s1413_s1 + $0x98] sm:$0xff] }
   0x3   :  { %v983_v7 = vpack.c.bf16 %v15_v4, %v14_v2  ;;  %v985_v8 = vpack.c.bf16 %v33_v6, %v32_v5  ;;  %v16_v9 = vld [vmem:[%s1413_s1 + $0x10] sm:$0xff]  ;;  %v17_v10 = vld [vmem:[%s1413_s1 + $0x18] sm:$0xff]  ;;  %v34_v11 = vld [vmem:[%s1413_s1 + $0xa0] sm:$0xff] }
   0x4   :  { %816 = vmatprep.subr.bf16.mxu0 %v972_v3  ;;  %848 = vmatprep.subr.bf16.mxu1 %v972_v3  ;;  %v35_v12 = vld [vmem:[%s1413_s1 + $0xa8] sm:$0xff]  ;;  %v1003_v13 = vpack.c.bf16 %v17_v10, %v16_v9  ;;  %v18_v15 = vld [vmem:[%s1413_s1 + $0x20] sm:$0xff]  ;;  %v36_v17 = vld [vmem:[%s1413_s1 + $0xb0] sm:$0xff] }
   0x5   :  { %818 = vmatpush3.bf16.msra.mxu0 %v983_v7  ;;  %850 = vmatpush3.bf16.msra.mxu1 %v983_v7  ;;  %v1007_v14 = vpack.c.bf16 %v35_v12, %v34_v11  ;;  %v19_v16 = vld [vmem:[%s1413_s1 + $0x28] sm:$0xff]  ;;  %v37_v18 = vld [vmem:[%s1413_s1 + $0xb8] sm:$0xff]  ;;  %v20_v21 = vld [vmem:[%s1413_s1 + $0x30] sm:$0xff] }
   0x6   :  { %820 = vmatprep.subr.bf16.mxu0 %v985_v8  ;;  %852 = vmatprep.subr.bf16.mxu1 %v985_v8  ;;  %v1023_v19 = vpack.c.bf16 %v19_v16, %v18_v15  ;;  %v1027_v20 = vpack.c.bf16 %v37_v18, %v36_v17  ;;  %v21_v22 = vld [vmem:[%s1413_s1 + $0x38] sm:$0xff]  ;;  %v38_v23 = vld [vmem:[%s1413_s1 + $0xc0] sm:$0xff]  ;;  %v39_v24 = vld [vmem:[%s1413_s1 + $0xc8] sm:$0xff] }
   0x7   :  { %v47_v25 = vld [vmem:[%s1414_s0 + $0x8] sm:$0xff]  ;;  %v561_v26 = vld [vmem:[%s1414_s0 + $0x78] sm:$0xff]  ;;  %v1049_v27 = vpack.c.bf16 %v21_v22, %v20_v21  ;;  %v1053_v28 = vpack.c.bf16 %v39_v24, %v38_v23  ;;  %v22_v29 = vld [vmem:[%s1413_s1 + $0x40] sm:$0xff] }
   0x8   :  { %124 = vmatprep.mubr.f32.mxu0 %v47_v25  ;;  %v23_v30 = vld [vmem:[%s1413_s1 + $0x48] sm:$0xff]  ;;  %v40_v31 = vld [vmem:[%s1413_s1 + $0xd0] sm:$0xff]  ;;  %v41_v32 = vld [vmem:[%s1413_s1 + $0xd8] sm:$0xff]  ;;  %239 = vmatprep.mubr.f32.mxu1 %v561_v26 }
   0x9   :  { %822 = vmatpush3.bf16.msra.mxu0 %v1003_v13  ;;  %854 = vmatpush3.bf16.msra.mxu1 %v1003_v13  ;;  %v1069_v33 = vpack.c.bf16 %v23_v30, %v22_v29  ;;  %v1073_v34 = vpack.c.bf16 %v41_v32, %v40_v31  ;;  %v24_v35 = vld [vmem:[%s1413_s1 + $0x50] sm:$0xff]  ;;  %v25_v36 = vld [vmem:[%s1413_s1 + $0x58] sm:$0xff]  ;;  %v42_v37 = vld [vmem:[%s1413_s1 + $0xe0] sm:$0xff] }
   0xa   :  { %824 = vmatprep.subr.bf16.mxu0 %v1007_v14  ;;  %856 = vmatprep.subr.bf16.mxu1 %v1007_v14  ;;  %v43_v38 = vld [vmem:[%s1413_s1 + $0xe8] sm:$0xff]  ;;  %v1089_v39 = vpack.c.bf16 %v25_v36, %v24_v35  ;;  %v26_v41 = vld [vmem:[%s1413_s1 + $0x60] sm:$0xff]  ;;  %v44_v43 = vld [vmem:[%s1413_s1 + $0xf0] sm:$0xff] }
   0xb   :  { %v1093_v40 = vpack.c.bf16 %v43_v38, %v42_v37  ;;  %v27_v42 = vld [vmem:[%s1413_s1 + $0x68] sm:$0xff]  ;;  %v45_v44 = vld [vmem:[%s1413_s1 + $0xf8] sm:$0xff]  ;;  %v28_v47 = vld [vmem:[%s1413_s1 + $0x70] sm:$0xff] }
   0xc   :  { %v1109_v45 = vpack.c.bf16 %v27_v42, %v26_v41  ;;  %v1113_v46 = vpack.c.bf16 %v45_v44, %v44_v43  ;;  %v29_v48 = vld [vmem:[%s1413_s1 + $0x78] sm:$0xff]  ;;  %v46_v50 = vld [vmem:[%s1414_s0] sm:$0xff]  ;;  %v560_v51 = vld [vmem:[%s1414_s0 + $0x70] sm:$0xff] }
   0xd   :  { %826 = vmatpush3.bf16.msra.mxu0 %v1023_v19  ;;  %858 = vmatpush3.bf16.msra.mxu1 %v1023_v19  ;;  %v1123_v49 = vpack.c.bf16 %v29_v48, %v28_v47  ;;  %v49_v52 = vld [vmem:[%s1414_s0 + $0x18] sm:$0xff]  ;;  %v563_v53 = vld [vmem:[%s1414_s0 + $0x88] sm:$0xff]  ;;  %v48_v54 = vld [vmem:[%s1414_s0 + $0x10] sm:$0xff] }
   0xe   :  { %828 = vmatprep.subr.bf16.mxu0 %v1027_v20  ;;  %860 = vmatprep.subr.bf16.mxu1 %v1027_v20  ;;  %v562_v55 = vld [vmem:[%s1414_s0 + $0x80] sm:$0xff]  ;;  %v51_v56 = vld [vmem:[%s1414_s0 + $0x28] sm:$0xff]  ;;  %v565_v57 = vld [vmem:[%s1414_s0 + $0x98] sm:$0xff] }
   0xf   :  { %v50_v58 = vld [vmem:[%s1414_s0 + $0x20] sm:$0xff]  ;;  %v564_v59 = vld [vmem:[%s1414_s0 + $0x90] sm:$0xff]  ;;  %v53_v60 = vld [vmem:[%s1414_s0 + $0x38] sm:$0xff] }
  0x10   :  { %v567_v61 = vld [vmem:[%s1414_s0 + $0xa8] sm:$0xff]  ;;  %v52_v62 = vld [vmem:[%s1414_s0 + $0x30] sm:$0xff]  ;;  %v566_v63 = vld [vmem:[%s1414_s0 + $0xa0] sm:$0xff] }
  0x11   :  { %830 = vmatpush3.bf16.msra.mxu0 %v1049_v27  ;;  %862 = vmatpush3.bf16.msra.mxu1 %v1049_v27  ;;  %v55_v0 = vld [vmem:[%s1414_s0 + $0x48] sm:$0xff]  ;;  %v569_v1 = vld [vmem:[%s1414_s0 + $0xb8] sm:$0xff]  ;;  %v54_v2 = vld [vmem:[%s1414_s0 + $0x40] sm:$0xff] }
  0x12   :  { %832 = vmatprep.subr.bf16.mxu0 %v1053_v28  ;;  %864 = vmatprep.subr.bf16.mxu1 %v1053_v28  ;;  %v57_v4 = vld [vmem:[%s1414_s0 + $0x58] sm:$0xff]  ;;  %v571_v5 = vld [vmem:[%s1414_s0 + $0xc8] sm:$0xff]  ;;  %v56_v6 = vld [vmem:[%s1414_s0 + $0x50] sm:$0xff] }
  0x13   :  { %v573_v9 = vld [vmem:[%s1414_s0 + $0xd8] sm:$0x3]  ;;  %v58_v10 = vld [vmem:[%s1414_s0 + $0x60] sm:$0x3]  ;;  %v572_v11 = vld [vmem:[%s1414_s0 + $0xd0] sm:$0x3] }
  0x14   :  { %v575_v12 = vld [vmem:[%s1414_s0 + $0xe8] sm:$0xff]  ;;  %v588_v15 = vld [vmem:[%s1414_s0 + $0x150] sm:$0xff]  ;;  %v577_v16 = vld [vmem:[%s1414_s0 + $0xf8] sm:$0xff] }
  0x15   :  { %834 = vmatpush3.bf16.msra.mxu0 %v1069_v33  ;;  %866 = vmatpush3.bf16.msra.mxu1 %v1069_v33  ;;  %v591_v17 = vld [vmem:[%s1414_s0 + $0x168] sm:$0xff]  ;;  %v576_v18 = vld [vmem:[%s1414_s0 + $0xf0] sm:$0xff]  ;;  %v593_v21 = vld [vmem:[%s1414_s0 + $0x178] sm:$0xff] }
  0x16   :  { %836 = vmatprep.subr.bf16.mxu0 %v1073_v34  ;;  %868 = vmatprep.subr.bf16.mxu1 %v1073_v34  ;;  %v578_v22 = vld [vmem:[%s1414_s0 + $0x100] sm:$0xff]  ;;  %v592_v23 = vld [vmem:[%s1414_s0 + $0x170] sm:$0xff]  ;;  %v581_v24 = vld [vmem:[%s1414_s0 + $0x118] sm:$0xff] }
  0x17   :  { %v595_v25 = vld [vmem:[%s1414_s0 + $0x188] sm:$0xff]  ;;  %v580_v26 = vld [vmem:[%s1414_s0 + $0x110] sm:$0xff]  ;;  %v597_v29 = vld [vmem:[%s1414_s0 + $0x198] sm:$0xff] }
  0x18   :  { %v582_v30 = vld [vmem:[%s1414_s0 + $0x120] sm:$0xff]  ;;  %v596_v31 = vld [vmem:[%s1414_s0 + $0x190] sm:$0xff]  ;;  %v585_v32 = vld [vmem:[%s1414_s0 + $0x138] sm:$0xff] }
  0x19   :  { %838 = vmatpush3.bf16.msra.mxu0 %v1089_v39  ;;  %870 = vmatpush3.bf16.msra.mxu1 %v1089_v39  ;;  %v598_v35 = vld [vmem:[%s1414_s0 + $0x1a0] sm:$0xff]  ;;  %v587_v36 = vld [vmem:[%s1414_s0 + $0x148] sm:$0x3]  ;;  %v601_v37 = vld [vmem:[%s1414_s0 + $0x1b8] sm:$0x3] }
  0x1a   :  { %840 = vmatprep.subr.bf16.mxu0 %v1093_v40  ;;  %872 = vmatprep.subr.bf16.mxu1 %v1093_v40  ;;  %v586_v38 = vld [vmem:[%s1414_s0 + $0x140] sm:$0x3] }
  0x1d   :  { %842 = vmatpush3.bf16.msra.mxu0 %v1109_v45  ;;  %874 = vmatpush3.bf16.msra.mxu1 %v1109_v45 }
  0x1e   :  { %844 = vmatprep.subr.bf16.mxu0 %v1113_v46  ;;  %876 = vmatprep.subr.bf16.mxu1 %v1113_v46 }
  0x21   :  { %846 = vmatpush3.bf16.msra.mxu0 %v1123_v49  ;;  %878 = vmatpush3.bf16.msra.mxu1 %v1123_v49 }
  0x22   :  { %880 = vmatprep.subr.bf16.mxu0 %v972_v3  ;;  %912 = vmatprep.subr.bf16.mxu1 %v972_v3  ;;  %v568_v3 = vld [vmem:[%s1414_s0 + $0xb0] sm:$0xff] }
  0x24   :  { %125 = vmatmul.mubr.f32.vlgmr.msra.gmra.mrb[0].mxu0 %v46_v50  ;;  %240 = vmatmul.mubr.f32.vlgmr.msra.gmra.mrb[0].mxu1 %v560_v51 }
  0x25   :  { %882 = vmatpush3.bf16.msra.mxu0 %v983_v7  ;;  %914 = vmatpush3.bf16.msra.mxu1 %v983_v7  ;;  %v570_v7 = vld [vmem:[%s1414_s0 + $0xc0] sm:$0xff] }
  0x26   :  { %884 = vmatprep.subr.bf16.mxu0 %v985_v8  ;;  %916 = vmatprep.subr.bf16.mxu1 %v985_v8  ;;  %v59_v8 = vld [vmem:[%s1414_s0 + $0x68] sm:$0x3] }
  0x27   :  { %129 = vmatprep.mubr.f32.mxu0 %v49_v52  ;;  %244 = vmatprep.mubr.f32.mxu1 %v563_v53 }
  0x28   :  { %130 = vmatmul.mubr.f32.gmra.mrb[2].mxu0 %v48_v54  ;;  %245 = vmatmul.mubr.f32.gmra.mrb[2].mxu1 %v562_v55 }
  0x29   :  { %886 = vmatpush3.bf16.msra.mxu0 %v1003_v13  ;;  %918 = vmatpush3.bf16.msra.mxu1 %v1003_v13  ;;  %v589_v13 = vld [vmem:[%s1414_s0 + $0x158] sm:$0xff] }
  0x2a   :  { %888 = vmatprep.subr.bf16.mxu0 %v1007_v14  ;;  %920 = vmatprep.subr.bf16.mxu1 %v1007_v14  ;;  %v574_v14 = vld [vmem:[%s1414_s0 + $0xe0] sm:$0xff] }
  0x2b   :  { %134 = vmatprep.mubr.f32.mxu0 %v51_v56  ;;  %249 = vmatprep.mubr.f32.mxu1 %v565_v57 }
  0x2c   :  { %135 = vmatmul.mubr.f32.gmra.mrb[4].mxu0 %v50_v58  ;;  %250 = vmatmul.mubr.f32.gmra.mrb[4].mxu1 %v564_v59 }
  0x2d   :  { %890 = vmatpush3.bf16.msra.mxu0 %v1023_v19  ;;  %922 = vmatpush3.bf16.msra.mxu1 %v1023_v19  ;;  %v590_v19 = vld [vmem:[%s1414_s0 + $0x160] sm:$0xff] }
  0x2e   :  { %892 = vmatprep.subr.bf16.mxu0 %v1027_v20  ;;  %924 = vmatprep.subr.bf16.mxu1 %v1027_v20  ;;  %v579_v20 = vld [vmem:[%s1414_s0 + $0x108] sm:$0xff] }
  0x2f   :  { %139 = vmatprep.mubr.f32.mxu0 %v53_v60  ;;  %254 = vmatprep.mubr.f32.mxu1 %v567_v61 }
  0x30   :  { %140 = vmatmul.mubr.f32.gmra.mrb[6].mxu0 %v52_v62  ;;  %255 = vmatmul.mubr.f32.gmra.mrb[6].mxu1 %v566_v63 }
  0x31   :  { %894 = vmatpush3.bf16.msra.mxu0 %v1049_v27  ;;  %926 = vmatpush3.bf16.msra.mxu1 %v1049_v27  ;;  %v594_v27 = vld [vmem:[%s1414_s0 + $0x180] sm:$0xff] }
  0x32   :  { %896 = vmatprep.subr.bf16.mxu0 %v1053_v28  ;;  %928 = vmatprep.subr.bf16.mxu1 %v1053_v28  ;;  %v583_v28 = vld [vmem:[%s1414_s0 + $0x128] sm:$0xff] }
  0x33   :  { %144 = vmatprep.mubr.f32.mxu0 %v55_v0  ;;  %259 = vmatprep.mubr.f32.mxu1 %v569_v1 }
  0x34   :  { %145 = vmatmul.mubr.f32.gmra.mrb[8].mxu0 %v54_v2  ;;  %260 = vmatmul.mubr.f32.gmra.mrb[8].mxu1 %v568_v3 }
  0x35   :  { %898 = vmatpush3.bf16.msra.mxu0 %v1069_v33  ;;  %930 = vmatpush3.bf16.msra.mxu1 %v1069_v33  ;;  %v599_v33 = vld [vmem:[%s1414_s0 + $0x1a8] sm:$0xff] }
  0x36   :  { %900 = vmatprep.subr.bf16.mxu0 %v1073_v34  ;;  %932 = vmatprep.subr.bf16.mxu1 %v1073_v34  ;;  %v584_v34 = vld [vmem:[%s1414_s0 + $0x130] sm:$0xff] }
  0x37   :  { %149 = vmatprep.mubr.f32.mxu0 %v57_v4  ;;  %264 = vmatprep.mubr.f32.mxu1 %v571_v5 }
  0x38   :  { %150 = vmatmul.mubr.f32.gmra.mrb[10].mxu0 %v56_v6  ;;  %265 = vmatmul.mubr.f32.gmra.mrb[10].mxu1 %v570_v7 }
  0x39   :  { %902 = vmatpush3.bf16.msra.mxu0 %v1089_v39  ;;  %934 = vmatpush3.bf16.msra.mxu1 %v1089_v39  ;;  %v600_v39 = vld [vmem:[%s1414_s0 + $0x1b0] sm:$0x3] }
  0x3a   :  { %904 = vmatprep.subr.bf16.mxu0 %v1093_v40  ;;  %936 = vmatprep.subr.bf16.mxu1 %v1093_v40 }
  0x3b   :  { %154 = vmatprep.mubr.f32.mxu0 %v59_v8  ;;  %269 = vmatprep.mubr.f32.mxu1 %v573_v9 }
  0x3c   :  { %155 = vmatmul.mubr.f32.gmra.mrb[12].mxu0 %v58_v10  ;;  %270 = vmatmul.mubr.f32.gmra.mrb[12].mxu1 %v572_v11 }
  0x3d   :  { %906 = vmatpush3.bf16.msra.mxu0 %v1109_v45  ;;  %938 = vmatpush3.bf16.msra.mxu1 %v1109_v45 }
  0x3e   :  { %908 = vmatprep.subr.bf16.mxu0 %v1113_v46  ;;  %940 = vmatprep.subr.bf16.mxu1 %v1113_v46 }
  0x3f   :  { %354 = vmatprep.mubr.f32.mxu0 %v575_v12  ;;  %469 = vmatprep.mubr.f32.mxu1 %v589_v13 }
  0x41   :  { %910 = vmatpush3.bf16.msra.mxu0 %v1123_v49  ;;  %942 = vmatpush3.bf16.msra.mxu1 %v1123_v49 }
  0x44   :  { %355 = vmatmul.mubr.f32.vlgmr.msra.gmra.mrb[14].mxu0 %v574_v14  ;;  %470 = vmatmul.mubr.f32.vlgmr.msra.gmra.mrb[14].mxu1 %v588_v15 }
  0x45   :  { %359 = vmatprep.mubr.f32.mxu0 %v577_v16  ;;  %474 = vmatprep.mubr.f32.mxu1 %v591_v17 }
  0x48   :  { %360 = vmatmul.mubr.f32.gmra.mrb[16].mxu0 %v576_v18  ;;  %475 = vmatmul.mubr.f32.gmra.mrb[16].mxu1 %v590_v19 }
  0x49   :  { %364 = vmatprep.mubr.f32.mxu0 %v579_v20  ;;  %479 = vmatprep.mubr.f32.mxu1 %v593_v21 }
  0x4c   :  { %365 = vmatmul.mubr.f32.gmra.mrb[18].mxu0 %v578_v22  ;;  %480 = vmatmul.mubr.f32.gmra.mrb[18].mxu1 %v592_v23 }
  0x4d   :  { %369 = vmatprep.mubr.f32.mxu0 %v581_v24  ;;  %484 = vmatprep.mubr.f32.mxu1 %v595_v25 }
  0x50   :  { %370 = vmatmul.mubr.f32.gmra.mrb[20].mxu0 %v580_v26  ;;  %485 = vmatmul.mubr.f32.gmra.mrb[20].mxu1 %v594_v27 }
  0x51   :  { %374 = vmatprep.mubr.f32.mxu0 %v583_v28  ;;  %489 = vmatprep.mubr.f32.mxu1 %v597_v29 }
  0x54   :  { %375 = vmatmul.mubr.f32.gmra.mrb[22].mxu0 %v582_v30  ;;  %490 = vmatmul.mubr.f32.gmra.mrb[22].mxu1 %v596_v31 }
  0x55   :  { %379 = vmatprep.mubr.f32.mxu0 %v585_v32  ;;  %494 = vmatprep.mubr.f32.mxu1 %v599_v33 }
  0x58   :  { %380 = vmatmul.mubr.f32.gmra.mrb[24].mxu0 %v584_v34  ;;  %495 = vmatmul.mubr.f32.gmra.mrb[24].mxu1 %v598_v35  ;;  %v1362_v34 = vld [vmem:[%s1415_s2] ss:$0 sm:$0xff] }
  0x59   :  { %384 = vmatprep.mubr.f32.mxu0 %v587_v36  ;;  %499 = vmatprep.mubr.f32.mxu1 %v601_v37 }
  0x5c   :  { %385 = vmatmul.mubr.f32.gmra.mrb[26].mxu0 %v586_v38  ;;  %500 = vmatmul.mubr.f32.gmra.mrb[26].mxu1 %v600_v39 }
  0xf7   :  { %v635_v40 = vpop.f32.mrb[0].mxu0  ;;  %v688_v41 = vpop.f32.mrb[0].mxu1 }
  0xf8   :  { %v636_v42 = vpop.f32.mrb[1].mxu0  ;;  %v689_v43 = vpop.f32.mrb[1].mxu1 }
  0xf9   :  { %v637_v44 = vadd.f32 %v636_v42, %v635_v40  ;;  %v690_v45 = vadd.f32 %v689_v43, %v688_v41 }
  0xfb   :  { %v505_v46 = vmax.f32 %v637_v44, %v690_v45  ;;  %v638_v47 = vpop.f32.mrb[2].mxu0  ;;  %v691_v48 = vpop.f32.mrb[2].mxu1 }
  0xfc   :  { %v639_v49 = vpop.f32.mrb[3].mxu0  ;;  %v692_v50 = vpop.f32.mrb[3].mxu1 }
  0xfd   :  { %v1323_v51 = vadd.f32 %v639_v49, %v638_v47  ;;  %v1325_v52 = vadd.f32 %v692_v50, %v691_v48 }
  0xff   :  { %v506_v53 = vmax.f32 %v1323_v51, %v1325_v52  ;;  %v641_v54 = vpop.f32.mrb[4].mxu0  ;;  %v694_v55 = vpop.f32.mrb[4].mxu1 }
 0x100   :  { %v642_v56 = vpop.f32.mrb[5].mxu0  ;;  %v695_v57 = vpop.f32.mrb[5].mxu1 }
 0x101   :  { %v1329_v58 = vadd.f32 %v642_v56, %v641_v54  ;;  %v1331_v59 = vadd.f32 %v695_v57, %v694_v55 }
 0x103   :  { %v507_v60 = vmax.f32 %v1329_v58, %v1331_v59  ;;  %v644_v61 = vpop.f32.mrb[6].mxu0  ;;  %v697_v62 = vpop.f32.mrb[6].mxu1 }
 0x104   :  { %v645_v63 = vpop.f32.mrb[7].mxu0  ;;  %v698_v0 = vpop.f32.mrb[7].mxu1 }
 0x105   :  { %v1335_v1 = vadd.f32 %v645_v63, %v644_v61  ;;  %v1337_v2 = vadd.f32 %v698_v0, %v697_v62 }
 0x107   :  { %v508_v3 = vmax.f32 %v1335_v1, %v1337_v2  ;;  %v647_v4 = vpop.f32.mrb[8].mxu0  ;;  %v700_v5 = vpop.f32.mrb[8].mxu1 }
 0x108   :  { %v648_v6 = vpop.f32.mrb[9].mxu0  ;;  %v701_v7 = vpop.f32.mrb[9].mxu1 }
 0x109   :  { %v1341_v8 = vadd.f32 %v648_v6, %v647_v4  ;;  %v1343_v9 = vadd.f32 %v701_v7, %v700_v5 }
 0x10b   :  { %v509_v10 = vmax.f32 %v1341_v8, %v1343_v9  ;;  %v650_v11 = vpop.f32.mrb[10].mxu0  ;;  %v703_v12 = vpop.f32.mrb[10].mxu1 }
 0x10c   :  { %v651_v13 = vpop.f32.mrb[11].mxu0  ;;  %v704_v14 = vpop.f32.mrb[11].mxu1 }
 0x10d   :  { %v1347_v15 = vadd.f32 %v651_v13, %v650_v11  ;;  %v1349_v16 = vadd.f32 %v704_v14, %v703_v12 }
 0x10f   :  { %v510_v17 = vmax.f32 %v1347_v15, %v1349_v16  ;;  %v653_v18 = vpop.f32.mrb[12].mxu0  ;;  %v706_v19 = vpop.f32.mrb[12].mxu1 }
 0x110   :  { %v654_v20 = vpop.f32.mrb[13].mxu0  ;;  %v707_v21 = vpop.f32.mrb[13].mxu1 }
 0x111   :  { %v1353_v22 = vadd.f32 %v654_v20, %v653_v18  ;;  %v1355_v23 = vadd.f32 %v707_v21, %v706_v19 }
 0x113   :  { %v511_v24 = vmax.f32 %v1353_v22, %v1355_v23 }
 0x117   :  { %v741_v25 = vpop.f32.mrb[14].mxu0  ;;  %v794_v26 = vpop.f32.mrb[14].mxu1 }
 0x118   :  { %v742_v27 = vpop.f32.mrb[15].mxu0  ;;  %v795_v28 = vpop.f32.mrb[15].mxu1 }
 0x119   :  { %v743_v29 = vadd.f32 %v742_v27, %v741_v25  ;;  %v796_v30 = vadd.f32 %v795_v28, %v794_v26 }
 0x11b   :  { %v512_v31 = vmax.f32 %v743_v29, %v796_v30  ;;  %v744_v32 = vpop.f32.mrb[16].mxu0  ;;  %v797_v33 = vpop.f32.mrb[16].mxu1 }
 0x11c   :  { %v745_v35 = vpop.f32.mrb[17].mxu0  ;;  %v798_v36 = vpop.f32.mrb[17].mxu1 }
 0x11d   :  { %v519_v37 = vmax.f32 %v505_v46, %v512_v31  ;;  %v746_v38 = vadd.f32 %v745_v35, %v744_v32  ;;  %v799_v39 = vadd.f32 %v798_v36, %v797_v33 }
 0x11f   :  { %v533_v40 = vadd.f32 %v1362_v34, %v519_v37  ;;  %v513_v41 = vmax.f32 %v746_v38, %v799_v39  ;;  %v747_v42 = vpop.f32.mrb[18].mxu0  ;;  %v800_v43 = vpop.f32.mrb[18].mxu1 }
 0x120   :  { %v748_v44 = vpop.f32.mrb[19].mxu0  ;;  %v801_v45 = vpop.f32.mrb[19].mxu1 }
 0x121   :  { %v540_v47 = vmax.f32 %v533_v40, 0.0  ;;  %v520_v48 = vmax.f32 %v506_v53, %v513_v41  ;;  %v749_v49 = vadd.f32 %v748_v44, %v747_v42  ;;  %v802_v50 = vadd.f32 %v801_v45, %v800_v43 }
 0x123   :  { %548 = vst.msk [vmem:[%s1416_s3] sm:$0xff] %vm547_vm0, %v540_v47  ;;  %v534_v46 = vadd.f32 %v1362_v34, %v520_v48  ;;  %v514_v51 = vmax.f32 %v749_v49, %v802_v50  ;;  %v750_v52 = vpop.f32.mrb[20].mxu0  ;;  %v803_v54 = vpop.f32.mrb[20].mxu1 }
 0x124   :  { %v751_v55 = vpop.f32.mrb[21].mxu0  ;;  %v804_v56 = vpop.f32.mrb[21].mxu1 }
 0x125   :  { %v541_v57 = vmax.f32 %v534_v46, 0.0  ;;  %v521_v61 = vmax.f32 %v507_v60, %v514_v51  ;;  %v752_v53 = vadd.f32 %v751_v55, %v750_v52  ;;  %v805_v62 = vadd.f32 %v804_v56, %v803_v54 }
 0x127   :  { %549 = vst.msk [vmem:[%s1416_s3 + $0x8] sm:$0xff] %vm547_vm0, %v541_v57  ;;  %v535_v63 = vadd.f32 %v1362_v34, %v521_v61  ;;  %v515_v0 = vmax.f32 %v752_v53, %v805_v62  ;;  %v753_v4 = vpop.f32.mrb[22].mxu0  ;;  %v806_v5 = vpop.f32.mrb[22].mxu1 }
 0x128   :  { %v754_v6 = vpop.f32.mrb[23].mxu0  ;;  %v807_v7 = vpop.f32.mrb[23].mxu1 }
 0x129   :  { %v542_v11 = vmax.f32 %v535_v63, 0.0  ;;  %v522_v58 = vmax.f32 %v508_v3, %v515_v0  ;;  %v755_v59 = vadd.f32 %v754_v6, %v753_v4  ;;  %v808_v60 = vadd.f32 %v807_v7, %v806_v5 }
 0x12b   :  { %550 = vst.msk [vmem:[%s1416_s3 + $0x10] sm:$0xff] %vm547_vm0, %v542_v11  ;;  %v536_v12 = vadd.f32 %v1362_v34, %v522_v58  ;;  %v516_v13 = vmax.f32 %v755_v59, %v808_v60  ;;  %v756_v14 = vpop.f32.mrb[24].mxu0  ;;  %v809_v18 = vpop.f32.mrb[24].mxu1 }
 0x12c   :  { %v757_v19 = vpop.f32.mrb[25].mxu0  ;;  %v810_v20 = vpop.f32.mrb[25].mxu1 }
 0x12d   :  { %v543_v21 = vmax.f32 %v536_v12, 0.0  ;;  %v523_v1 = vmax.f32 %v509_v10, %v516_v13  ;;  %v758_v2 = vadd.f32 %v757_v19, %v756_v14  ;;  %v811_v3 = vadd.f32 %v810_v20, %v809_v18 }
 0x12f   :  { %551 = vst.msk [vmem:[%s1416_s3 + $0x18] sm:$0xff] %vm547_vm0, %v543_v21  ;;  %v537_v25 = vadd.f32 %v1362_v34, %v523_v1  ;;  %v517_v26 = vmax.f32 %v758_v2, %v811_v3  ;;  %v759_v27 = vpop.f32.mrb[26].mxu0  ;;  %v812_v28 = vpop.f32.mrb[26].mxu1 }
 0x130   :  { %v760_v29 = vpop.f32.mrb[27].mxu0  ;;  %v813_v30 = vpop.f32.mrb[27].mxu1 }
 0x131   :  { %v544_v31 = vmax.f32 %v537_v25, 0.0  ;;  %v524_v8 = vmax.f32 %v510_v17, %v517_v26  ;;  %v761_v9 = vadd.f32 %v760_v29, %v759_v27  ;;  %v814_v10 = vadd.f32 %v813_v30, %v812_v28 }
 0x133   :  { %552 = vst.msk [vmem:[%s1416_s3 + $0x20] sm:$0xff] %vm547_vm0, %v544_v31  ;;  %v538_v32 = vadd.f32 %v1362_v34, %v524_v8  ;;  %v518_v33 = vmax.f32 %v761_v9, %v814_v10 }
 0x135   :  { %v545_v35 = vmax.f32 %v538_v32, 0.0  ;;  %v525_v36 = vmax.f32 %v511_v24, %v518_v33 }
 0x137   :  { %553 = vst.msk [vmem:[%s1416_s3 + $0x28] sm:$0xff] %vm547_vm0, %v545_v35  ;;  %v539_v15 = vadd.f32 %v1362_v34, %v525_v36 }
 0x139   :  { %v546_v16 = vmax.f32 %v539_v15, 0.0 }
 0x13b   :  { %555 = vst.msk [vmem:[%s1416_s3 + $0x30] sm:$0x3] %vm554_vm1, %v546_v16 }

// kernel: _lambda_.5
= control target key start
LH: loop header
LB: loop body
LE: loop exit
PB: predicated region body
PF: predicated region fallthrough
CT: control target
= control target key end

     0   :  { %v732_v4 = vmov 0.0|0.0   ;;  %v733_v26 = vmov 1983009808   ;;  %v122_v28 = vlaneseq  ;;  %vm138_vm0 = vcmask 130048   ;;  %s1072_s0 = inlined_call_operand.vmem [shape: f32[2,400], index: 0, kind: input, shape index: {}]   ;;  %s1073_s1 = inlined_call_operand.vmem [shape: f32[400,128], index: 1, kind: input, shape index: {}]   ;;  %s1074_s2 = inlined_call_operand.vmem [shape: f32[1,128], index: 2, kind: input, shape index: {}]   ;;  %s1075_s3 = inlined_call_operand.vmem [shape: f32[128,128], index: 3, kind: input, shape index: {}]   ;;  %s1076_s4 = inlined_call_operand.vmem [shape: f32[1,128], index: 4, kind: input, shape index: {}]   ;;  %s1077_s5 = inlined_call_operand.vmem [shape: f32[128,128], index: 5, kind: input, shape index: {}]   ;;  %s1078_s6 = inlined_call_operand.vmem [shape: f32[1,128], index: 6, kind: input, shape index: {}]   ;;  %s1079_s7 = inlined_call_operand.hbm [shape: f32[2,128], index: 7, kind: output, shape index: {}]  }
   0x1   :  { %v43_v0 = vld [vmem:[%s1073_s1 + $0x80] sm:$0xff]  ;;  %v44_v1 = vld [vmem:[%s1073_s1 + $0x88] sm:$0xff]  ;;  %627 = vmatprep.subr.bf16.mxu1 %v732_v4  ;;  %v45_v10 = vld [vmem:[%s1073_s1 + $0x90] sm:$0xff]  ;;  %v120_v27 = vunpack.c.l.s4 %v733_v26 }
   0x2   :  { %v27_v2 = vld [vmem:[%s1073_s1] sm:$0xff]  ;;  %v595_v3 = vpack.c.bf16 %v44_v1, %v43_v0  ;;  %v28_v5 = vld [vmem:[%s1073_s1 + $0x8] sm:$0xff]  ;;  %v46_v11 = vld [vmem:[%s1073_s1 + $0x98] sm:$0xff]  ;;  %v123_v39 = vshrl.u32 %v122_v28, 7 }
   0x3   :  { %v59_v6 = vld [vmem:[%s1073_s1 + $0x100] sm:$0xff]  ;;  %v60_v7 = vld [vmem:[%s1073_s1 + $0x108] sm:$0xff]  ;;  %v597_v8 = vpack.c.bf16 %v28_v5, %v27_v2  ;;  %v29_v12 = vld [vmem:[%s1073_s1 + $0x10] sm:$0xff]  ;;  %v599_v13 = vpack.c.bf16 %v46_v11, %v45_v10  ;;  %v121_v38 = vunpack.c.0.s8 %v120_v27 }
   0x4   :  { %v628_v9 = vpack.c.bf16 %v60_v7, %v59_v6  ;;  %596 = vmatprep.subr.bf16.mxu0 %v595_v3  ;;  %v30_v14 = vld [vmem:[%s1073_s1 + $0x18] sm:$0xff]  ;;  %v61_v15 = vld [vmem:[%s1073_s1 + $0x110] sm:$0xff]  ;;  %v47_v19 = vld [vmem:[%s1073_s1 + $0xa0] sm:$0xff] }
   0x5   :  { %v62_v16 = vld [vmem:[%s1073_s1 + $0x118] sm:$0xff]  ;;  %598 = vmatpush3.bf16.msra.mxu0 %v597_v8  ;;  %v601_v17 = vpack.c.bf16 %v30_v14, %v29_v12  ;;  %v48_v20 = vld [vmem:[%s1073_s1 + $0xa8] sm:$0xff]  ;;  %v31_v21 = vld [vmem:[%s1073_s1 + $0x20] sm:$0xff]  ;;  %v124_v49 = vsub.s32 %v121_v38, %v123_v39 }
   0x6   :  { %629 = vmatpush1.bf16.msra.mxu1 %v628_v9  ;;  %v631_v18 = vpack.c.bf16 %v62_v16, %v61_v15  ;;  %600 = vmatprep.subr.bf16.mxu0 %v599_v13  ;;  %v603_v22 = vpack.c.bf16 %v48_v20, %v47_v19  ;;  %v32_v23 = vld [vmem:[%s1073_s1 + $0x28] sm:$0xff]  ;;  %v63_v24 = vld [vmem:[%s1073_s1 + $0x120] sm:$0xff]  ;;  %v49_v29 = vld [vmem:[%s1073_s1 + $0xb0] sm:$0xff] }
   0x7   :  { %630 = vmatprep.subr.bf16.mxu1 %v732_v4  ;;  %v64_v25 = vld [vmem:[%s1073_s1 + $0x128] sm:$0xff]  ;;  %v50_v30 = vld [vmem:[%s1073_s1 + $0xb8] sm:$0xff]  ;;  %v605_v31 = vpack.c.bf16 %v32_v23, %v31_v21  ;;  %v33_v33 = vld [vmem:[%s1073_s1 + $0x30] sm:$0xff] }
   0x8   :  { %v634_v32 = vpack.c.bf16 %v64_v25, %v63_v24  ;;  %v607_v34 = vpack.c.bf16 %v50_v30, %v49_v29  ;;  %v34_v35 = vld [vmem:[%s1073_s1 + $0x38] sm:$0xff]  ;;  %v65_v36 = vld [vmem:[%s1073_s1 + $0x130] sm:$0xff]  ;;  %v51_v40 = vld [vmem:[%s1073_s1 + $0xc0] sm:$0xff] }
   0x9   :  { %602 = vmatpush3.bf16.msra.mxu0 %v601_v17  ;;  %v66_v37 = vld [vmem:[%s1073_s1 + $0x138] sm:$0xff]  ;;  %v52_v41 = vld [vmem:[%s1073_s1 + $0xc8] sm:$0xff]  ;;  %v609_v42 = vpack.c.bf16 %v34_v35, %v33_v33  ;;  %v35_v44 = vld [vmem:[%s1073_s1 + $0x40] sm:$0xff] }
   0xa   :  { %632 = vmatpush1.bf16.msra.mxu1 %v631_v18  ;;  %604 = vmatprep.subr.bf16.mxu0 %v603_v22  ;;  %v637_v43 = vpack.c.bf16 %v66_v37, %v65_v36  ;;  %v611_v45 = vpack.c.bf16 %v52_v41, %v51_v40  ;;  %v36_v46 = vld [vmem:[%s1073_s1 + $0x48] sm:$0xff]  ;;  %v67_v47 = vld [vmem:[%s1073_s1 + $0x140] sm:$0xff]  ;;  %v53_v50 = vld [vmem:[%s1073_s1 + $0xd0] sm:$0xff] }
   0xb   :  { %633 = vmatprep.subr.bf16.mxu1 %v732_v4  ;;  %v68_v48 = vld [vmem:[%s1073_s1 + $0x148] sm:$0xff]  ;;  %v54_v51 = vld [vmem:[%s1073_s1 + $0xd8] sm:$0xff]  ;;  %v613_v52 = vpack.c.bf16 %v36_v46, %v35_v44  ;;  %v37_v54 = vld [vmem:[%s1073_s1 + $0x50] sm:$0xff] }
   0xc   :  { %v640_v53 = vpack.c.bf16 %v68_v48, %v67_v47  ;;  %v109_v55 = vld [vmem:[%s1072_s0] sm:$0xff]  ;;  %v615_v56 = vpack.c.bf16 %v54_v51, %v53_v50  ;;  %v38_v57 = vld [vmem:[%s1073_s1 + $0x58] sm:$0xff]  ;;  %v69_v58 = vld [vmem:[%s1073_s1 + $0x150] sm:$0xff] }
   0xd   :  { %606 = vmatpush3.bf16.msra.mxu0 %v605_v31  ;;  %v70_v59 = vld [vmem:[%s1073_s1 + $0x158] sm:$0xff]  ;;  %v118_v60 = vcombine.high %v109_v55, %v109_v55  ;;  %v125_v61 = vrot.slane %v109_v55, %v124_v49  ;;  %v55_v62 = vld [vmem:[%s1073_s1 + $0xe0] sm:$0xff]  ;;  %v56_v63 = vld [vmem:[%s1073_s1 + $0xe8] sm:$0xff]  ;;  %v617_v2 = vpack.c.bf16 %v38_v57, %v37_v54 }
   0xe   :  { %635 = vmatpush1.bf16.msra.mxu1 %v634_v32  ;;  %608 = vmatprep.subr.bf16.mxu0 %v607_v34  ;;  %v643_v3 = vpack.c.bf16 %v70_v59, %v69_v58  ;;  %v39_v5 = vld [vmem:[%s1073_s1 + $0x60] sm:$0xff]  ;;  %v40_v6 = vld [vmem:[%s1073_s1 + $0x68] sm:$0xff]  ;;  %v619_v7 = vpack.c.bf16 %v56_v63, %v55_v62 }
   0xf   :  { %636 = vmatprep.subr.bf16.mxu1 %v732_v4  ;;  %v133_v0 = vcombine.high %v125_v61, %v125_v61  ;;  %v132_v1 = vrot.slane %v118_v60, %v124_v49  ;;  %v71_v8 = vld [vmem:[%s1073_s1 + $0x160] sm:$0xff]  ;;  %v72_v9 = vld [vmem:[%s1073_s1 + $0x168] sm:$0xff] }
  0x11   :  { %610 = vmatpush3.bf16.msra.mxu0 %v609_v42  ;;  %v134_v10 = vcombine.high %v132_v1, %v132_v1 }
  0x12   :  { %638 = vmatpush1.bf16.msra.mxu1 %v637_v43  ;;  %612 = vmatprep.subr.bf16.mxu0 %v611_v45 }
  0x13   :  { %639 = vmatprep.subr.bf16.mxu1 %v732_v4 }
  0x15   :  { %614 = vmatpush3.bf16.msra.mxu0 %v613_v52 }
  0x16   :  { %641 = vmatpush1.bf16.msra.mxu1 %v640_v53  ;;  %616 = vmatprep.subr.bf16.mxu0 %v615_v56 }
  0x17   :  { %642 = vmatprep.subr.bf16.mxu1 %v732_v4 }
  0x18   :  { %12 = vsyncpa [#allocation3], 0  ;;  %v57_v11 = vld [vmem:[%s1073_s1 + $0xf0] sm:$0xff]  ;;  %v58_v12 = vld [vmem:[%s1073_s1 + $0xf8] sm:$0xff]  ;;  %205 = vmatprep.mubr.f32.mxu0 %v133_v0  ;;  %453 = vmatprep.mubr.msk.f32.mxu1 %vm138_vm0, %v134_v10  ;;  %v621_v13 = vpack.c.bf16 %v40_v6, %v39_v5  ;;  %v646_v14 = vpack.c.bf16 %v72_v9, %v71_v8  ;;  %vm734_vm1 = vmmov 0   ;;  %v735_v49 = vmov 0.0  }
  0x19   :  { %618 = vmatpush3.bf16.msra.mxu0 %v617_v2  ;;  %v41_v15 = vld [vmem:[%s1073_s1 + $0x70] sm:$0xff]  ;;  %v623_v16 = vpack.c.bf16 %v58_v12, %v57_v11  ;;  %v42_v17 = vld [vmem:[%s1073_s1 + $0x78] sm:$0xff]  ;;  %v75_v22 = vld [vmem:[%s1073_s1 + $0x180] sm:$0xff]  ;;  %s736_s25 = smov [#allocation2]  }
  0x1a   :  { %644 = vmatpush1.bf16.msra.mxu1 %v643_v3  ;;  %620 = vmatprep.subr.bf16.mxu0 %v619_v7  ;;  %v73_v18 = vld [vmem:[%s1073_s1 + $0x170] sm:$0xff]  ;;  %v74_v19 = vld [vmem:[%s1073_s1 + $0x178] sm:$0xff]  ;;  %v625_v20 = vpack.c.bf16 %v42_v17, %v41_v15  ;;  %v76_v23 = vld [vmem:[%s1073_s1 + $0x188] sm:$0xff]  ;;  %s444_s26 = sshll.u32 %s736_s25, 4  ;;  %s445_s26 = int_to_ptr.vmem [resolvable:$true] %s444_s26 }
  0x1b   :  { %645 = vmatprep.subr.bf16.mxu1 %v732_v4  ;;  %v649_v21 = vpack.c.bf16 %v74_v19, %v73_v18  ;;  %v77_v24 = vld [vmem:[%s1075_s3] sm:$0xff]  ;;  %v78_v25 = vld [vmem:[%s1075_s3 + $0x8] sm:$0xff]  ;;  %v652_v26 = vpack.c.bf16 %v76_v23, %v75_v22  ;;  %v79_v28 = vld [vmem:[%s1075_s3 + $0x10] sm:$0xff]  ;;  %p713_p1 = scmp.lt.s32.totalorder %s445_s26, %s445_s26 }
  0x1c   :  { %v655_v27 = vpack.c.bf16 %v78_v25, %v77_v24  ;;  %v80_v29 = vld [vmem:[%s1075_s3 + $0x18] sm:$0xff]  ;;  %v81_v31 = vld [vmem:[%s1075_s3 + $0x20] sm:$0xff]  ;;  %v82_v32 = vld [vmem:[%s1075_s3 + $0x28] sm:$0xff] }
  0x1d   :  { %622 = vmatpush3.bf16.msra.mxu0 %v621_v13  ;;  %v658_v30 = vpack.c.bf16 %v80_v29, %v79_v28  ;;  %v661_v33 = vpack.c.bf16 %v82_v32, %v81_v31  ;;  %v83_v34 = vld [vmem:[%s1075_s3 + $0x30] sm:$0xff]  ;;  %v84_v35 = vld [vmem:[%s1075_s3 + $0x38] sm:$0xff]  ;;  %v85_v37 = vld [vmem:[%s1075_s3 + $0x40] sm:$0xff] }
  0x1e   :  { %647 = vmatpush1.bf16.msra.mxu1 %v646_v14  ;;  %624 = vmatprep.subr.bf16.mxu0 %v623_v16  ;;  %v664_v36 = vpack.c.bf16 %v84_v35, %v83_v34  ;;  %v86_v38 = vld [vmem:[%s1075_s3 + $0x48] sm:$0xff]  ;;  %v87_v40 = vld [vmem:[%s1075_s3 + $0x50] sm:$0xff]  ;;  %v88_v41 = vld [vmem:[%s1075_s3 + $0x58] sm:$0xff] }
  0x1f   :  { %648 = vmatprep.subr.bf16.mxu1 %v732_v4  ;;  %v667_v39 = vpack.c.bf16 %v86_v38, %v85_v37  ;;  %v670_v42 = vpack.c.bf16 %v88_v41, %v87_v40  ;;  %v89_v43 = vld [vmem:[%s1075_s3 + $0x60] sm:$0xff]  ;;  %v90_v44 = vld [vmem:[%s1075_s3 + $0x68] sm:$0xff]  ;;  %v91_v46 = vld [vmem:[%s1075_s3 + $0x70] sm:$0xff] }
  0x20   :  { %v673_v45 = vpack.c.bf16 %v90_v44, %v89_v43  ;;  %v92_v47 = vld [vmem:[%s1075_s3 + $0x78] sm:$0xff]  ;;  %v93_v50 = vld [vmem:[%s1077_s5] sm:$0xff]  ;;  %v94_v51 = vld [vmem:[%s1077_s5 + $0x8] sm:$0xff] }
  0x21   :  { %626 = vmatpush3.bf16.msra.mxu0 %v625_v20  ;;  %v676_v48 = vpack.c.bf16 %v92_v47, %v91_v46  ;;  %v95_v52 = vld [vmem:[%s1077_s5 + $0x10] sm:$0xff]  ;;  %v679_v53 = vpack.c.bf16 %v94_v51, %v93_v50  ;;  %v96_v54 = vld [vmem:[%s1077_s5 + $0x18] sm:$0xff]  ;;  %v97_v56 = vld [vmem:[%s1077_s5 + $0x20] sm:$0xff] }
  0x22   :  { %650 = vmatpush1.bf16.msra.mxu1 %v649_v21  ;;  %654 = vmatprep.subr.bf16.mxu0 %v732_v4  ;;  %v682_v55 = vpack.c.bf16 %v96_v54, %v95_v52  ;;  %v98_v57 = vld [vmem:[%s1077_s5 + $0x28] sm:$0xff]  ;;  %v99_v59 = vld [vmem:[%s1077_s5 + $0x30] sm:$0xff]  ;;  %v100_v60 = vld [vmem:[%s1077_s5 + $0x38] sm:$0xff] }
  0x23   :  { %651 = vmatprep.subr.bf16.mxu1 %v732_v4  ;;  %v685_v58 = vpack.c.bf16 %v98_v57, %v97_v56  ;;  %v101_v62 = vld [vmem:[%s1077_s5 + $0x40] sm:$0xff]  ;;  %v102_v63 = vld [vmem:[%s1077_s5 + $0x48] sm:$0xff]  ;;  %v104_v2 = vld [vmem:[%s1077_s5 + $0x58] sm:$0xff] }
  0x24   :  { %206 = vmatmul.mubr.f32.vlgmr.msra.gmra.mrb[0].mxu0 %v125_v61  ;;  %v688_v61 = vpack.c.bf16 %v100_v60, %v99_v59  ;;  %v691_v0 = vpack.c.bf16 %v102_v63, %v101_v62  ;;  %v105_v5 = vld [vmem:[%s1077_s5 + $0x60] sm:$0xff]  ;;  %v106_v6 = vld [vmem:[%s1077_s5 + $0x68] sm:$0xff]  ;;  %v107_v17 = vld [vmem:[%s1077_s5 + $0x70] sm:$0xff] }
  0x25   :  { %656 = vmatpush3.bf16.msra.mxu0 %v655_v27  ;;  %557 = vmatprep.mubr.msk.f32.mxu0 %vm734_vm1, %v735_v49  ;;  %v697_v7 = vpack.c.bf16 %v106_v6, %v105_v5  ;;  %v452_v10 = vld [vmem:[%s1074_s2] ss:$0 sm:$0xff] }
  0x26   :  { %653 = vmatpush1.bf16.msra.mxu1 %v652_v26  ;;  %657 = vmatprep.subr.bf16.mxu0 %v732_v4  ;;  %v454_v19 = vld [vmem:[%s1076_s4] ss:$0 sm:$0xff] }
  0x27   :  { %678 = vmatprep.subr.bf16.mxu1 %v732_v4  ;;  %v455_v24 = vld [vmem:[%s1078_s6] ss:$0 sm:$0xff] }
  0x29   :  { %276 = vmatmul.mubr.f32.vlgmr.msra.gmra.mrb[0].mxu1 %v132_v1  ;;  %659 = vmatpush3.bf16.msra.mxu0 %v658_v30  ;;  %v103_v1 = vld [vmem:[%s1077_s5 + $0x50] sm:$0xff] }
  0x2a   :  { %660 = vmatprep.subr.bf16.mxu0 %v732_v4  ;;  %592 = vmatprep.mubr.msk.f32.mxu1 %vm734_vm1, %v735_v49  ;;  %v694_v3 = vpack.c.bf16 %v104_v2, %v103_v1 }
  0x2b   :  { %680 = vmatpush3.bf16.msra.mxu1 %v679_v53 }
  0x2c   :  { %681 = vmatprep.subr.bf16.mxu1 %v732_v4 }
  0x2d   :  { %662 = vmatpush3.bf16.msra.mxu0 %v661_v33 }
  0x2e   :  { %663 = vmatprep.subr.bf16.mxu0 %v732_v4 }
  0x2f   :  { %683 = vmatpush3.bf16.msra.mxu1 %v682_v55 }
  0x30   :  { %684 = vmatprep.subr.bf16.mxu1 %v732_v4 }
  0x31   :  { %665 = vmatpush3.bf16.msra.mxu0 %v664_v36 }
  0x32   :  { %666 = vmatprep.subr.bf16.mxu0 %v732_v4 }
  0x33   :  { %686 = vmatpush3.bf16.msra.mxu1 %v685_v58 }
  0x34   :  { %687 = vmatprep.subr.bf16.mxu1 %v732_v4 }
  0x35   :  { %668 = vmatpush3.bf16.msra.mxu0 %v667_v39 }
  0x36   :  { %669 = vmatprep.subr.bf16.mxu0 %v732_v4 }
  0x37   :  { %689 = vmatpush3.bf16.msra.mxu1 %v688_v61 }
  0x38   :  { %690 = vmatprep.subr.bf16.mxu1 %v732_v4 }
  0x39   :  { %671 = vmatpush3.bf16.msra.mxu0 %v670_v42 }
  0x3a   :  { %672 = vmatprep.subr.bf16.mxu0 %v732_v4 }
  0x3b   :  { %692 = vmatpush3.bf16.msra.mxu1 %v691_v0 }
  0x3c   :  { %693 = vmatprep.subr.bf16.mxu1 %v732_v4 }
  0x3d   :  { %674 = vmatpush3.bf16.msra.mxu0 %v673_v45 }
  0x3e   :  { %675 = vmatprep.subr.bf16.mxu0 %v732_v4 }
  0x3f   :  { %695 = vmatpush3.bf16.msra.mxu1 %v694_v3 }
  0x40   :  { %696 = vmatprep.subr.bf16.mxu1 %v732_v4 }
  0x41   :  { %677 = vmatpush3.bf16.msra.mxu0 %v676_v48 }
  0x43   :  { %698 = vmatpush3.bf16.msra.mxu1 %v697_v7 }
  0x44   :  { %699 = vmatprep.subr.bf16.mxu1 %v732_v4  ;;  %v108_v4 = vld [vmem:[%s1077_s5 + $0x78] sm:$0xff]  ;;  %s708_s5 = scalar_lea.vmem %s445_s26, 32 }
  0x45   :  { %v700_v18 = vpack.c.bf16 %v108_v4, %v107_v17  ;;  %p709_p0 = scmp.ne.s32.totalorder %s445_s26, %s708_s5  ;;  %p714_p2 = scmp.lt.s32.totalorder %s708_s5, %s708_s5 }
  0x47   :  { %701 = vmatpush3.bf16.msra.mxu1 %v700_v18  ;;  %p715_p3 = por %p714_p2, %p713_p1 }
  0x49   :  { %p716_p4 = pnand %p715_p3, %p709_p0 }
  0xf7   :  { %v488_v8 = vpop.f32.mrb[0].mxu0 }
  0xf8   :  { %v489_v9 = vpop.f32.mrb[1].mxu0 }
  0xf9   :  { %v490_v11 = vadd.f32 %v489_v9, %v488_v8 }
  0xfb   :  { %v208_v12 = vadd.f32 %v490_v11, %v452_v10 }
  0xfc   :  { %v277_v13 = vpop.f32.mrb[0].mxu1 }
  0xfd   :  { %v279_v14 = vpop.f32.mrb[1].mxu1  ;;  %v278_v15 = vadd.f32 %v277_v13, %v208_v12 }
  0xff   :  { %v281_v16 = vmax.f32 %v278_v15, 0.0 }
 0x101   :  { %558 = vmatmul.mubr.f32.vlgmr.msra.gmra.mrb[2].mxu0 %v281_v16 }
 0x1d4   :  { %v355_v20 = vpop.f32.mrb[2].mxu0 }
 0x1d5   :  { %v356_v21 = vadd.f32 %v454_v19, %v355_v20  ;;  %v559_v22 = vpop.f32.mrb[3].mxu0 }
 0x1d7   :  { %v359_v23 = vmax.f32 %v356_v21, 0.0 }
 0x1d9   :  { %593 = vmatmul.mubr.f32.vlgmr.msra.gmra.mrb[2].mxu1 %v359_v23 }
 0x2ac   :  { %v433_v25 = vpop.f32.mrb[2].mxu1 }
 0x2ad   :  { %v434_v26 = vadd.f32 %v455_v24, %v433_v25  ;;  %v594_v27 = vpop.f32.mrb[3].mxu1 }
 0x2af   :  { %437 = vst [vmem:[#allocation2] sm:$0x3] %v434_v26 }
 0x2b0   :  { %719 = shalt.err (!%p716_p4)
}
 0x2b1   :  { %s720_s28 = scalar_lea.hbm %s1079_s7, 32 }
 0x2b2   :  { %p721_p5 = scmp.ne.s32.totalorder %s1079_s7, %s720_s28  ;;  %p724_p6 = scmp.lt.u32.totalorder %s720_s28, %s1079_s7 }
 0x2b4   :  { %p726_p7 = pnand %p724_p6, %p721_p5 }
 0x2b6   :  { %729 = shalt.err (!%p726_p7)
}
 0x2b7   :  { %447 = dma.vmem_to_hbm [thread:$0]  %s445_s26, 32, %s1079_s7, [#allocation3]  }
 0x2b8   :  { %730 = dma.done.wait [#allocation3], 32  }
 0x2b9   :  { %731 = vsyncadd [#allocation3], 4294967264 }
 0x2ba   :  { %451 = vsyncpa [#allocation3], 1 }

</bundles_post_ra>
